<compile_context>
chip_gen: v7x
topology: tpu7x:2x2x1
jax: 0.10.0
libtpu: 0.0.40
codegen_flags: <defaults>
</compile_context>

<pallas_src>
import functools

import jax
import jax.numpy as jnp
from jax import lax
from jax.experimental import pallas as pl
from jax.experimental.pallas import tpu as pltpu

INPUT_SIZE = 768
HIDDEN = 128
NUM_LAYERS = 2
NUM_CLASSES = 3          # stands in for args.classes
LANE = 128
SUBLANE = 8
VMEM_BUDGET = 36 * 1024 * 1024     # tile-selection budget (v7x-safe)
VMEM_LIMIT = 48 * 1024 * 1024      # scoped VMEM limit passed to Mosaic


def _round_up(x, m):
    return (x + m - 1) // m * m


# ---------------------------------------------------------------------------
# Tiling choices
# ---------------------------------------------------------------------------
def _choose_batch_tile(B):
    """Batch tile BB (multiple of 8, <=128) and padded batch B_pad."""
    B8 = _round_up(B, SUBLANE)
    if B8 <= SUBLANE:
        BB = B8                                     # tiny batch: one 8-row tile
    else:
        # keep >= 2 batch tiles so both v7x TensorCores get work
        BB = min(LANE, _round_up((B8 + 1) // 2, SUBLANE))
    B_pad = _round_up(B8, BB)
    return BB, B_pad


def _choose_time_chunk(T, BB):
    """Largest time chunk that keeps the fused layer kernel under the budget."""
    G = 4 * HIDDEN
    T8 = _round_up(T, SUBLANE)
    cands = [c for c in (128, 64, 32, 16, 8) if c <= T8] or [T8]
    for TC in cands:
        est = (2 * TC * BB * INPUT_SIZE * 4     # x chunk, double-buffered (worst layer)
               + 2 * TC * BB * G * 4            # out chunk (upper bound), double-buffered
               + TC * BB * G * 4                # gates scratch
               + TC * BB * HIDDEN * 4           # hidden-seq scratch (last layer)
               + (INPUT_SIZE * G + HIDDEN * G + HIDDEN * LANE + 2 * G) * 4
               + 2 * BB * HIDDEN * 4)           # h, c
        if est <= VMEM_BUDGET:
            return TC
    return cands[-1]


def _choose_unroll(BB, TC):
    if BB <= 8:
        u = 8
    elif BB <= 32:
        u = 4
    elif BB <= 64:
        u = 2
    else:
        u = 1
    return max(1, min(u, TC))


# ---------------------------------------------------------------------------
# Pallas kernels (time-major, projection fused per chunk)
# ---------------------------------------------------------------------------
def _lstm_chunk_body(x_ref, wih_ref, b_ref, whh_ref,
                     gates_scr, h_scr, c_scr, store_h, unroll):
    """One (TC, BB, D_in) chunk: projection prologue + serial recurrence.

    Gate column order (reordered offline): [i, f, o, g].
    """
    TC, BB, D = x_ref.shape
    G = wih_ref.shape[1]
    H = h_scr.shape[-1]

    @pl.when(pl.program_id(1) == 0)              # first time-chunk of this tile
    def _():
        h_scr[...] = jnp.zeros_like(h_scr)
        c_scr[...] = jnp.zeros_like(c_scr)

    # Chunk prologue: one dense MXU matmul for all TC steps' input gates.
    gates_scr[...] = (
        jnp.dot(x_ref[...].reshape(TC * BB, D), wih_ref[...],
                preferred_element_type=jnp.float32)
        + b_ref[...]).reshape(TC, BB, G)

    whh = whh_ref[...]                           # (H, 4H), hoisted

    def step(t, carry):
        g = gates_scr[t] + jnp.dot(h_scr[...], whh,
                                   preferred_element_type=jnp.float32)  # (BB, 4H)
        sig = jax.nn.sigmoid(g[:, :3 * H])       # [i | f | o] in one EUP pass
        i_g = sig[:, 0 * H:1 * H]
        f_g = sig[:, 1 * H:2 * H]
        o_g = sig[:, 2 * H:3 * H]
        g_g = jnp.tanh(g[:, 3 * H:4 * H])
        c_new = f_g * c_scr[...] + i_g * g_g
        h_new = o_g * jnp.tanh(c_new)
        c_scr[...] = c_new
        h_scr[...] = h_new
        store_h(t, h_new)
        return carry

    lax.fori_loop(0, TC, step, 0, unroll=unroll)


def lstm_layer_kernel(x_ref, wih_ref, b_ref, whh_ref, out_ref,
                      gates_scr, h_scr, c_scr, *, unroll):
    """Fused (projection + LSTM) layer emitting the time-major hidden sequence."""
    def store_h(t, h_new):
        out_ref[t] = h_new.astype(out_ref.dtype)   # plain (BB, H) tile store

    _lstm_chunk_body(x_ref, wih_ref, b_ref, whh_ref,
                     gates_scr, h_scr, c_scr, store_h, unroll)


def lstm_fc_layer_kernel(x_ref, wih_ref, b_ref, whh_ref, fcw_ref, fcb_ref,
                         out_ref, gates_scr, h_scr, c_scr, hseq_scr, *, unroll):
    """Last fused layer: LSTM + Linear head in the chunk epilogue."""
    TC, BB, _ = x_ref.shape
    H = h_scr.shape[-1]
    C_pad = fcw_ref.shape[-1]

    def store_h(t, h_new):
        hseq_scr[t] = h_new

    _lstm_chunk_body(x_ref, wih_ref, b_ref, whh_ref,
                     gates_scr, h_scr, c_scr, store_h, unroll)

    logits = (jnp.dot(hseq_scr[...].reshape(TC * BB, H), fcw_ref[...],
                      preferred_element_type=jnp.float32)
              + fcb_ref[...])                                  # (TC*BB, C_pad)
    out_ref[...] = logits.reshape(TC, BB, C_pad).astype(out_ref.dtype)


# ---------------------------------------------------------------------------
# Wrapper
# ---------------------------------------------------------------------------
def fused_lstm_layer(x_tm, wih_t, bias, whh_t, fc_w=None, fc_b=None, *, BB, TC):
    """x_tm: (T_pad, B_pad, D_in) time-major.  Returns time-major output."""
    T_pad, B_pad, d_in = x_tm.shape
    H, G = whh_t.shape
    grid = (B_pad // BB, T_pad // TC)
    unroll = _choose_unroll(BB, TC)

    x_spec = pl.BlockSpec((TC, BB, d_in), lambda b, c: (c, b, 0))
    w_specs = [pl.BlockSpec((d_in, G), lambda b, c: (0, 0)),
               pl.BlockSpec((1, G), lambda b, c: (0, 0)),
               pl.BlockSpec((H, G), lambda b, c: (0, 0))]
    scratch = [pltpu.VMEM((TC, BB, G), jnp.float32),    # gates for this chunk
               pltpu.VMEM((BB, H), jnp.float32),        # h (persistent over time)
               pltpu.VMEM((BB, H), jnp.float32)]        # c (persistent over time)

    if fc_w is None:
        kernel = functools.partial(lstm_layer_kernel, unroll=unroll)
        out_shape = jax.ShapeDtypeStruct((T_pad, B_pad, H), jnp.float32)
        out_spec = pl.BlockSpec((TC, BB, H), lambda b, c: (c, b, 0))
        in_specs = [x_spec] + w_specs
        operands = (x_tm, wih_t, bias, whh_t)
    else:
        C_pad = fc_w.shape[1]
        kernel = functools.partial(lstm_fc_layer_kernel, unroll=unroll)
        out_shape = jax.ShapeDtypeStruct((T_pad, B_pad, C_pad), jnp.float32)
        out_spec = pl.BlockSpec((TC, BB, C_pad), lambda b, c: (c, b, 0))
        in_specs = [x_spec] + w_specs + [
            pl.BlockSpec((H, C_pad), lambda b, c: (0, 0)),
            pl.BlockSpec((1, C_pad), lambda b, c: (0, 0))]
        operands = (x_tm, wih_t, bias, whh_t, fc_w, fc_b)
        scratch.append(pltpu.VMEM((TC, BB, H), jnp.float32))   # hidden seq buffer

    return pl.pallas_call(
        kernel,
        out_shape=out_shape,
        grid=grid,
        in_specs=in_specs,
        out_specs=out_spec,
        scratch_shapes=scratch,
        compiler_params=pltpu.CompilerParams(
            dimension_semantics=("parallel", "arbitrary"),   # batch x time(sequential)
            vmem_limit_bytes=VMEM_LIMIT),
    )(*operands)


def prepare_params(params):
    """One-time (outside jit): transpose weights, fuse biases, reorder gate
    columns to [i, f, o, g], lane-pad the FC head."""
    H = HIDDEN
    perm = jnp.array(list(range(0, H))            # i
                     + list(range(H, 2 * H))      # f
                     + list(range(3 * H, 4 * H))  # o
                     + list(range(2 * H, 3 * H))) # g
    prep = {}
    for l in range(NUM_LAYERS):
        prep[f"wih_t_l{l}"] = jnp.transpose(params[f"w_ih_l{l}"])[:, perm]  # (D_in,4H)
        prep[f"whh_t_l{l}"] = jnp.transpose(params[f"w_hh_l{l}"])[:, perm]  # (H,4H)
        prep[f"b_l{l}"] = (params[f"b_ih_l{l}"]
                           + params[f"b_hh_l{l}"])[perm].reshape(1, 4 * H)
    fc_w_t = jnp.transpose(params["fc_w"])                                  # (H, C)
    C = fc_w_t.shape[1]
    C_pad = _round_up(C, LANE)                                              # lane-dense
    prep["fc_w_pad"] = jnp.pad(fc_w_t, ((0, 0), (0, C_pad - C)))
    prep["fc_b_pad"] = jnp.pad(params["fc_b"], (0, C_pad - C)).reshape(1, C_pad)
    return prep


@jax.jit
def lstm_model_forward(embedding, prep):
    """embedding: (B, T, 768) batch_first, like the PyTorch module."""
    B, T, _ = embedding.shape
    BB, B_pad = _choose_batch_tile(B)
    TC = _choose_time_chunk(T, BB)
    T_pad = _round_up(T, TC)

    # One bulk transpose to time-major, pad batch/time once.
    # TODO(synk): cast x / W_ih to bf16 (f32 accumulation) for ~2x projection
    # throughput once a ~1e-2 tolerance is acceptable.
    x = jnp.transpose(embedding.astype(jnp.float32), (1, 0, 2))   # (T, B, D)
    x = jnp.pad(x, ((0, T_pad - T), (0, B_pad - B), (0, 0)))

    h = x
    for l in range(NUM_LAYERS):
        is_last = l == NUM_LAYERS - 1
        h = fused_lstm_layer(
            h, prep[f"wih_t_l{l}"], prep[f"b_l{l}"], prep[f"whh_t_l{l}"],
            prep["fc_w_pad"] if is_last else None,
            prep["fc_b_pad"] if is_last else None,
            BB=BB, TC=TC)
        # nn.LSTM dropout=0.2 between layers is training-only; eval = identity.

    out = h[:T, :B, :NUM_CLASSES]                 # strip time/batch/lane padding
    return jnp.transpose(out, (1, 0, 2))          # back to (B, T, C)


# ---------------------------------------------------------------------------
# Deterministic parameter init (PyTorch-style U(-1/sqrt(H), 1/sqrt(H)))
# ---------------------------------------------------------------------------
def init_params(key):
    params = {}
    k = 1.0 / jnp.sqrt(HIDDEN)
    for l in range(NUM_LAYERS):
        d_in = INPUT_SIZE if l == 0 else HIDDEN
        key, k1, k2, k3, k4 = jax.random.split(key, 5)
        params[f"w_ih_l{l}"] = jax.random.uniform(k1, (4 * HIDDEN, d_in),
                                                  jnp.float32, -k, k)
        params[f"w_hh_l{l}"] = jax.random.uniform(k2, (4 * HIDDEN, HIDDEN),
                                                  jnp.float32, -k, k)
        params[f"b_ih_l{l}"] = jax.random.uniform(k3, (4 * HIDDEN,),
                                                  jnp.float32, -k, k)
        params[f"b_hh_l{l}"] = jax.random.uniform(k4, (4 * HIDDEN,),
                                                  jnp.float32, -k, k)
    key, k5, k6 = jax.random.split(key, 3)
    kf = 1.0 / jnp.sqrt(HIDDEN)
    params["fc_w"] = jax.random.uniform(k5, (NUM_CLASSES, HIDDEN),
                                        jnp.float32, -kf, kf)
    params["fc_b"] = jax.random.uniform(k6, (NUM_CLASSES,),
                                        jnp.float32, -kf, kf)
    return params


# ---------------------------------------------------------------------------
# Pure-JAX reference (quiet correctness check)
# ---------------------------------------------------------------------------
def reference_forward(embedding, params):
    x = embedding.astype(jnp.float32)
    B, T, _ = x.shape
    for l in range(NUM_LAYERS):
        w_ih, w_hh = params[f"w_ih_l{l}"], params[f"w_hh_l{l}"]
        b = params[f"b_ih_l{l}"] + params[f"b_hh_l{l}"]
        h = jnp.zeros((B, HIDDEN), jnp.float32)
        c = jnp.zeros((B, HIDDEN), jnp.float32)
        outs = []
        for t in range(T):
            gates = x[:, t, :] @ w_ih.T + h @ w_hh.T + b
            i_g = jax.nn.sigmoid(gates[:, 0 * HIDDEN:1 * HIDDEN])
            f_g = jax.nn.sigmoid(gates[:, 1 * HIDDEN:2 * HIDDEN])
            g_g = jnp.tanh(gates[:, 2 * HIDDEN:3 * HIDDEN])
            o_g = jax.nn.sigmoid(gates[:, 3 * HIDDEN:4 * HIDDEN])
            c = f_g * c + i_g * g_g
            h = o_g * jnp.tanh(c)
            outs.append(h)
        x = jnp.stack(outs, axis=1)
    return x @ params["fc_w"].T + params["fc_b"]


# ---------------------------------------------------------------------------
if __name__ == "__main__":
    key = jax.random.PRNGKey(0)
    pkey, xkey = jax.random.split(key)
    params = init_params(pkey)
    prep = prepare_params(params)          # one-time, outside the jitted forward

    B, T = 2, 8
    embedding = jax.random.normal(xkey, (B, T, INPUT_SIZE), jnp.float32)

    out = lstm_model_forward(embedding, prep)
    out = jax.block_until_ready(out)

    ref = reference_forward(embedding, params)
    assert out.shape == (B, T, NUM_CLASSES), out.shape
    assert jnp.allclose(out, ref, atol=1e-4, rtol=1e-4), \
        float(jnp.max(jnp.abs(out - ref)))

    print("KERNEL_OK")
</pallas_src>

<mosaic_0001>
module attributes {stable_mosaic.version = 11 : i64} {
  func.func @lstm_layer_kernel(%arg0: i32, %arg1: i32, %arg2: memref<8x8x768xf32, #tpu.memory_space<vmem>>, %arg3: memref<768x512xf32, #tpu.memory_space<vmem>>, %arg4: memref<1x512xf32, #tpu.memory_space<vmem>>, %arg5: memref<128x512xf32, #tpu.memory_space<vmem>>, %arg6: memref<8x8x128xf32, #tpu.memory_space<vmem>>, %arg7: memref<8x8x512xf32, #tpu.memory_space<vmem>>, %arg8: memref<8x128xf32, #tpu.memory_space<vmem>>, %arg9: memref<8x128xf32, #tpu.memory_space<vmem>>) attributes {dimension_semantics = [#tpu.dimension_semantics<parallel>, #tpu.dimension_semantics<arbitrary>], iteration_bounds = array<i64: 1, 1>, scalar_prefetch = 0 : i64, scratch_operands = 3 : i64, tpu.core_type = #tpu.core_type<tc>, window_params = [{transform_indices = @transform_0, window_bounds = array<i64: 8, 8, 768>}, {pipeline_mode = #tpu.pipeline_mode<synchronous>, transform_indices = @transform_1, window_bounds = array<i64: 768, 512>}, {pipeline_mode = #tpu.pipeline_mode<synchronous>, transform_indices = @transform_2, window_bounds = array<i64: 1, 512>}, {pipeline_mode = #tpu.pipeline_mode<synchronous>, transform_indices = @transform_3, window_bounds = array<i64: 128, 512>}, {transform_indices = @transform_4, window_bounds = array<i64: 8, 8, 128>}]} {
    %c0_i32 = arith.constant 0 : i32
    %0 = arith.cmpi eq, %arg1, %c0_i32 : i32
    %1 = arith.extui %0 : i1 to i32
    %c0_i32_0 = arith.constant 0 : i32
    %2 = arith.cmpi ne, %1, %c0_i32_0 : i32
    scf.if %2 {
      %cst_125 = arith.constant 0.000000e+00 : f32
      %245 = vector.broadcast %cst_125 : f32 to vector<8x128xf32>
      %c0_126 = arith.constant 0 : index
      %c0_127 = arith.constant 0 : index
      %246 = vector.load %arg8[%c0_126, %c0_127] : memref<8x128xf32, #tpu.memory_space<vmem>>, vector<8x128xf32>
      tpu.vector_store %arg8[%c0_126, %c0_127], %245 {strides = array<i32>} : memref<8x128xf32, #tpu.memory_space<vmem>>, vector<8x128xf32>,
      %cst_128 = arith.constant 0.000000e+00 : f32
      %247 = vector.broadcast %cst_128 : f32 to vector<8x128xf32>
      %c0_129 = arith.constant 0 : index
      %c0_130 = arith.constant 0 : index
      %248 = vector.load %arg9[%c0_129, %c0_130] : memref<8x128xf32, #tpu.memory_space<vmem>>, vector<8x128xf32>
      tpu.vector_store %arg9[%c0_129, %c0_130], %247 {strides = array<i32>} : memref<8x128xf32, #tpu.memory_space<vmem>>, vector<8x128xf32>,
    } else {
    }
    %c0 = arith.constant 0 : index
    %c0_1 = arith.constant 0 : index
    %c0_2 = arith.constant 0 : index
    %3 = vector.load %arg2[%c0, %c0_1, %c0_2] : memref<8x8x768xf32, #tpu.memory_space<vmem>>, vector<8x8x768xf32>
    %4 = vector.shape_cast %3 : vector<8x8x768xf32> to vector<64x768xf32>
    %c0_3 = arith.constant 0 : index
    %c0_4 = arith.constant 0 : index
    %5 = vector.load %arg3[%c0_3, %c0_4] : memref<768x512xf32, #tpu.memory_space<vmem>>, vector<768x512xf32>
    %cst = arith.constant dense<0.000000e+00> : vector<64x512xf32>
    %6 = tpu.matmul %4, %5, %cst {dimension_numbers = #tpu.dot_dimension_numbers<[1], [0], [0], [1], [0, 0, 1, 1], [], []>} : vector<64x768xf32>, vector<768x512xf32>, vector<64x512xf32> -> vector<64x512xf32>
    %c0_5 = arith.constant 0 : index
    %c0_6 = arith.constant 0 : index
    %7 = vector.load %arg4[%c0_5, %c0_6] : memref<1x512xf32, #tpu.memory_space<vmem>>, vector<1x512xf32>
    %8 = vector.broadcast %7 : vector<1x512xf32> to vector<64x512xf32>
    %9 = arith.addf %6, %8 : vector<64x512xf32>
    %10 = vector.shape_cast %9 : vector<64x512xf32> to vector<8x8x512xf32>
    %c0_7 = arith.constant 0 : index
    %c0_8 = arith.constant 0 : index
    %c0_9 = arith.constant 0 : index
    %11 = vector.load %arg7[%c0_7, %c0_8, %c0_9] : memref<8x8x512xf32, #tpu.memory_space<vmem>>, vector<8x8x512xf32>
    tpu.vector_store %arg7[%c0_7, %c0_8, %c0_9], %10 {strides = array<i32>} : memref<8x8x512xf32, #tpu.memory_space<vmem>>, vector<8x8x512xf32>,
    %c0_10 = arith.constant 0 : index
    %c0_11 = arith.constant 0 : index
    %12 = vector.load %arg5[%c0_10, %c0_11] : memref<128x512xf32, #tpu.memory_space<vmem>>, vector<128x512xf32>
    %c0_i32_12 = arith.constant 0 : i32
    %13 = arith.index_cast %c0_i32_12 : i32 to index
    %c0_13 = arith.constant 0 : index
    %c0_14 = arith.constant 0 : index
    %14 = vector.load %arg7[%13, %c0_13, %c0_14] : memref<8x8x512xf32, #tpu.memory_space<vmem>>, vector<1x8x512xf32>
    %15 = vector.shape_cast %14 : vector<1x8x512xf32> to vector<8x512xf32>
    %c0_15 = arith.constant 0 : index
    %c0_16 = arith.constant 0 : index
    %16 = vector.load %arg8[%c0_15, %c0_16] : memref<8x128xf32, #tpu.memory_space<vmem>>, vector<8x128xf32>
    %cst_17 = arith.constant dense<0.000000e+00> : vector<8x512xf32>
    %17 = tpu.matmul %16, %12, %cst_17 {dimension_numbers = #tpu.dot_dimension_numbers<[1], [0], [0], [1], [0, 0, 1, 1], [], []>} : vector<8x128xf32>, vector<128x512xf32>, vector<8x512xf32> -> vector<8x512xf32>
    %18 = arith.addf %15, %17 : vector<8x512xf32>
    %19 = vector.extract_strided_slice %18 {offsets = [0, 0], sizes = [8, 384], strides = [1, 1]} : vector<8x512xf32> to vector<8x384xf32>
    %20 = arith.negf %19 : vector<8x384xf32>
    %21 = math.exp %20 : vector<8x384xf32>
    %cst_18 = arith.constant 1.000000e+00 : f32
    %22 = vector.broadcast %cst_18 : f32 to vector<8x384xf32>
    %23 = arith.addf %22, %21 : vector<8x384xf32>
    %24 = arith.divf %22, %23 : vector<8x384xf32>
    %25 = vector.extract_strided_slice %24 {offsets = [0, 0], sizes = [8, 128], strides = [1, 1]} : vector<8x384xf32> to vector<8x128xf32>
    %26 = vector.extract_strided_slice %24 {offsets = [0, 128], sizes = [8, 128], strides = [1, 1]} : vector<8x384xf32> to vector<8x128xf32>
    %27 = vector.extract_strided_slice %24 {offsets = [0, 256], sizes = [8, 128], strides = [1, 1]} : vector<8x384xf32> to vector<8x128xf32>
    %28 = vector.extract_strided_slice %18 {offsets = [0, 384], sizes = [8, 128], strides = [1, 1]} : vector<8x512xf32> to vector<8x128xf32>
    %29 = math.tanh %28 : vector<8x128xf32>
    %c0_19 = arith.constant 0 : index
    %c0_20 = arith.constant 0 : index
    %30 = vector.load %arg9[%c0_19, %c0_20] : memref<8x128xf32, #tpu.memory_space<vmem>>, vector<8x128xf32>
    %31 = arith.mulf %26, %30 : vector<8x128xf32>
    %32 = arith.mulf %25, %29 : vector<8x128xf32>
    %33 = arith.addf %31, %32 : vector<8x128xf32>
    %34 = math.tanh %33 : vector<8x128xf32>
    %35 = arith.mulf %27, %34 : vector<8x128xf32>
    %c0_21 = arith.constant 0 : index
    %c0_22 = arith.constant 0 : index
    %36 = vector.load %arg9[%c0_21, %c0_22] : memref<8x128xf32, #tpu.memory_space<vmem>>, vector<8x128xf32>
    tpu.vector_store %arg9[%c0_21, %c0_22], %33 {strides = array<i32>} : memref<8x128xf32, #tpu.memory_space<vmem>>, vector<8x128xf32>,
    %c0_23 = arith.constant 0 : index
    %c0_24 = arith.constant 0 : index
    %37 = vector.load %arg8[%c0_23, %c0_24] : memref<8x128xf32, #tpu.memory_space<vmem>>, vector<8x128xf32>
    tpu.vector_store %arg8[%c0_23, %c0_24], %35 {strides = array<i32>} : memref<8x128xf32, #tpu.memory_space<vmem>>, vector<8x128xf32>,
    %38 = arith.index_cast %c0_i32_12 : i32 to index
    %c0_25 = arith.constant 0 : index
    %c0_26 = arith.constant 0 : index
    %39 = vector.load %arg6[%38, %c0_25, %c0_26] : memref<8x8x128xf32, #tpu.memory_space<vmem>>, vector<1x8x128xf32>
    %40 = vector.shape_cast %39 : vector<1x8x128xf32> to vector<8x128xf32>
    %41 = vector.shape_cast %35 : vector<8x128xf32> to vector<1x8x128xf32>
    tpu.vector_store %arg6[%38, %c0_25, %c0_26], %41 {strides = array<i32>} : memref<8x8x128xf32, #tpu.memory_space<vmem>>, vector<1x8x128xf32>,
    %c1_i32 = arith.constant 1 : i32
    %42 = arith.index_cast %c1_i32 : i32 to index
    %c0_27 = arith.constant 0 : index
    %c0_28 = arith.constant 0 : index
    %43 = vector.load %arg7[%42, %c0_27, %c0_28] : memref<8x8x512xf32, #tpu.memory_space<vmem>>, vector<1x8x512xf32>
    %44 = vector.shape_cast %43 : vector<1x8x512xf32> to vector<8x512xf32>
    %c0_29 = arith.constant 0 : index
    %c0_30 = arith.constant 0 : index
    %45 = vector.load %arg8[%c0_29, %c0_30] : memref<8x128xf32, #tpu.memory_space<vmem>>, vector<8x128xf32>
    %cst_31 = arith.constant dense<0.000000e+00> : vector<8x512xf32>
    %46 = tpu.matmul %45, %12, %cst_31 {dimension_numbers = #tpu.dot_dimension_numbers<[1], [0], [0], [1], [0, 0, 1, 1], [], []>} : vector<8x128xf32>, vector<128x512xf32>, vector<8x512xf32> -> vector<8x512xf32>
    %47 = arith.addf %44, %46 : vector<8x512xf32>
    %48 = vector.extract_strided_slice %47 {offsets = [0, 0], sizes = [8, 384], strides = [1, 1]} : vector<8x512xf32> to vector<8x384xf32>
    %49 = arith.negf %48 : vector<8x384xf32>
    %50 = math.exp %49 : vector<8x384xf32>
    %cst_32 = arith.constant 1.000000e+00 : f32
    %51 = vector.broadcast %cst_32 : f32 to vector<8x384xf32>
    %52 = arith.addf %51, %50 : vector<8x384xf32>
    %53 = arith.divf %51, %52 : vector<8x384xf32>
    %54 = vector.extract_strided_slice %53 {offsets = [0, 0], sizes = [8, 128], strides = [1, 1]} : vector<8x384xf32> to vector<8x128xf32>
    %55 = vector.extract_strided_slice %53 {offsets = [0, 128], sizes = [8, 128], strides = [1, 1]} : vector<8x384xf32> to vector<8x128xf32>
    %56 = vector.extract_strided_slice %53 {offsets = [0, 256], sizes = [8, 128], strides = [1, 1]} : vector<8x384xf32> to vector<8x128xf32>
    %57 = vector.extract_strided_slice %47 {offsets = [0, 384], sizes = [8, 128], strides = [1, 1]} : vector<8x512xf32> to vector<8x128xf32>
    %58 = math.tanh %57 : vector<8x128xf32>
    %c0_33 = arith.constant 0 : index
    %c0_34 = arith.constant 0 : index
    %59 = vector.load %arg9[%c0_33, %c0_34] : memref<8x128xf32, #tpu.memory_space<vmem>>, vector<8x128xf32>
    %60 = arith.mulf %55, %59 : vector<8x128xf32>
    %61 = arith.mulf %54, %58 : vector<8x128xf32>
    %62 = arith.addf %60, %61 : vector<8x128xf32>
    %63 = math.tanh %62 : vector<8x128xf32>
    %64 = arith.mulf %56, %63 : vector<8x128xf32>
    %c0_35 = arith.constant 0 : index
    %c0_36 = arith.constant 0 : index
    %65 = vector.load %arg9[%c0_35, %c0_36] : memref<8x128xf32, #tpu.memory_space<vmem>>, vector<8x128xf32>
    tpu.vector_store %arg9[%c0_35, %c0_36], %62 {strides = array<i32>} : memref<8x128xf32, #tpu.memory_space<vmem>>, vector<8x128xf32>,
    %c0_37 = arith.constant 0 : index
    %c0_38 = arith.constant 0 : index
    %66 = vector.load %arg8[%c0_37, %c0_38] : memref<8x128xf32, #tpu.memory_space<vmem>>, vector<8x128xf32>
    tpu.vector_store %arg8[%c0_37, %c0_38], %64 {strides = array<i32>} : memref<8x128xf32, #tpu.memory_space<vmem>>, vector<8x128xf32>,
    %67 = arith.index_cast %c1_i32 : i32 to index
    %c0_39 = arith.constant 0 : index
    %c0_40 = arith.constant 0 : index
    %68 = vector.load %arg6[%67, %c0_39, %c0_40] : memref<8x8x128xf32, #tpu.memory_space<vmem>>, vector<1x8x128xf32>
    %69 = vector.shape_cast %68 : vector<1x8x128xf32> to vector<8x128xf32>
    %70 = vector.shape_cast %64 : vector<8x128xf32> to vector<1x8x128xf32>
    tpu.vector_store %arg6[%67, %c0_39, %c0_40], %70 {strides = array<i32>} : memref<8x8x128xf32, #tpu.memory_space<vmem>>, vector<1x8x128xf32>,
    %c2_i32 = arith.constant 2 : i32
    %71 = arith.index_cast %c2_i32 : i32 to index
    %c0_41 = arith.constant 0 : index
    %c0_42 = arith.constant 0 : index
    %72 = vector.load %arg7[%71, %c0_41, %c0_42] : memref<8x8x512xf32, #tpu.memory_space<vmem>>, vector<1x8x512xf32>
    %73 = vector.shape_cast %72 : vector<1x8x512xf32> to vector<8x512xf32>
    %c0_43 = arith.constant 0 : index
    %c0_44 = arith.constant 0 : index
    %74 = vector.load %arg8[%c0_43, %c0_44] : memref<8x128xf32, #tpu.memory_space<vmem>>, vector<8x128xf32>
    %cst_45 = arith.constant dense<0.000000e+00> : vector<8x512xf32>
    %75 = tpu.matmul %74, %12, %cst_45 {dimension_numbers = #tpu.dot_dimension_numbers<[1], [0], [0], [1], [0, 0, 1, 1], [], []>} : vector<8x128xf32>, vector<128x512xf32>, vector<8x512xf32> -> vector<8x512xf32>
    %76 = arith.addf %73, %75 : vector<8x512xf32>
    %77 = vector.extract_strided_slice %76 {offsets = [0, 0], sizes = [8, 384], strides = [1, 1]} : vector<8x512xf32> to vector<8x384xf32>
    %78 = arith.negf %77 : vector<8x384xf32>
    %79 = math.exp %78 : vector<8x384xf32>
    %cst_46 = arith.constant 1.000000e+00 : f32
    %80 = vector.broadcast %cst_46 : f32 to vector<8x384xf32>
    %81 = arith.addf %80, %79 : vector<8x384xf32>
    %82 = arith.divf %80, %81 : vector<8x384xf32>
    %83 = vector.extract_strided_slice %82 {offsets = [0, 0], sizes = [8, 128], strides = [1, 1]} : vector<8x384xf32> to vector<8x128xf32>
    %84 = vector.extract_strided_slice %82 {offsets = [0, 128], sizes = [8, 128], strides = [1, 1]} : vector<8x384xf32> to vector<8x128xf32>
    %85 = vector.extract_strided_slice %82 {offsets = [0, 256], sizes = [8, 128], strides = [1, 1]} : vector<8x384xf32> to vector<8x128xf32>
    %86 = vector.extract_strided_slice %76 {offsets = [0, 384], sizes = [8, 128], strides = [1, 1]} : vector<8x512xf32> to vector<8x128xf32>
    %87 = math.tanh %86 : vector<8x128xf32>
    %c0_47 = arith.constant 0 : index
    %c0_48 = arith.constant 0 : index
    %88 = vector.load %arg9[%c0_47, %c0_48] : memref<8x128xf32, #tpu.memory_space<vmem>>, vector<8x128xf32>
    %89 = arith.mulf %84, %88 : vector<8x128xf32>
    %90 = arith.mulf %83, %87 : vector<8x128xf32>
    %91 = arith.addf %89, %90 : vector<8x128xf32>
    %92 = math.tanh %91 : vector<8x128xf32>
    %93 = arith.mulf %85, %92 : vector<8x128xf32>
    %c0_49 = arith.constant 0 : index
    %c0_50 = arith.constant 0 : index
    %94 = vector.load %arg9[%c0_49, %c0_50] : memref<8x128xf32, #tpu.memory_space<vmem>>, vector<8x128xf32>
    tpu.vector_store %arg9[%c0_49, %c0_50], %91 {strides = array<i32>} : memref<8x128xf32, #tpu.memory_space<vmem>>, vector<8x128xf32>,
    %c0_51 = arith.constant 0 : index
    %c0_52 = arith.constant 0 : index
    %95 = vector.load %arg8[%c0_51, %c0_52] : memref<8x128xf32, #tpu.memory_space<vmem>>, vector<8x128xf32>
    tpu.vector_store %arg8[%c0_51, %c0_52], %93 {strides = array<i32>} : memref<8x128xf32, #tpu.memory_space<vmem>>, vector<8x128xf32>,
    %96 = arith.index_cast %c2_i32 : i32 to index
    %c0_53 = arith.constant 0 : index
    %c0_54 = arith.constant 0 : index
    %97 = vector.load %arg6[%96, %c0_53, %c0_54] : memref<8x8x128xf32, #tpu.memory_space<vmem>>, vector<1x8x128xf32>
    %98 = vector.shape_cast %97 : vector<1x8x128xf32> to vector<8x128xf32>
    %99 = vector.shape_cast %93 : vector<8x128xf32> to vector<1x8x128xf32>
    tpu.vector_store %arg6[%96, %c0_53, %c0_54], %99 {strides = array<i32>} : memref<8x8x128xf32, #tpu.memory_space<vmem>>, vector<1x8x128xf32>,
    %c3_i32 = arith.constant 3 : i32
    %100 = arith.index_cast %c3_i32 : i32 to index
    %c0_55 = arith.constant 0 : index
    %c0_56 = arith.constant 0 : index
    %101 = vector.load %arg7[%100, %c0_55, %c0_56] : memref<8x8x512xf32, #tpu.memory_space<vmem>>, vector<1x8x512xf32>
    %102 = vector.shape_cast %101 : vector<1x8x512xf32> to vector<8x512xf32>
    %c0_57 = arith.constant 0 : index
    %c0_58 = arith.constant 0 : index
    %103 = vector.load %arg8[%c0_57, %c0_58] : memref<8x128xf32, #tpu.memory_space<vmem>>, vector<8x128xf32>
    %cst_59 = arith.constant dense<0.000000e+00> : vector<8x512xf32>
    %104 = tpu.matmul %103, %12, %cst_59 {dimension_numbers = #tpu.dot_dimension_numbers<[1], [0], [0], [1], [0, 0, 1, 1], [], []>} : vector<8x128xf32>, vector<128x512xf32>, vector<8x512xf32> -> vector<8x512xf32>
    %105 = arith.addf %102, %104 : vector<8x512xf32>
    %106 = vector.extract_strided_slice %105 {offsets = [0, 0], sizes = [8, 384], strides = [1, 1]} : vector<8x512xf32> to vector<8x384xf32>
    %107 = arith.negf %106 : vector<8x384xf32>
    %108 = math.exp %107 : vector<8x384xf32>
    %cst_60 = arith.constant 1.000000e+00 : f32
    %109 = vector.broadcast %cst_60 : f32 to vector<8x384xf32>
    %110 = arith.addf %109, %108 : vector<8x384xf32>
    %111 = arith.divf %109, %110 : vector<8x384xf32>
    %112 = vector.extract_strided_slice %111 {offsets = [0, 0], sizes = [8, 128], strides = [1, 1]} : vector<8x384xf32> to vector<8x128xf32>
    %113 = vector.extract_strided_slice %111 {offsets = [0, 128], sizes = [8, 128], strides = [1, 1]} : vector<8x384xf32> to vector<8x128xf32>
    %114 = vector.extract_strided_slice %111 {offsets = [0, 256], sizes = [8, 128], strides = [1, 1]} : vector<8x384xf32> to vector<8x128xf32>
    %115 = vector.extract_strided_slice %105 {offsets = [0, 384], sizes = [8, 128], strides = [1, 1]} : vector<8x512xf32> to vector<8x128xf32>
    %116 = math.tanh %115 : vector<8x128xf32>
    %c0_61 = arith.constant 0 : index
    %c0_62 = arith.constant 0 : index
    %117 = vector.load %arg9[%c0_61, %c0_62] : memref<8x128xf32, #tpu.memory_space<vmem>>, vector<8x128xf32>
    %118 = arith.mulf %113, %117 : vector<8x128xf32>
    %119 = arith.mulf %112, %116 : vector<8x128xf32>
    %120 = arith.addf %118, %119 : vector<8x128xf32>
    %121 = math.tanh %120 : vector<8x128xf32>
    %122 = arith.mulf %114, %121 : vector<8x128xf32>
    %c0_63 = arith.constant 0 : index
    %c0_64 = arith.constant 0 : index
    %123 = vector.load %arg9[%c0_63, %c0_64] : memref<8x128xf32, #tpu.memory_space<vmem>>, vector<8x128xf32>
    tpu.vector_store %arg9[%c0_63, %c0_64], %120 {strides = array<i32>} : memref<8x128xf32, #tpu.memory_space<vmem>>, vector<8x128xf32>,
    %c0_65 = arith.constant 0 : index
    %c0_66 = arith.constant 0 : index
    %124 = vector.load %arg8[%c0_65, %c0_66] : memref<8x128xf32, #tpu.memory_space<vmem>>, vector<8x128xf32>
    tpu.vector_store %arg8[%c0_65, %c0_66], %122 {strides = array<i32>} : memref<8x128xf32, #tpu.memory_space<vmem>>, vector<8x128xf32>,
    %125 = arith.index_cast %c3_i32 : i32 to index
    %c0_67 = arith.constant 0 : index
    %c0_68 = arith.constant 0 : index
    %126 = vector.load %arg6[%125, %c0_67, %c0_68] : memref<8x8x128xf32, #tpu.memory_space<vmem>>, vector<1x8x128xf32>
    %127 = vector.shape_cast %126 : vector<1x8x128xf32> to vector<8x128xf32>
    %128 = vector.shape_cast %122 : vector<8x128xf32> to vector<1x8x128xf32>
    tpu.vector_store %arg6[%125, %c0_67, %c0_68], %128 {strides = array<i32>} : memref<8x8x128xf32, #tpu.memory_space<vmem>>, vector<1x8x128xf32>,
    %c4_i32 = arith.constant 4 : i32
    %129 = arith.index_cast %c4_i32 : i32 to index
    %c0_69 = arith.constant 0 : index
    %c0_70 = arith.constant 0 : index
    %130 = vector.load %arg7[%129, %c0_69, %c0_70] : memref<8x8x512xf32, #tpu.memory_space<vmem>>, vector<1x8x512xf32>
    %131 = vector.shape_cast %130 : vector<1x8x512xf32> to vector<8x512xf32>
    %c0_71 = arith.constant 0 : index
    %c0_72 = arith.constant 0 : index
    %132 = vector.load %arg8[%c0_71, %c0_72] : memref<8x128xf32, #tpu.memory_space<vmem>>, vector<8x128xf32>
    %cst_73 = arith.constant dense<0.000000e+00> : vector<8x512xf32>
    %133 = tpu.matmul %132, %12, %cst_73 {dimension_numbers = #tpu.dot_dimension_numbers<[1], [0], [0], [1], [0, 0, 1, 1], [], []>} : vector<8x128xf32>, vector<128x512xf32>, vector<8x512xf32> -> vector<8x512xf32>
    %134 = arith.addf %131, %133 : vector<8x512xf32>
    %135 = vector.extract_strided_slice %134 {offsets = [0, 0], sizes = [8, 384], strides = [1, 1]} : vector<8x512xf32> to vector<8x384xf32>
    %136 = arith.negf %135 : vector<8x384xf32>
    %137 = math.exp %136 : vector<8x384xf32>
    %cst_74 = arith.constant 1.000000e+00 : f32
    %138 = vector.broadcast %cst_74 : f32 to vector<8x384xf32>
    %139 = arith.addf %138, %137 : vector<8x384xf32>
    %140 = arith.divf %138, %139 : vector<8x384xf32>
    %141 = vector.extract_strided_slice %140 {offsets = [0, 0], sizes = [8, 128], strides = [1, 1]} : vector<8x384xf32> to vector<8x128xf32>
    %142 = vector.extract_strided_slice %140 {offsets = [0, 128], sizes = [8, 128], strides = [1, 1]} : vector<8x384xf32> to vector<8x128xf32>
    %143 = vector.extract_strided_slice %140 {offsets = [0, 256], sizes = [8, 128], strides = [1, 1]} : vector<8x384xf32> to vector<8x128xf32>
    %144 = vector.extract_strided_slice %134 {offsets = [0, 384], sizes = [8, 128], strides = [1, 1]} : vector<8x512xf32> to vector<8x128xf32>
    %145 = math.tanh %144 : vector<8x128xf32>
    %c0_75 = arith.constant 0 : index
    %c0_76 = arith.constant 0 : index
    %146 = vector.load %arg9[%c0_75, %c0_76] : memref<8x128xf32, #tpu.memory_space<vmem>>, vector<8x128xf32>
    %147 = arith.mulf %142, %146 : vector<8x128xf32>
    %148 = arith.mulf %141, %145 : vector<8x128xf32>
    %149 = arith.addf %147, %148 : vector<8x128xf32>
    %150 = math.tanh %149 : vector<8x128xf32>
    %151 = arith.mulf %143, %150 : vector<8x128xf32>
    %c0_77 = arith.constant 0 : index
    %c0_78 = arith.constant 0 : index
    %152 = vector.load %arg9[%c0_77, %c0_78] : memref<8x128xf32, #tpu.memory_space<vmem>>, vector<8x128xf32>
    tpu.vector_store %arg9[%c0_77, %c0_78], %149 {strides = array<i32>} : memref<8x128xf32, #tpu.memory_space<vmem>>, vector<8x128xf32>,
    %c0_79 = arith.constant 0 : index
    %c0_80 = arith.constant 0 : index
    %153 = vector.load %arg8[%c0_79, %c0_80] : memref<8x128xf32, #tpu.memory_space<vmem>>, vector<8x128xf32>
    tpu.vector_store %arg8[%c0_79, %c0_80], %151 {strides = array<i32>} : memref<8x128xf32, #tpu.memory_space<vmem>>, vector<8x128xf32>,
    %154 = arith.index_cast %c4_i32 : i32 to index
    %c0_81 = arith.constant 0 : index
    %c0_82 = arith.constant 0 : index
    %155 = vector.load %arg6[%154, %c0_81, %c0_82] : memref<8x8x128xf32, #tpu.memory_space<vmem>>, vector<1x8x128xf32>
    %156 = vector.shape_cast %155 : vector<1x8x128xf32> to vector<8x128xf32>
    %157 = vector.shape_cast %151 : vector<8x128xf32> to vector<1x8x128xf32>
    tpu.vector_store %arg6[%154, %c0_81, %c0_82], %157 {strides = array<i32>} : memref<8x8x128xf32, #tpu.memory_space<vmem>>, vector<1x8x128xf32>,
    %c5_i32 = arith.constant 5 : i32
    %158 = arith.index_cast %c5_i32 : i32 to index
    %c0_83 = arith.constant 0 : index
    %c0_84 = arith.constant 0 : index
    %159 = vector.load %arg7[%158, %c0_83, %c0_84] : memref<8x8x512xf32, #tpu.memory_space<vmem>>, vector<1x8x512xf32>
    %160 = vector.shape_cast %159 : vector<1x8x512xf32> to vector<8x512xf32>
    %c0_85 = arith.constant 0 : index
    %c0_86 = arith.constant 0 : index
    %161 = vector.load %arg8[%c0_85, %c0_86] : memref<8x128xf32, #tpu.memory_space<vmem>>, vector<8x128xf32>
    %cst_87 = arith.constant dense<0.000000e+00> : vector<8x512xf32>
    %162 = tpu.matmul %161, %12, %cst_87 {dimension_numbers = #tpu.dot_dimension_numbers<[1], [0], [0], [1], [0, 0, 1, 1], [], []>} : vector<8x128xf32>, vector<128x512xf32>, vector<8x512xf32> -> vector<8x512xf32>
    %163 = arith.addf %160, %162 : vector<8x512xf32>
    %164 = vector.extract_strided_slice %163 {offsets = [0, 0], sizes = [8, 384], strides = [1, 1]} : vector<8x512xf32> to vector<8x384xf32>
    %165 = arith.negf %164 : vector<8x384xf32>
    %166 = math.exp %165 : vector<8x384xf32>
    %cst_88 = arith.constant 1.000000e+00 : f32
    %167 = vector.broadcast %cst_88 : f32 to vector<8x384xf32>
    %168 = arith.addf %167, %166 : vector<8x384xf32>
    %169 = arith.divf %167, %168 : vector<8x384xf32>
    %170 = vector.extract_strided_slice %169 {offsets = [0, 0], sizes = [8, 128], strides = [1, 1]} : vector<8x384xf32> to vector<8x128xf32>
    %171 = vector.extract_strided_slice %169 {offsets = [0, 128], sizes = [8, 128], strides = [1, 1]} : vector<8x384xf32> to vector<8x128xf32>
    %172 = vector.extract_strided_slice %169 {offsets = [0, 256], sizes = [8, 128], strides = [1, 1]} : vector<8x384xf32> to vector<8x128xf32>
    %173 = vector.extract_strided_slice %163 {offsets = [0, 384], sizes = [8, 128], strides = [1, 1]} : vector<8x512xf32> to vector<8x128xf32>
    %174 = math.tanh %173 : vector<8x128xf32>
    %c0_89 = arith.constant 0 : index
    %c0_90 = arith.constant 0 : index
    %175 = vector.load %arg9[%c0_89, %c0_90] : memref<8x128xf32, #tpu.memory_space<vmem>>, vector<8x128xf32>
    %176 = arith.mulf %171, %175 : vector<8x128xf32>
    %177 = arith.mulf %170, %174 : vector<8x128xf32>
    %178 = arith.addf %176, %177 : vector<8x128xf32>
    %179 = math.tanh %178 : vector<8x128xf32>
    %180 = arith.mulf %172, %179 : vector<8x128xf32>
    %c0_91 = arith.constant 0 : index
    %c0_92 = arith.constant 0 : index
    %181 = vector.load %arg9[%c0_91, %c0_92] : memref<8x128xf32, #tpu.memory_space<vmem>>, vector<8x128xf32>
    tpu.vector_store %arg9[%c0_91, %c0_92], %178 {strides = array<i32>} : memref<8x128xf32, #tpu.memory_space<vmem>>, vector<8x128xf32>,
    %c0_93 = arith.constant 0 : index
    %c0_94 = arith.constant 0 : index
    %182 = vector.load %arg8[%c0_93, %c0_94] : memref<8x128xf32, #tpu.memory_space<vmem>>, vector<8x128xf32>
    tpu.vector_store %arg8[%c0_93, %c0_94], %180 {strides = array<i32>} : memref<8x128xf32, #tpu.memory_space<vmem>>, vector<8x128xf32>,
    %183 = arith.index_cast %c5_i32 : i32 to index
    %c0_95 = arith.constant 0 : index
    %c0_96 = arith.constant 0 : index
    %184 = vector.load %arg6[%183, %c0_95, %c0_96] : memref<8x8x128xf32, #tpu.memory_space<vmem>>, vector<1x8x128xf32>
    %185 = vector.shape_cast %184 : vector<1x8x128xf32> to vector<8x128xf32>
    %186 = vector.shape_cast %180 : vector<8x128xf32> to vector<1x8x128xf32>
    tpu.vector_store %arg6[%183, %c0_95, %c0_96], %186 {strides = array<i32>} : memref<8x8x128xf32, #tpu.memory_space<vmem>>, vector<1x8x128xf32>,
    %c6_i32 = arith.constant 6 : i32
    %187 = arith.index_cast %c6_i32 : i32 to index
    %c0_97 = arith.constant 0 : index
    %c0_98 = arith.constant 0 : index
    %188 = vector.load %arg7[%187, %c0_97, %c0_98] : memref<8x8x512xf32, #tpu.memory_space<vmem>>, vector<1x8x512xf32>
    %189 = vector.shape_cast %188 : vector<1x8x512xf32> to vector<8x512xf32>
    %c0_99 = arith.constant 0 : index
    %c0_100 = arith.constant 0 : index
    %190 = vector.load %arg8[%c0_99, %c0_100] : memref<8x128xf32, #tpu.memory_space<vmem>>, vector<8x128xf32>
    %cst_101 = arith.constant dense<0.000000e+00> : vector<8x512xf32>
    %191 = tpu.matmul %190, %12, %cst_101 {dimension_numbers = #tpu.dot_dimension_numbers<[1], [0], [0], [1], [0, 0, 1, 1], [], []>} : vector<8x128xf32>, vector<128x512xf32>, vector<8x512xf32> -> vector<8x512xf32>
    %192 = arith.addf %189, %191 : vector<8x512xf32>
    %193 = vector.extract_strided_slice %192 {offsets = [0, 0], sizes = [8, 384], strides = [1, 1]} : vector<8x512xf32> to vector<8x384xf32>
    %194 = arith.negf %193 : vector<8x384xf32>
    %195 = math.exp %194 : vector<8x384xf32>
    %cst_102 = arith.constant 1.000000e+00 : f32
    %196 = vector.broadcast %cst_102 : f32 to vector<8x384xf32>
    %197 = arith.addf %196, %195 : vector<8x384xf32>
    %198 = arith.divf %196, %197 : vector<8x384xf32>
    %199 = vector.extract_strided_slice %198 {offsets = [0, 0], sizes = [8, 128], strides = [1, 1]} : vector<8x384xf32> to vector<8x128xf32>
    %200 = vector.extract_strided_slice %198 {offsets = [0, 128], sizes = [8, 128], strides = [1, 1]} : vector<8x384xf32> to vector<8x128xf32>
    %201 = vector.extract_strided_slice %198 {offsets = [0, 256], sizes = [8, 128], strides = [1, 1]} : vector<8x384xf32> to vector<8x128xf32>
    %202 = vector.extract_strided_slice %192 {offsets = [0, 384], sizes = [8, 128], strides = [1, 1]} : vector<8x512xf32> to vector<8x128xf32>
    %203 = math.tanh %202 : vector<8x128xf32>
    %c0_103 = arith.constant 0 : index
    %c0_104 = arith.constant 0 : index
    %204 = vector.load %arg9[%c0_103, %c0_104] : memref<8x128xf32, #tpu.memory_space<vmem>>, vector<8x128xf32>
    %205 = arith.mulf %200, %204 : vector<8x128xf32>
    %206 = arith.mulf %199, %203 : vector<8x128xf32>
    %207 = arith.addf %205, %206 : vector<8x128xf32>
    %208 = math.tanh %207 : vector<8x128xf32>
    %209 = arith.mulf %201, %208 : vector<8x128xf32>
    %c0_105 = arith.constant 0 : index
    %c0_106 = arith.constant 0 : index
    %210 = vector.load %arg9[%c0_105, %c0_106] : memref<8x128xf32, #tpu.memory_space<vmem>>, vector<8x128xf32>
    tpu.vector_store %arg9[%c0_105, %c0_106], %207 {strides = array<i32>} : memref<8x128xf32, #tpu.memory_space<vmem>>, vector<8x128xf32>,
    %c0_107 = arith.constant 0 : index
    %c0_108 = arith.constant 0 : index
    %211 = vector.load %arg8[%c0_107, %c0_108] : memref<8x128xf32, #tpu.memory_space<vmem>>, vector<8x128xf32>
    tpu.vector_store %arg8[%c0_107, %c0_108], %209 {strides = array<i32>} : memref<8x128xf32, #tpu.memory_space<vmem>>, vector<8x128xf32>,
    %212 = arith.index_cast %c6_i32 : i32 to index
    %c0_109 = arith.constant 0 : index
    %c0_110 = arith.constant 0 : index
    %213 = vector.load %arg6[%212, %c0_109, %c0_110] : memref<8x8x128xf32, #tpu.memory_space<vmem>>, vector<1x8x128xf32>
    %214 = vector.shape_cast %213 : vector<1x8x128xf32> to vector<8x128xf32>
    %215 = vector.shape_cast %209 : vector<8x128xf32> to vector<1x8x128xf32>
    tpu.vector_store %arg6[%212, %c0_109, %c0_110], %215 {strides = array<i32>} : memref<8x8x128xf32, #tpu.memory_space<vmem>>, vector<1x8x128xf32>,
    %c7_i32 = arith.constant 7 : i32
    %216 = arith.index_cast %c7_i32 : i32 to index
    %c0_111 = arith.constant 0 : index
    %c0_112 = arith.constant 0 : index
    %217 = vector.load %arg7[%216, %c0_111, %c0_112] : memref<8x8x512xf32, #tpu.memory_space<vmem>>, vector<1x8x512xf32>
    %218 = vector.shape_cast %217 : vector<1x8x512xf32> to vector<8x512xf32>
    %c0_113 = arith.constant 0 : index
    %c0_114 = arith.constant 0 : index
    %219 = vector.load %arg8[%c0_113, %c0_114] : memref<8x128xf32, #tpu.memory_space<vmem>>, vector<8x128xf32>
    %cst_115 = arith.constant dense<0.000000e+00> : vector<8x512xf32>
    %220 = tpu.matmul %219, %12, %cst_115 {dimension_numbers = #tpu.dot_dimension_numbers<[1], [0], [0], [1], [0, 0, 1, 1], [], []>} : vector<8x128xf32>, vector<128x512xf32>, vector<8x512xf32> -> vector<8x512xf32>
    %221 = arith.addf %218, %220 : vector<8x512xf32>
    %222 = vector.extract_strided_slice %221 {offsets = [0, 0], sizes = [8, 384], strides = [1, 1]} : vector<8x512xf32> to vector<8x384xf32>
    %223 = arith.negf %222 : vector<8x384xf32>
    %224 = math.exp %223 : vector<8x384xf32>
    %cst_116 = arith.constant 1.000000e+00 : f32
    %225 = vector.broadcast %cst_116 : f32 to vector<8x384xf32>
    %226 = arith.addf %225, %224 : vector<8x384xf32>
    %227 = arith.divf %225, %226 : vector<8x384xf32>
    %228 = vector.extract_strided_slice %227 {offsets = [0, 0], sizes = [8, 128], strides = [1, 1]} : vector<8x384xf32> to vector<8x128xf32>
    %229 = vector.extract_strided_slice %227 {offsets = [0, 128], sizes = [8, 128], strides = [1, 1]} : vector<8x384xf32> to vector<8x128xf32>
    %230 = vector.extract_strided_slice %227 {offsets = [0, 256], sizes = [8, 128], strides = [1, 1]} : vector<8x384xf32> to vector<8x128xf32>
    %231 = vector.extract_strided_slice %221 {offsets = [0, 384], sizes = [8, 128], strides = [1, 1]} : vector<8x512xf32> to vector<8x128xf32>
    %232 = math.tanh %231 : vector<8x128xf32>
    %c0_117 = arith.constant 0 : index
    %c0_118 = arith.constant 0 : index
    %233 = vector.load %arg9[%c0_117, %c0_118] : memref<8x128xf32, #tpu.memory_space<vmem>>, vector<8x128xf32>
    %234 = arith.mulf %229, %233 : vector<8x128xf32>
    %235 = arith.mulf %228, %232 : vector<8x128xf32>
    %236 = arith.addf %234, %235 : vector<8x128xf32>
    %237 = math.tanh %236 : vector<8x128xf32>
    %238 = arith.mulf %230, %237 : vector<8x128xf32>
    %c0_119 = arith.constant 0 : index
    %c0_120 = arith.constant 0 : index
    %239 = vector.load %arg9[%c0_119, %c0_120] : memref<8x128xf32, #tpu.memory_space<vmem>>, vector<8x128xf32>
    tpu.vector_store %arg9[%c0_119, %c0_120], %236 {strides = array<i32>} : memref<8x128xf32, #tpu.memory_space<vmem>>, vector<8x128xf32>,
    %c0_121 = arith.constant 0 : index
    %c0_122 = arith.constant 0 : index
    %240 = vector.load %arg8[%c0_121, %c0_122] : memref<8x128xf32, #tpu.memory_space<vmem>>, vector<8x128xf32>
    tpu.vector_store %arg8[%c0_121, %c0_122], %238 {strides = array<i32>} : memref<8x128xf32, #tpu.memory_space<vmem>>, vector<8x128xf32>,
    %241 = arith.index_cast %c7_i32 : i32 to index
    %c0_123 = arith.constant 0 : index
    %c0_124 = arith.constant 0 : index
    %242 = vector.load %arg6[%241, %c0_123, %c0_124] : memref<8x8x128xf32, #tpu.memory_space<vmem>>, vector<1x8x128xf32>
    %243 = vector.shape_cast %242 : vector<1x8x128xf32> to vector<8x128xf32>
    %244 = vector.shape_cast %238 : vector<8x128xf32> to vector<1x8x128xf32>
    tpu.vector_store %arg6[%241, %c0_123, %c0_124], %244 {strides = array<i32>} : memref<8x8x128xf32, #tpu.memory_space<vmem>>, vector<1x8x128xf32>,
    %c8_i32 = arith.constant 8 : i32
    return
  }
  func.func @transform_0(%arg0: i32, %arg1: i32) -> (i32, i32, i32) {
    %c0_i32 = arith.constant 0 : i32
    %c0_i32_0 = arith.constant 0 : i32
    return %arg1, %arg0, %c0_i32 : i32, i32, i32
  }
  func.func @transform_1(%arg0: i32, %arg1: i32) -> (i32, i32) {
    %c0_i32 = arith.constant 0 : i32
    %c0_i32_0 = arith.constant 0 : i32
    %c0_i32_1 = arith.constant 0 : i32
    return %c0_i32, %c0_i32_0 : i32, i32
  }
  func.func @transform_2(%arg0: i32, %arg1: i32) -> (i32, i32) {
    %c0_i32 = arith.constant 0 : i32
    %c0_i32_0 = arith.constant 0 : i32
    %c0_i32_1 = arith.constant 0 : i32
    return %c0_i32, %c0_i32_0 : i32, i32
  }
  func.func @transform_3(%arg0: i32, %arg1: i32) -> (i32, i32) {
    %c0_i32 = arith.constant 0 : i32
    %c0_i32_0 = arith.constant 0 : i32
    %c0_i32_1 = arith.constant 0 : i32
    return %c0_i32, %c0_i32_0 : i32, i32
  }
  func.func @transform_4(%arg0: i32, %arg1: i32) -> (i32, i32, i32) {
    %c0_i32 = arith.constant 0 : i32
    %c0_i32_0 = arith.constant 0 : i32
    return %arg1, %arg0, %c0_i32 : i32, i32, i32
  }
}

module attributes {stable_mosaic.version = 11 : i64} {
  func.func @lstm_fc_layer_kernel(%arg0: i32, %arg1: i32, %arg2: memref<8x8x128xf32, #tpu.memory_space<vmem>>, %arg3: memref<128x512xf32, #tpu.memory_space<vmem>>, %arg4: memref<1x512xf32, #tpu.memory_space<vmem>>, %arg5: memref<128x512xf32, #tpu.memory_space<vmem>>, %arg6: memref<128x128xf32, #tpu.memory_space<vmem>>, %arg7: memref<1x128xf32, #tpu.memory_space<vmem>>, %arg8: memref<8x8x128xf32, #tpu.memory_space<vmem>>, %arg9: memref<8x8x512xf32, #tpu.memory_space<vmem>>, %arg10: memref<8x128xf32, #tpu.memory_space<vmem>>, %arg11: memref<8x128xf32, #tpu.memory_space<vmem>>, %arg12: memref<8x8x128xf32, #tpu.memory_space<vmem>>) attributes {dimension_semantics = [#tpu.dimension_semantics<parallel>, #tpu.dimension_semantics<arbitrary>], iteration_bounds = array<i64: 1, 1>, scalar_prefetch = 0 : i64, scratch_operands = 4 : i64, tpu.core_type = #tpu.core_type<tc>, window_params = [{transform_indices = @transform_0, window_bounds = array<i64: 8, 8, 128>}, {pipeline_mode = #tpu.pipeline_mode<synchronous>, transform_indices = @transform_1, window_bounds = array<i64: 128, 512>}, {pipeline_mode = #tpu.pipeline_mode<synchronous>, transform_indices = @transform_2, window_bounds = array<i64: 1, 512>}, {pipeline_mode = #tpu.pipeline_mode<synchronous>, transform_indices = @transform_3, window_bounds = array<i64: 128, 512>}, {pipeline_mode = #tpu.pipeline_mode<synchronous>, transform_indices = @transform_4, window_bounds = array<i64: 128, 128>}, {pipeline_mode = #tpu.pipeline_mode<synchronous>, transform_indices = @transform_5, window_bounds = array<i64: 1, 128>}, {transform_indices = @transform_6, window_bounds = array<i64: 8, 8, 128>}]} {
    %c0_i32 = arith.constant 0 : i32
    %0 = arith.cmpi eq, %arg1, %c0_i32 : i32
    %1 = arith.extui %0 : i1 to i32
    %c0_i32_0 = arith.constant 0 : i32
    %2 = arith.cmpi ne, %1, %c0_i32_0 : i32
    scf.if %2 {
      %cst_136 = arith.constant 0.000000e+00 : f32
      %254 = vector.broadcast %cst_136 : f32 to vector<8x128xf32>
      %c0_137 = arith.constant 0 : index
      %c0_138 = arith.constant 0 : index
      %255 = vector.load %arg10[%c0_137, %c0_138] : memref<8x128xf32, #tpu.memory_space<vmem>>, vector<8x128xf32>
      tpu.vector_store %arg10[%c0_137, %c0_138], %254 {strides = array<i32>} : memref<8x128xf32, #tpu.memory_space<vmem>>, vector<8x128xf32>,
      %cst_139 = arith.constant 0.000000e+00 : f32
      %256 = vector.broadcast %cst_139 : f32 to vector<8x128xf32>
      %c0_140 = arith.constant 0 : index
      %c0_141 = arith.constant 0 : index
      %257 = vector.load %arg11[%c0_140, %c0_141] : memref<8x128xf32, #tpu.memory_space<vmem>>, vector<8x128xf32>
      tpu.vector_store %arg11[%c0_140, %c0_141], %256 {strides = array<i32>} : memref<8x128xf32, #tpu.memory_space<vmem>>, vector<8x128xf32>,
    } else {
    }
    %c0 = arith.constant 0 : index
    %c0_1 = arith.constant 0 : index
    %c0_2 = arith.constant 0 : index
    %3 = vector.load %arg2[%c0, %c0_1, %c0_2] : memref<8x8x128xf32, #tpu.memory_space<vmem>>, vector<8x8x128xf32>
    %4 = vector.shape_cast %3 : vector<8x8x128xf32> to vector<64x128xf32>
    %c0_3 = arith.constant 0 : index
    %c0_4 = arith.constant 0 : index
    %5 = vector.load %arg3[%c0_3, %c0_4] : memref<128x512xf32, #tpu.memory_space<vmem>>, vector<128x512xf32>
    %cst = arith.constant dense<0.000000e+00> : vector<64x512xf32>
    %6 = tpu.matmul %4, %5, %cst {dimension_numbers = #tpu.dot_dimension_numbers<[1], [0], [0], [1], [0, 0, 1, 1], [], []>} : vector<64x128xf32>, vector<128x512xf32>, vector<64x512xf32> -> vector<64x512xf32>
    %c0_5 = arith.constant 0 : index
    %c0_6 = arith.constant 0 : index
    %7 = vector.load %arg4[%c0_5, %c0_6] : memref<1x512xf32, #tpu.memory_space<vmem>>, vector<1x512xf32>
    %8 = vector.broadcast %7 : vector<1x512xf32> to vector<64x512xf32>
    %9 = arith.addf %6, %8 : vector<64x512xf32>
    %10 = vector.shape_cast %9 : vector<64x512xf32> to vector<8x8x512xf32>
    %c0_7 = arith.constant 0 : index
    %c0_8 = arith.constant 0 : index
    %c0_9 = arith.constant 0 : index
    %11 = vector.load %arg9[%c0_7, %c0_8, %c0_9] : memref<8x8x512xf32, #tpu.memory_space<vmem>>, vector<8x8x512xf32>
    tpu.vector_store %arg9[%c0_7, %c0_8, %c0_9], %10 {strides = array<i32>} : memref<8x8x512xf32, #tpu.memory_space<vmem>>, vector<8x8x512xf32>,
    %c0_10 = arith.constant 0 : index
    %c0_11 = arith.constant 0 : index
    %12 = vector.load %arg5[%c0_10, %c0_11] : memref<128x512xf32, #tpu.memory_space<vmem>>, vector<128x512xf32>
    %c0_i32_12 = arith.constant 0 : i32
    %13 = arith.index_cast %c0_i32_12 : i32 to index
    %c0_13 = arith.constant 0 : index
    %c0_14 = arith.constant 0 : index
    %14 = vector.load %arg9[%13, %c0_13, %c0_14] : memref<8x8x512xf32, #tpu.memory_space<vmem>>, vector<1x8x512xf32>
    %15 = vector.shape_cast %14 : vector<1x8x512xf32> to vector<8x512xf32>
    %c0_15 = arith.constant 0 : index
    %c0_16 = arith.constant 0 : index
    %16 = vector.load %arg10[%c0_15, %c0_16] : memref<8x128xf32, #tpu.memory_space<vmem>>, vector<8x128xf32>
    %cst_17 = arith.constant dense<0.000000e+00> : vector<8x512xf32>
    %17 = tpu.matmul %16, %12, %cst_17 {dimension_numbers = #tpu.dot_dimension_numbers<[1], [0], [0], [1], [0, 0, 1, 1], [], []>} : vector<8x128xf32>, vector<128x512xf32>, vector<8x512xf32> -> vector<8x512xf32>
    %18 = arith.addf %15, %17 : vector<8x512xf32>
    %19 = vector.extract_strided_slice %18 {offsets = [0, 0], sizes = [8, 384], strides = [1, 1]} : vector<8x512xf32> to vector<8x384xf32>
    %20 = arith.negf %19 : vector<8x384xf32>
    %21 = math.exp %20 : vector<8x384xf32>
    %cst_18 = arith.constant 1.000000e+00 : f32
    %22 = vector.broadcast %cst_18 : f32 to vector<8x384xf32>
    %23 = arith.addf %22, %21 : vector<8x384xf32>
    %24 = arith.divf %22, %23 : vector<8x384xf32>
    %25 = vector.extract_strided_slice %24 {offsets = [0, 0], sizes = [8, 128], strides = [1, 1]} : vector<8x384xf32> to vector<8x128xf32>
    %26 = vector.extract_strided_slice %24 {offsets = [0, 128], sizes = [8, 128], strides = [1, 1]} : vector<8x384xf32> to vector<8x128xf32>
    %27 = vector.extract_strided_slice %24 {offsets = [0, 256], sizes = [8, 128], strides = [1, 1]} : vector<8x384xf32> to vector<8x128xf32>
    %28 = vector.extract_strided_slice %18 {offsets = [0, 384], sizes = [8, 128], strides = [1, 1]} : vector<8x512xf32> to vector<8x128xf32>
    %29 = math.tanh %28 : vector<8x128xf32>
    %c0_19 = arith.constant 0 : index
    %c0_20 = arith.constant 0 : index
    %30 = vector.load %arg11[%c0_19, %c0_20] : memref<8x128xf32, #tpu.memory_space<vmem>>, vector<8x128xf32>
    %31 = arith.mulf %26, %30 : vector<8x128xf32>
    %32 = arith.mulf %25, %29 : vector<8x128xf32>
    %33 = arith.addf %31, %32 : vector<8x128xf32>
    %34 = math.tanh %33 : vector<8x128xf32>
    %35 = arith.mulf %27, %34 : vector<8x128xf32>
    %c0_21 = arith.constant 0 : index
    %c0_22 = arith.constant 0 : index
    %36 = vector.load %arg11[%c0_21, %c0_22] : memref<8x128xf32, #tpu.memory_space<vmem>>, vector<8x128xf32>
    tpu.vector_store %arg11[%c0_21, %c0_22], %33 {strides = array<i32>} : memref<8x128xf32, #tpu.memory_space<vmem>>, vector<8x128xf32>,
    %c0_23 = arith.constant 0 : index
    %c0_24 = arith.constant 0 : index
    %37 = vector.load %arg10[%c0_23, %c0_24] : memref<8x128xf32, #tpu.memory_space<vmem>>, vector<8x128xf32>
    tpu.vector_store %arg10[%c0_23, %c0_24], %35 {strides = array<i32>} : memref<8x128xf32, #tpu.memory_space<vmem>>, vector<8x128xf32>,
    %38 = arith.index_cast %c0_i32_12 : i32 to index
    %c0_25 = arith.constant 0 : index
    %c0_26 = arith.constant 0 : index
    %39 = vector.load %arg12[%38, %c0_25, %c0_26] : memref<8x8x128xf32, #tpu.memory_space<vmem>>, vector<1x8x128xf32>
    %40 = vector.shape_cast %39 : vector<1x8x128xf32> to vector<8x128xf32>
    %41 = vector.shape_cast %35 : vector<8x128xf32> to vector<1x8x128xf32>
    tpu.vector_store %arg12[%38, %c0_25, %c0_26], %41 {strides = array<i32>} : memref<8x8x128xf32, #tpu.memory_space<vmem>>, vector<1x8x128xf32>,
    %c1_i32 = arith.constant 1 : i32
    %42 = arith.index_cast %c1_i32 : i32 to index
    %c0_27 = arith.constant 0 : index
    %c0_28 = arith.constant 0 : index
    %43 = vector.load %arg9[%42, %c0_27, %c0_28] : memref<8x8x512xf32, #tpu.memory_space<vmem>>, vector<1x8x512xf32>
    %44 = vector.shape_cast %43 : vector<1x8x512xf32> to vector<8x512xf32>
    %c0_29 = arith.constant 0 : index
    %c0_30 = arith.constant 0 : index
    %45 = vector.load %arg10[%c0_29, %c0_30] : memref<8x128xf32, #tpu.memory_space<vmem>>, vector<8x128xf32>
    %cst_31 = arith.constant dense<0.000000e+00> : vector<8x512xf32>
    %46 = tpu.matmul %45, %12, %cst_31 {dimension_numbers = #tpu.dot_dimension_numbers<[1], [0], [0], [1], [0, 0, 1, 1], [], []>} : vector<8x128xf32>, vector<128x512xf32>, vector<8x512xf32> -> vector<8x512xf32>
    %47 = arith.addf %44, %46 : vector<8x512xf32>
    %48 = vector.extract_strided_slice %47 {offsets = [0, 0], sizes = [8, 384], strides = [1, 1]} : vector<8x512xf32> to vector<8x384xf32>
    %49 = arith.negf %48 : vector<8x384xf32>
    %50 = math.exp %49 : vector<8x384xf32>
    %cst_32 = arith.constant 1.000000e+00 : f32
    %51 = vector.broadcast %cst_32 : f32 to vector<8x384xf32>
    %52 = arith.addf %51, %50 : vector<8x384xf32>
    %53 = arith.divf %51, %52 : vector<8x384xf32>
    %54 = vector.extract_strided_slice %53 {offsets = [0, 0], sizes = [8, 128], strides = [1, 1]} : vector<8x384xf32> to vector<8x128xf32>
    %55 = vector.extract_strided_slice %53 {offsets = [0, 128], sizes = [8, 128], strides = [1, 1]} : vector<8x384xf32> to vector<8x128xf32>
    %56 = vector.extract_strided_slice %53 {offsets = [0, 256], sizes = [8, 128], strides = [1, 1]} : vector<8x384xf32> to vector<8x128xf32>
    %57 = vector.extract_strided_slice %47 {offsets = [0, 384], sizes = [8, 128], strides = [1, 1]} : vector<8x512xf32> to vector<8x128xf32>
    %58 = math.tanh %57 : vector<8x128xf32>
    %c0_33 = arith.constant 0 : index
    %c0_34 = arith.constant 0 : index
    %59 = vector.load %arg11[%c0_33, %c0_34] : memref<8x128xf32, #tpu.memory_space<vmem>>, vector<8x128xf32>
    %60 = arith.mulf %55, %59 : vector<8x128xf32>
    %61 = arith.mulf %54, %58 : vector<8x128xf32>
    %62 = arith.addf %60, %61 : vector<8x128xf32>
    %63 = math.tanh %62 : vector<8x128xf32>
    %64 = arith.mulf %56, %63 : vector<8x128xf32>
    %c0_35 = arith.constant 0 : index
    %c0_36 = arith.constant 0 : index
    %65 = vector.load %arg11[%c0_35, %c0_36] : memref<8x128xf32, #tpu.memory_space<vmem>>, vector<8x128xf32>
    tpu.vector_store %arg11[%c0_35, %c0_36], %62 {strides = array<i32>} : memref<8x128xf32, #tpu.memory_space<vmem>>, vector<8x128xf32>,
    %c0_37 = arith.constant 0 : index
    %c0_38 = arith.constant 0 : index
    %66 = vector.load %arg10[%c0_37, %c0_38] : memref<8x128xf32, #tpu.memory_space<vmem>>, vector<8x128xf32>
    tpu.vector_store %arg10[%c0_37, %c0_38], %64 {strides = array<i32>} : memref<8x128xf32, #tpu.memory_space<vmem>>, vector<8x128xf32>,
    %67 = arith.index_cast %c1_i32 : i32 to index
    %c0_39 = arith.constant 0 : index
    %c0_40 = arith.constant 0 : index
    %68 = vector.load %arg12[%67, %c0_39, %c0_40] : memref<8x8x128xf32, #tpu.memory_space<vmem>>, vector<1x8x128xf32>
    %69 = vector.shape_cast %68 : vector<1x8x128xf32> to vector<8x128xf32>
    %70 = vector.shape_cast %64 : vector<8x128xf32> to vector<1x8x128xf32>
    tpu.vector_store %arg12[%67, %c0_39, %c0_40], %70 {strides = array<i32>} : memref<8x8x128xf32, #tpu.memory_space<vmem>>, vector<1x8x128xf32>,
    %c2_i32 = arith.constant 2 : i32
    %71 = arith.index_cast %c2_i32 : i32 to index
    %c0_41 = arith.constant 0 : index
    %c0_42 = arith.constant 0 : index
    %72 = vector.load %arg9[%71, %c0_41, %c0_42] : memref<8x8x512xf32, #tpu.memory_space<vmem>>, vector<1x8x512xf32>
    %73 = vector.shape_cast %72 : vector<1x8x512xf32> to vector<8x512xf32>
    %c0_43 = arith.constant 0 : index
    %c0_44 = arith.constant 0 : index
    %74 = vector.load %arg10[%c0_43, %c0_44] : memref<8x128xf32, #tpu.memory_space<vmem>>, vector<8x128xf32>
    %cst_45 = arith.constant dense<0.000000e+00> : vector<8x512xf32>
    %75 = tpu.matmul %74, %12, %cst_45 {dimension_numbers = #tpu.dot_dimension_numbers<[1], [0], [0], [1], [0, 0, 1, 1], [], []>} : vector<8x128xf32>, vector<128x512xf32>, vector<8x512xf32> -> vector<8x512xf32>
    %76 = arith.addf %73, %75 : vector<8x512xf32>
    %77 = vector.extract_strided_slice %76 {offsets = [0, 0], sizes = [8, 384], strides = [1, 1]} : vector<8x512xf32> to vector<8x384xf32>
    %78 = arith.negf %77 : vector<8x384xf32>
    %79 = math.exp %78 : vector<8x384xf32>
    %cst_46 = arith.constant 1.000000e+00 : f32
    %80 = vector.broadcast %cst_46 : f32 to vector<8x384xf32>
    %81 = arith.addf %80, %79 : vector<8x384xf32>
    %82 = arith.divf %80, %81 : vector<8x384xf32>
    %83 = vector.extract_strided_slice %82 {offsets = [0, 0], sizes = [8, 128], strides = [1, 1]} : vector<8x384xf32> to vector<8x128xf32>
    %84 = vector.extract_strided_slice %82 {offsets = [0, 128], sizes = [8, 128], strides = [1, 1]} : vector<8x384xf32> to vector<8x128xf32>
    %85 = vector.extract_strided_slice %82 {offsets = [0, 256], sizes = [8, 128], strides = [1, 1]} : vector<8x384xf32> to vector<8x128xf32>
    %86 = vector.extract_strided_slice %76 {offsets = [0, 384], sizes = [8, 128], strides = [1, 1]} : vector<8x512xf32> to vector<8x128xf32>
    %87 = math.tanh %86 : vector<8x128xf32>
    %c0_47 = arith.constant 0 : index
    %c0_48 = arith.constant 0 : index
    %88 = vector.load %arg11[%c0_47, %c0_48] : memref<8x128xf32, #tpu.memory_space<vmem>>, vector<8x128xf32>
    %89 = arith.mulf %84, %88 : vector<8x128xf32>
    %90 = arith.mulf %83, %87 : vector<8x128xf32>
    %91 = arith.addf %89, %90 : vector<8x128xf32>
    %92 = math.tanh %91 : vector<8x128xf32>
    %93 = arith.mulf %85, %92 : vector<8x128xf32>
    %c0_49 = arith.constant 0 : index
    %c0_50 = arith.constant 0 : index
    %94 = vector.load %arg11[%c0_49, %c0_50] : memref<8x128xf32, #tpu.memory_space<vmem>>, vector<8x128xf32>
    tpu.vector_store %arg11[%c0_49, %c0_50], %91 {strides = array<i32>} : memref<8x128xf32, #tpu.memory_space<vmem>>, vector<8x128xf32>,
    %c0_51 = arith.constant 0 : index
    %c0_52 = arith.constant 0 : index
    %95 = vector.load %arg10[%c0_51, %c0_52] : memref<8x128xf32, #tpu.memory_space<vmem>>, vector<8x128xf32>
    tpu.vector_store %arg10[%c0_51, %c0_52], %93 {strides = array<i32>} : memref<8x128xf32, #tpu.memory_space<vmem>>, vector<8x128xf32>,
    %96 = arith.index_cast %c2_i32 : i32 to index
    %c0_53 = arith.constant 0 : index
    %c0_54 = arith.constant 0 : index
    %97 = vector.load %arg12[%96, %c0_53, %c0_54] : memref<8x8x128xf32, #tpu.memory_space<vmem>>, vector<1x8x128xf32>
    %98 = vector.shape_cast %97 : vector<1x8x128xf32> to vector<8x128xf32>
    %99 = vector.shape_cast %93 : vector<8x128xf32> to vector<1x8x128xf32>
    tpu.vector_store %arg12[%96, %c0_53, %c0_54], %99 {strides = array<i32>} : memref<8x8x128xf32, #tpu.memory_space<vmem>>, vector<1x8x128xf32>,
    %c3_i32 = arith.constant 3 : i32
    %100 = arith.index_cast %c3_i32 : i32 to index
    %c0_55 = arith.constant 0 : index
    %c0_56 = arith.constant 0 : index
    %101 = vector.load %arg9[%100, %c0_55, %c0_56] : memref<8x8x512xf32, #tpu.memory_space<vmem>>, vector<1x8x512xf32>
    %102 = vector.shape_cast %101 : vector<1x8x512xf32> to vector<8x512xf32>
    %c0_57 = arith.constant 0 : index
    %c0_58 = arith.constant 0 : index
    %103 = vector.load %arg10[%c0_57, %c0_58] : memref<8x128xf32, #tpu.memory_space<vmem>>, vector<8x128xf32>
    %cst_59 = arith.constant dense<0.000000e+00> : vector<8x512xf32>
    %104 = tpu.matmul %103, %12, %cst_59 {dimension_numbers = #tpu.dot_dimension_numbers<[1], [0], [0], [1], [0, 0, 1, 1], [], []>} : vector<8x128xf32>, vector<128x512xf32>, vector<8x512xf32> -> vector<8x512xf32>
    %105 = arith.addf %102, %104 : vector<8x512xf32>
    %106 = vector.extract_strided_slice %105 {offsets = [0, 0], sizes = [8, 384], strides = [1, 1]} : vector<8x512xf32> to vector<8x384xf32>
    %107 = arith.negf %106 : vector<8x384xf32>
    %108 = math.exp %107 : vector<8x384xf32>
    %cst_60 = arith.constant 1.000000e+00 : f32
    %109 = vector.broadcast %cst_60 : f32 to vector<8x384xf32>
    %110 = arith.addf %109, %108 : vector<8x384xf32>
    %111 = arith.divf %109, %110 : vector<8x384xf32>
    %112 = vector.extract_strided_slice %111 {offsets = [0, 0], sizes = [8, 128], strides = [1, 1]} : vector<8x384xf32> to vector<8x128xf32>
    %113 = vector.extract_strided_slice %111 {offsets = [0, 128], sizes = [8, 128], strides = [1, 1]} : vector<8x384xf32> to vector<8x128xf32>
    %114 = vector.extract_strided_slice %111 {offsets = [0, 256], sizes = [8, 128], strides = [1, 1]} : vector<8x384xf32> to vector<8x128xf32>
    %115 = vector.extract_strided_slice %105 {offsets = [0, 384], sizes = [8, 128], strides = [1, 1]} : vector<8x512xf32> to vector<8x128xf32>
    %116 = math.tanh %115 : vector<8x128xf32>
    %c0_61 = arith.constant 0 : index
    %c0_62 = arith.constant 0 : index
    %117 = vector.load %arg11[%c0_61, %c0_62] : memref<8x128xf32, #tpu.memory_space<vmem>>, vector<8x128xf32>
    %118 = arith.mulf %113, %117 : vector<8x128xf32>
    %119 = arith.mulf %112, %116 : vector<8x128xf32>
    %120 = arith.addf %118, %119 : vector<8x128xf32>
    %121 = math.tanh %120 : vector<8x128xf32>
    %122 = arith.mulf %114, %121 : vector<8x128xf32>
    %c0_63 = arith.constant 0 : index
    %c0_64 = arith.constant 0 : index
    %123 = vector.load %arg11[%c0_63, %c0_64] : memref<8x128xf32, #tpu.memory_space<vmem>>, vector<8x128xf32>
    tpu.vector_store %arg11[%c0_63, %c0_64], %120 {strides = array<i32>} : memref<8x128xf32, #tpu.memory_space<vmem>>, vector<8x128xf32>,
    %c0_65 = arith.constant 0 : index
    %c0_66 = arith.constant 0 : index
    %124 = vector.load %arg10[%c0_65, %c0_66] : memref<8x128xf32, #tpu.memory_space<vmem>>, vector<8x128xf32>
    tpu.vector_store %arg10[%c0_65, %c0_66], %122 {strides = array<i32>} : memref<8x128xf32, #tpu.memory_space<vmem>>, vector<8x128xf32>,
    %125 = arith.index_cast %c3_i32 : i32 to index
    %c0_67 = arith.constant 0 : index
    %c0_68 = arith.constant 0 : index
    %126 = vector.load %arg12[%125, %c0_67, %c0_68] : memref<8x8x128xf32, #tpu.memory_space<vmem>>, vector<1x8x128xf32>
    %127 = vector.shape_cast %126 : vector<1x8x128xf32> to vector<8x128xf32>
    %128 = vector.shape_cast %122 : vector<8x128xf32> to vector<1x8x128xf32>
    tpu.vector_store %arg12[%125, %c0_67, %c0_68], %128 {strides = array<i32>} : memref<8x8x128xf32, #tpu.memory_space<vmem>>, vector<1x8x128xf32>,
    %c4_i32 = arith.constant 4 : i32
    %129 = arith.index_cast %c4_i32 : i32 to index
    %c0_69 = arith.constant 0 : index
    %c0_70 = arith.constant 0 : index
    %130 = vector.load %arg9[%129, %c0_69, %c0_70] : memref<8x8x512xf32, #tpu.memory_space<vmem>>, vector<1x8x512xf32>
    %131 = vector.shape_cast %130 : vector<1x8x512xf32> to vector<8x512xf32>
    %c0_71 = arith.constant 0 : index
    %c0_72 = arith.constant 0 : index
    %132 = vector.load %arg10[%c0_71, %c0_72] : memref<8x128xf32, #tpu.memory_space<vmem>>, vector<8x128xf32>
    %cst_73 = arith.constant dense<0.000000e+00> : vector<8x512xf32>
    %133 = tpu.matmul %132, %12, %cst_73 {dimension_numbers = #tpu.dot_dimension_numbers<[1], [0], [0], [1], [0, 0, 1, 1], [], []>} : vector<8x128xf32>, vector<128x512xf32>, vector<8x512xf32> -> vector<8x512xf32>
    %134 = arith.addf %131, %133 : vector<8x512xf32>
    %135 = vector.extract_strided_slice %134 {offsets = [0, 0], sizes = [8, 384], strides = [1, 1]} : vector<8x512xf32> to vector<8x384xf32>
    %136 = arith.negf %135 : vector<8x384xf32>
    %137 = math.exp %136 : vector<8x384xf32>
    %cst_74 = arith.constant 1.000000e+00 : f32
    %138 = vector.broadcast %cst_74 : f32 to vector<8x384xf32>
    %139 = arith.addf %138, %137 : vector<8x384xf32>
    %140 = arith.divf %138, %139 : vector<8x384xf32>
    %141 = vector.extract_strided_slice %140 {offsets = [0, 0], sizes = [8, 128], strides = [1, 1]} : vector<8x384xf32> to vector<8x128xf32>
    %142 = vector.extract_strided_slice %140 {offsets = [0, 128], sizes = [8, 128], strides = [1, 1]} : vector<8x384xf32> to vector<8x128xf32>
    %143 = vector.extract_strided_slice %140 {offsets = [0, 256], sizes = [8, 128], strides = [1, 1]} : vector<8x384xf32> to vector<8x128xf32>
    %144 = vector.extract_strided_slice %134 {offsets = [0, 384], sizes = [8, 128], strides = [1, 1]} : vector<8x512xf32> to vector<8x128xf32>
    %145 = math.tanh %144 : vector<8x128xf32>
    %c0_75 = arith.constant 0 : index
    %c0_76 = arith.constant 0 : index
    %146 = vector.load %arg11[%c0_75, %c0_76] : memref<8x128xf32, #tpu.memory_space<vmem>>, vector<8x128xf32>
    %147 = arith.mulf %142, %146 : vector<8x128xf32>
    %148 = arith.mulf %141, %145 : vector<8x128xf32>
    %149 = arith.addf %147, %148 : vector<8x128xf32>
    %150 = math.tanh %149 : vector<8x128xf32>
    %151 = arith.mulf %143, %150 : vector<8x128xf32>
    %c0_77 = arith.constant 0 : index
    %c0_78 = arith.constant 0 : index
    %152 = vector.load %arg11[%c0_77, %c0_78] : memref<8x128xf32, #tpu.memory_space<vmem>>, vector<8x128xf32>
    tpu.vector_store %arg11[%c0_77, %c0_78], %149 {strides = array<i32>} : memref<8x128xf32, #tpu.memory_space<vmem>>, vector<8x128xf32>,
    %c0_79 = arith.constant 0 : index
    %c0_80 = arith.constant 0 : index
    %153 = vector.load %arg10[%c0_79, %c0_80] : memref<8x128xf32, #tpu.memory_space<vmem>>, vector<8x128xf32>
    tpu.vector_store %arg10[%c0_79, %c0_80], %151 {strides = array<i32>} : memref<8x128xf32, #tpu.memory_space<vmem>>, vector<8x128xf32>,
    %154 = arith.index_cast %c4_i32 : i32 to index
    %c0_81 = arith.constant 0 : index
    %c0_82 = arith.constant 0 : index
    %155 = vector.load %arg12[%154, %c0_81, %c0_82] : memref<8x8x128xf32, #tpu.memory_space<vmem>>, vector<1x8x128xf32>
    %156 = vector.shape_cast %155 : vector<1x8x128xf32> to vector<8x128xf32>
    %157 = vector.shape_cast %151 : vector<8x128xf32> to vector<1x8x128xf32>
    tpu.vector_store %arg12[%154, %c0_81, %c0_82], %157 {strides = array<i32>} : memref<8x8x128xf32, #tpu.memory_space<vmem>>, vector<1x8x128xf32>,
    %c5_i32 = arith.constant 5 : i32
    %158 = arith.index_cast %c5_i32 : i32 to index
    %c0_83 = arith.constant 0 : index
    %c0_84 = arith.constant 0 : index
    %159 = vector.load %arg9[%158, %c0_83, %c0_84] : memref<8x8x512xf32, #tpu.memory_space<vmem>>, vector<1x8x512xf32>
    %160 = vector.shape_cast %159 : vector<1x8x512xf32> to vector<8x512xf32>
    %c0_85 = arith.constant 0 : index
    %c0_86 = arith.constant 0 : index
    %161 = vector.load %arg10[%c0_85, %c0_86] : memref<8x128xf32, #tpu.memory_space<vmem>>, vector<8x128xf32>
    %cst_87 = arith.constant dense<0.000000e+00> : vector<8x512xf32>
    %162 = tpu.matmul %161, %12, %cst_87 {dimension_numbers = #tpu.dot_dimension_numbers<[1], [0], [0], [1], [0, 0, 1, 1], [], []>} : vector<8x128xf32>, vector<128x512xf32>, vector<8x512xf32> -> vector<8x512xf32>
    %163 = arith.addf %160, %162 : vector<8x512xf32>
    %164 = vector.extract_strided_slice %163 {offsets = [0, 0], sizes = [8, 384], strides = [1, 1]} : vector<8x512xf32> to vector<8x384xf32>
    %165 = arith.negf %164 : vector<8x384xf32>
    %166 = math.exp %165 : vector<8x384xf32>
    %cst_88 = arith.constant 1.000000e+00 : f32
    %167 = vector.broadcast %cst_88 : f32 to vector<8x384xf32>
    %168 = arith.addf %167, %166 : vector<8x384xf32>
    %169 = arith.divf %167, %168 : vector<8x384xf32>
    %170 = vector.extract_strided_slice %169 {offsets = [0, 0], sizes = [8, 128], strides = [1, 1]} : vector<8x384xf32> to vector<8x128xf32>
    %171 = vector.extract_strided_slice %169 {offsets = [0, 128], sizes = [8, 128], strides = [1, 1]} : vector<8x384xf32> to vector<8x128xf32>
    %172 = vector.extract_strided_slice %169 {offsets = [0, 256], sizes = [8, 128], strides = [1, 1]} : vector<8x384xf32> to vector<8x128xf32>
    %173 = vector.extract_strided_slice %163 {offsets = [0, 384], sizes = [8, 128], strides = [1, 1]} : vector<8x512xf32> to vector<8x128xf32>
    %174 = math.tanh %173 : vector<8x128xf32>
    %c0_89 = arith.constant 0 : index
    %c0_90 = arith.constant 0 : index
    %175 = vector.load %arg11[%c0_89, %c0_90] : memref<8x128xf32, #tpu.memory_space<vmem>>, vector<8x128xf32>
    %176 = arith.mulf %171, %175 : vector<8x128xf32>
    %177 = arith.mulf %170, %174 : vector<8x128xf32>
    %178 = arith.addf %176, %177 : vector<8x128xf32>
    %179 = math.tanh %178 : vector<8x128xf32>
    %180 = arith.mulf %172, %179 : vector<8x128xf32>
    %c0_91 = arith.constant 0 : index
    %c0_92 = arith.constant 0 : index
    %181 = vector.load %arg11[%c0_91, %c0_92] : memref<8x128xf32, #tpu.memory_space<vmem>>, vector<8x128xf32>
    tpu.vector_store %arg11[%c0_91, %c0_92], %178 {strides = array<i32>} : memref<8x128xf32, #tpu.memory_space<vmem>>, vector<8x128xf32>,
    %c0_93 = arith.constant 0 : index
    %c0_94 = arith.constant 0 : index
    %182 = vector.load %arg10[%c0_93, %c0_94] : memref<8x128xf32, #tpu.memory_space<vmem>>, vector<8x128xf32>
    tpu.vector_store %arg10[%c0_93, %c0_94], %180 {strides = array<i32>} : memref<8x128xf32, #tpu.memory_space<vmem>>, vector<8x128xf32>,
    %183 = arith.index_cast %c5_i32 : i32 to index
    %c0_95 = arith.constant 0 : index
    %c0_96 = arith.constant 0 : index
    %184 = vector.load %arg12[%183, %c0_95, %c0_96] : memref<8x8x128xf32, #tpu.memory_space<vmem>>, vector<1x8x128xf32>
    %185 = vector.shape_cast %184 : vector<1x8x128xf32> to vector<8x128xf32>
    %186 = vector.shape_cast %180 : vector<8x128xf32> to vector<1x8x128xf32>
    tpu.vector_store %arg12[%183, %c0_95, %c0_96], %186 {strides = array<i32>} : memref<8x8x128xf32, #tpu.memory_space<vmem>>, vector<1x8x128xf32>,
    %c6_i32 = arith.constant 6 : i32
    %187 = arith.index_cast %c6_i32 : i32 to index
    %c0_97 = arith.constant 0 : index
    %c0_98 = arith.constant 0 : index
    %188 = vector.load %arg9[%187, %c0_97, %c0_98] : memref<8x8x512xf32, #tpu.memory_space<vmem>>, vector<1x8x512xf32>
    %189 = vector.shape_cast %188 : vector<1x8x512xf32> to vector<8x512xf32>
    %c0_99 = arith.constant 0 : index
    %c0_100 = arith.constant 0 : index
    %190 = vector.load %arg10[%c0_99, %c0_100] : memref<8x128xf32, #tpu.memory_space<vmem>>, vector<8x128xf32>
    %cst_101 = arith.constant dense<0.000000e+00> : vector<8x512xf32>
    %191 = tpu.matmul %190, %12, %cst_101 {dimension_numbers = #tpu.dot_dimension_numbers<[1], [0], [0], [1], [0, 0, 1, 1], [], []>} : vector<8x128xf32>, vector<128x512xf32>, vector<8x512xf32> -> vector<8x512xf32>
    %192 = arith.addf %189, %191 : vector<8x512xf32>
    %193 = vector.extract_strided_slice %192 {offsets = [0, 0], sizes = [8, 384], strides = [1, 1]} : vector<8x512xf32> to vector<8x384xf32>
    %194 = arith.negf %193 : vector<8x384xf32>
    %195 = math.exp %194 : vector<8x384xf32>
    %cst_102 = arith.constant 1.000000e+00 : f32
    %196 = vector.broadcast %cst_102 : f32 to vector<8x384xf32>
    %197 = arith.addf %196, %195 : vector<8x384xf32>
    %198 = arith.divf %196, %197 : vector<8x384xf32>
    %199 = vector.extract_strided_slice %198 {offsets = [0, 0], sizes = [8, 128], strides = [1, 1]} : vector<8x384xf32> to vector<8x128xf32>
    %200 = vector.extract_strided_slice %198 {offsets = [0, 128], sizes = [8, 128], strides = [1, 1]} : vector<8x384xf32> to vector<8x128xf32>
    %201 = vector.extract_strided_slice %198 {offsets = [0, 256], sizes = [8, 128], strides = [1, 1]} : vector<8x384xf32> to vector<8x128xf32>
    %202 = vector.extract_strided_slice %192 {offsets = [0, 384], sizes = [8, 128], strides = [1, 1]} : vector<8x512xf32> to vector<8x128xf32>
    %203 = math.tanh %202 : vector<8x128xf32>
    %c0_103 = arith.constant 0 : index
    %c0_104 = arith.constant 0 : index
    %204 = vector.load %arg11[%c0_103, %c0_104] : memref<8x128xf32, #tpu.memory_space<vmem>>, vector<8x128xf32>
    %205 = arith.mulf %200, %204 : vector<8x128xf32>
    %206 = arith.mulf %199, %203 : vector<8x128xf32>
    %207 = arith.addf %205, %206 : vector<8x128xf32>
    %208 = math.tanh %207 : vector<8x128xf32>
    %209 = arith.mulf %201, %208 : vector<8x128xf32>
    %c0_105 = arith.constant 0 : index
    %c0_106 = arith.constant 0 : index
    %210 = vector.load %arg11[%c0_105, %c0_106] : memref<8x128xf32, #tpu.memory_space<vmem>>, vector<8x128xf32>
    tpu.vector_store %arg11[%c0_105, %c0_106], %207 {strides = array<i32>} : memref<8x128xf32, #tpu.memory_space<vmem>>, vector<8x128xf32>,
    %c0_107 = arith.constant 0 : index
    %c0_108 = arith.constant 0 : index
    %211 = vector.load %arg10[%c0_107, %c0_108] : memref<8x128xf32, #tpu.memory_space<vmem>>, vector<8x128xf32>
    tpu.vector_store %arg10[%c0_107, %c0_108], %209 {strides = array<i32>} : memref<8x128xf32, #tpu.memory_space<vmem>>, vector<8x128xf32>,
    %212 = arith.index_cast %c6_i32 : i32 to index
    %c0_109 = arith.constant 0 : index
    %c0_110 = arith.constant 0 : index
    %213 = vector.load %arg12[%212, %c0_109, %c0_110] : memref<8x8x128xf32, #tpu.memory_space<vmem>>, vector<1x8x128xf32>
    %214 = vector.shape_cast %213 : vector<1x8x128xf32> to vector<8x128xf32>
    %215 = vector.shape_cast %209 : vector<8x128xf32> to vector<1x8x128xf32>
    tpu.vector_store %arg12[%212, %c0_109, %c0_110], %215 {strides = array<i32>} : memref<8x8x128xf32, #tpu.memory_space<vmem>>, vector<1x8x128xf32>,
    %c7_i32 = arith.constant 7 : i32
    %216 = arith.index_cast %c7_i32 : i32 to index
    %c0_111 = arith.constant 0 : index
    %c0_112 = arith.constant 0 : index
    %217 = vector.load %arg9[%216, %c0_111, %c0_112] : memref<8x8x512xf32, #tpu.memory_space<vmem>>, vector<1x8x512xf32>
    %218 = vector.shape_cast %217 : vector<1x8x512xf32> to vector<8x512xf32>
    %c0_113 = arith.constant 0 : index
    %c0_114 = arith.constant 0 : index
    %219 = vector.load %arg10[%c0_113, %c0_114] : memref<8x128xf32, #tpu.memory_space<vmem>>, vector<8x128xf32>
    %cst_115 = arith.constant dense<0.000000e+00> : vector<8x512xf32>
    %220 = tpu.matmul %219, %12, %cst_115 {dimension_numbers = #tpu.dot_dimension_numbers<[1], [0], [0], [1], [0, 0, 1, 1], [], []>} : vector<8x128xf32>, vector<128x512xf32>, vector<8x512xf32> -> vector<8x512xf32>
    %221 = arith.addf %218, %220 : vector<8x512xf32>
    %222 = vector.extract_strided_slice %221 {offsets = [0, 0], sizes = [8, 384], strides = [1, 1]} : vector<8x512xf32> to vector<8x384xf32>
    %223 = arith.negf %222 : vector<8x384xf32>
    %224 = math.exp %223 : vector<8x384xf32>
    %cst_116 = arith.constant 1.000000e+00 : f32
    %225 = vector.broadcast %cst_116 : f32 to vector<8x384xf32>
    %226 = arith.addf %225, %224 : vector<8x384xf32>
    %227 = arith.divf %225, %226 : vector<8x384xf32>
    %228 = vector.extract_strided_slice %227 {offsets = [0, 0], sizes = [8, 128], strides = [1, 1]} : vector<8x384xf32> to vector<8x128xf32>
    %229 = vector.extract_strided_slice %227 {offsets = [0, 128], sizes = [8, 128], strides = [1, 1]} : vector<8x384xf32> to vector<8x128xf32>
    %230 = vector.extract_strided_slice %227 {offsets = [0, 256], sizes = [8, 128], strides = [1, 1]} : vector<8x384xf32> to vector<8x128xf32>
    %231 = vector.extract_strided_slice %221 {offsets = [0, 384], sizes = [8, 128], strides = [1, 1]} : vector<8x512xf32> to vector<8x128xf32>
    %232 = math.tanh %231 : vector<8x128xf32>
    %c0_117 = arith.constant 0 : index
    %c0_118 = arith.constant 0 : index
    %233 = vector.load %arg11[%c0_117, %c0_118] : memref<8x128xf32, #tpu.memory_space<vmem>>, vector<8x128xf32>
    %234 = arith.mulf %229, %233 : vector<8x128xf32>
    %235 = arith.mulf %228, %232 : vector<8x128xf32>
    %236 = arith.addf %234, %235 : vector<8x128xf32>
    %237 = math.tanh %236 : vector<8x128xf32>
    %238 = arith.mulf %230, %237 : vector<8x128xf32>
    %c0_119 = arith.constant 0 : index
    %c0_120 = arith.constant 0 : index
    %239 = vector.load %arg11[%c0_119, %c0_120] : memref<8x128xf32, #tpu.memory_space<vmem>>, vector<8x128xf32>
    tpu.vector_store %arg11[%c0_119, %c0_120], %236 {strides = array<i32>} : memref<8x128xf32, #tpu.memory_space<vmem>>, vector<8x128xf32>,
    %c0_121 = arith.constant 0 : index
    %c0_122 = arith.constant 0 : index
    %240 = vector.load %arg10[%c0_121, %c0_122] : memref<8x128xf32, #tpu.memory_space<vmem>>, vector<8x128xf32>
    tpu.vector_store %arg10[%c0_121, %c0_122], %238 {strides = array<i32>} : memref<8x128xf32, #tpu.memory_space<vmem>>, vector<8x128xf32>,
    %241 = arith.index_cast %c7_i32 : i32 to index
    %c0_123 = arith.constant 0 : index
    %c0_124 = arith.constant 0 : index
    %242 = vector.load %arg12[%241, %c0_123, %c0_124] : memref<8x8x128xf32, #tpu.memory_space<vmem>>, vector<1x8x128xf32>
    %243 = vector.shape_cast %242 : vector<1x8x128xf32> to vector<8x128xf32>
    %244 = vector.shape_cast %238 : vector<8x128xf32> to vector<1x8x128xf32>
    tpu.vector_store %arg12[%241, %c0_123, %c0_124], %244 {strides = array<i32>} : memref<8x8x128xf32, #tpu.memory_space<vmem>>, vector<1x8x128xf32>,
    %c8_i32 = arith.constant 8 : i32
    %c0_125 = arith.constant 0 : index
    %c0_126 = arith.constant 0 : index
    %c0_127 = arith.constant 0 : index
    %245 = vector.load %arg12[%c0_125, %c0_126, %c0_127] : memref<8x8x128xf32, #tpu.memory_space<vmem>>, vector<8x8x128xf32>
    %246 = vector.shape_cast %245 : vector<8x8x128xf32> to vector<64x128xf32>
    %c0_128 = arith.constant 0 : index
    %c0_129 = arith.constant 0 : index
    %247 = vector.load %arg6[%c0_128, %c0_129] : memref<128x128xf32, #tpu.memory_space<vmem>>, vector<128x128xf32>
    %cst_130 = arith.constant dense<0.000000e+00> : vector<64x128xf32>
    %248 = tpu.matmul %246, %247, %cst_130 {dimension_numbers = #tpu.dot_dimension_numbers<[1], [0], [0], [1], [0, 0, 1, 1], [], []>} : vector<64x128xf32>, vector<128x128xf32>, vector<64x128xf32> -> vector<64x128xf32>
    %c0_131 = arith.constant 0 : index
    %c0_132 = arith.constant 0 : index
    %249 = vector.load %arg7[%c0_131, %c0_132] : memref<1x128xf32, #tpu.memory_space<vmem>>, vector<1x128xf32>
    %250 = vector.broadcast %249 : vector<1x128xf32> to vector<64x128xf32>
    %251 = arith.addf %248, %250 : vector<64x128xf32>
    %252 = vector.shape_cast %251 : vector<64x128xf32> to vector<8x8x128xf32>
    %c0_133 = arith.constant 0 : index
    %c0_134 = arith.constant 0 : index
    %c0_135 = arith.constant 0 : index
    %253 = vector.load %arg8[%c0_133, %c0_134, %c0_135] : memref<8x8x128xf32, #tpu.memory_space<vmem>>, vector<8x8x128xf32>
    tpu.vector_store %arg8[%c0_133, %c0_134, %c0_135], %252 {strides = array<i32>} : memref<8x8x128xf32, #tpu.memory_space<vmem>>, vector<8x8x128xf32>,
    return
  }
  func.func @transform_0(%arg0: i32, %arg1: i32) -> (i32, i32, i32) {
    %c0_i32 = arith.constant 0 : i32
    %c0_i32_0 = arith.constant 0 : i32
    return %arg1, %arg0, %c0_i32 : i32, i32, i32
  }
  func.func @transform_1(%arg0: i32, %arg1: i32) -> (i32, i32) {
    %c0_i32 = arith.constant 0 : i32
    %c0_i32_0 = arith.constant 0 : i32
    %c0_i32_1 = arith.constant 0 : i32
    return %c0_i32, %c0_i32_0 : i32, i32
  }
  func.func @transform_2(%arg0: i32, %arg1: i32) -> (i32, i32) {
    %c0_i32 = arith.constant 0 : i32
    %c0_i32_0 = arith.constant 0 : i32
    %c0_i32_1 = arith.constant 0 : i32
    return %c0_i32, %c0_i32_0 : i32, i32
  }
  func.func @transform_3(%arg0: i32, %arg1: i32) -> (i32, i32) {
    %c0_i32 = arith.constant 0 : i32
    %c0_i32_0 = arith.constant 0 : i32
    %c0_i32_1 = arith.constant 0 : i32
    return %c0_i32, %c0_i32_0 : i32, i32
  }
  func.func @transform_4(%arg0: i32, %arg1: i32) -> (i32, i32) {
    %c0_i32 = arith.constant 0 : i32
    %c0_i32_0 = arith.constant 0 : i32
    %c0_i32_1 = arith.constant 0 : i32
    return %c0_i32, %c0_i32_0 : i32, i32
  }
  func.func @transform_5(%arg0: i32, %arg1: i32) -> (i32, i32) {
    %c0_i32 = arith.constant 0 : i32
    %c0_i32_0 = arith.constant 0 : i32
    %c0_i32_1 = arith.constant 0 : i32
    return %c0_i32, %c0_i32_0 : i32, i32
  }
  func.func @transform_6(%arg0: i32, %arg1: i32) -> (i32, i32, i32) {
    %c0_i32 = arith.constant 0 : i32
    %c0_i32_0 = arith.constant 0 : i32
    return %arg1, %arg0, %c0_i32 : i32, i32, i32
  }
}

</mosaic_0001>

<bundles_post_ra>
// kernel: lstm_model_forward.3
= control target key start
LH: loop header
LB: loop body
LE: loop exit
PB: predicated region body
PF: predicated region fallthrough
CT: control target
= control target key end

     0   :  { %v3968_v3 = vmov 0.0   ;;  %s3961_s1 = inlined_call_operand.vmem [shape: f32[128,512], index: 1, kind: input, shape index: {}]   ;;  %s3962_s3 = inlined_call_operand.vmem [shape: f32[128,512], index: 3, kind: input, shape index: {}]   ;;  %s3963_s0 = inlined_call_operand.vmem [shape: f32[8,8,128], index: 0, kind: input, shape index: {}]   ;;  %s3964_s2 = inlined_call_operand.vmem [shape: f32[1,512], index: 2, kind: input, shape index: {}]   ;;  %s3965_s4 = inlined_call_operand.vmem [shape: f32[128,128], index: 4, kind: input, shape index: {}]   ;;  %s3966_s5 = inlined_call_operand.vmem [shape: f32[1,128], index: 5, kind: input, shape index: {}]   ;;  %s3967_s6 = inlined_call_operand.vmem [shape: f32[8,8,128], index: 6, kind: output, shape index: {}]  }
   0x1   :  { %v38_v0 = vld [vmem:[%s3961_s1 + $0x8] sm:$0xff]  ;;  %v37_v2 = vld [vmem:[%s3961_s1] sm:$0xff]  ;;  %187 = vmatprep.mubr.f32.mxu1 %v3968_v3  ;;  %514 = vmatprep.mubr.f32.mxu0 %v3968_v3 }
   0x2   :  { %v42_v1 = vld [vmem:[%s3961_s1 + $0x28] sm:$0xff]  ;;  %v41_v5 = vld [vmem:[%s3961_s1 + $0x20] sm:$0xff] }
   0x3   :  { %v2132_v4 = vpack.c.bf16 %v42_v1, %v38_v0  ;;  %v382_v6 = vld [vmem:[%s3962_s3 + $0x8] sm:$0xff]  ;;  %v2134_v8 = vpack.c.bf16 %v41_v5, %v37_v2  ;;  %v381_v10 = vld [vmem:[%s3962_s3] sm:$0xff] }
   0x4   :  { %v386_v7 = vld [vmem:[%s3962_s3 + $0x28] sm:$0xff]  ;;  %v385_v11 = vld [vmem:[%s3962_s3 + $0x20] sm:$0xff] }
   0x5   :  { %v2989_v9 = vpack.c.bf16 %v386_v7, %v382_v6  ;;  %v46_v12 = vld [vmem:[%s3961_s1 + $0x48] sm:$0xff]  ;;  %2133 = vmatprep.subr.bf16.mxu1 %v2132_v4  ;;  %v3000_v13 = vpack.c.bf16 %v385_v11, %v381_v10  ;;  %v45_v15 = vld [vmem:[%s3961_s1 + $0x40] sm:$0xff] }
   0x6   :  { %v50_v14 = vld [vmem:[%s3961_s1 + $0x68] sm:$0xff]  ;;  %v49_v16 = vld [vmem:[%s3961_s1 + $0x60] sm:$0xff]  ;;  %2135 = vmatpush1.bf16.msra.mxu1 %v2134_v8 }
   0x7   :  { %2197 = vmatprep.subr.bf16.mxu0 %v2989_v9  ;;  %v2136_v17 = vpack.c.bf16 %v50_v14, %v46_v12  ;;  %v2138_v18 = vpack.c.bf16 %v49_v16, %v45_v15  ;;  %v390_v19 = vld [vmem:[%s3962_s3 + $0x48] sm:$0xff]  ;;  %v389_v21 = vld [vmem:[%s3962_s3 + $0x40] sm:$0xff] }
   0x8   :  { %v394_v20 = vld [vmem:[%s3962_s3 + $0x68] sm:$0xff]  ;;  %2199 = vmatpush1.bf16.msra.mxu0 %v3000_v13  ;;  %v393_v23 = vld [vmem:[%s3962_s3 + $0x60] sm:$0xff] }
   0x9   :  { %v3022_v22 = vpack.c.bf16 %v394_v20, %v390_v19  ;;  %v54_v24 = vld [vmem:[%s3961_s1 + $0x88] sm:$0xff]  ;;  %2137 = vmatprep.subr.bf16.mxu1 %v2136_v17  ;;  %v3033_v26 = vpack.c.bf16 %v393_v23, %v389_v21  ;;  %v53_v28 = vld [vmem:[%s3961_s1 + $0x80] sm:$0xff] }
   0xa   :  { %v58_v25 = vld [vmem:[%s3961_s1 + $0xa8] sm:$0xff]  ;;  %v57_v29 = vld [vmem:[%s3961_s1 + $0xa0] sm:$0xff]  ;;  %2139 = vmatpush1.bf16.msra.mxu1 %v2138_v18 }
   0xb   :  { %v2140_v27 = vpack.c.bf16 %v58_v25, %v54_v24  ;;  %v398_v30 = vld [vmem:[%s3962_s3 + $0x88] sm:$0xff]  ;;  %2201 = vmatprep.subr.bf16.mxu0 %v3022_v22  ;;  %v397_v32 = vld [vmem:[%s3962_s3 + $0x80] sm:$0xff]  ;;  %v2142_v34 = vpack.c.bf16 %v57_v29, %v53_v28 }
   0xc   :  { %v402_v31 = vld [vmem:[%s3962_s3 + $0xa8] sm:$0xff]  ;;  %v401_v33 = vld [vmem:[%s3962_s3 + $0xa0] sm:$0xff]  ;;  %2203 = vmatpush1.bf16.msra.mxu0 %v3033_v26 }
   0xd   :  { %v3054_v35 = vpack.c.bf16 %v402_v31, %v398_v30  ;;  %v62_v36 = vld [vmem:[%s3961_s1 + $0xc8] sm:$0xff]  ;;  %v61_v38 = vld [vmem:[%s3961_s1 + $0xc0] sm:$0xff]  ;;  %2141 = vmatprep.subr.bf16.mxu1 %v2140_v27  ;;  %v3066_v39 = vpack.c.bf16 %v401_v33, %v397_v32 }
   0xe   :  { %v66_v37 = vld [vmem:[%s3961_s1 + $0xe8] sm:$0xff]  ;;  %v65_v41 = vld [vmem:[%s3961_s1 + $0xe0] sm:$0xff]  ;;  %2143 = vmatpush1.bf16.msra.mxu1 %v2142_v34 }
   0xf   :  { %v2144_v40 = vpack.c.bf16 %v66_v37, %v62_v36  ;;  %v406_v42 = vld [vmem:[%s3962_s3 + $0xc8] sm:$0xff]  ;;  %2205 = vmatprep.subr.bf16.mxu0 %v3054_v35  ;;  %v405_v45 = vld [vmem:[%s3962_s3 + $0xc0] sm:$0xff]  ;;  %v2146_v49 = vpack.c.bf16 %v65_v41, %v61_v38  ;;  %v40_v37 = vld [vmem:[%s3961_s1 + $0x18] sm:$0xff] }
  0x10   :  { %v410_v43 = vld [vmem:[%s3962_s3 + $0xe8] sm:$0xff]  ;;  %v409_v46 = vld [vmem:[%s3962_s3 + $0xe0] sm:$0xff]  ;;  %2207 = vmatpush1.bf16.msra.mxu0 %v3066_v39  ;;  %v44_v38 = vld [vmem:[%s3961_s1 + $0x38] sm:$0xff] }
  0x11   :  { %v3078_v44 = vpack.c.bf16 %v410_v43, %v406_v42  ;;  %v70_v47 = vld [vmem:[%s3961_s1 + $0x108] sm:$0xff]  ;;  %2145 = vmatprep.subr.bf16.mxu1 %v2144_v40  ;;  %v3099_v52 = vpack.c.bf16 %v409_v46, %v405_v45  ;;  %v69_v54 = vld [vmem:[%s3961_s1 + $0x100] sm:$0xff]  ;;  %v2164_v42 = vpack.c.bf16 %v44_v38, %v40_v37  ;;  %v39_v43 = vld [vmem:[%s3961_s1 + $0x10] sm:$0xff] }
  0x12   :  { %v74_v48 = vld [vmem:[%s3961_s1 + $0x128] sm:$0xff]  ;;  %v73_v55 = vld [vmem:[%s3961_s1 + $0x120] sm:$0xff]  ;;  %2147 = vmatpush1.bf16.msra.mxu1 %v2146_v49  ;;  %v43_v45 = vld [vmem:[%s3961_s1 + $0x30] sm:$0xff] }
  0x13   :  { %v414_v50 = vld [vmem:[%s3962_s3 + $0x108] sm:$0xff]  ;;  %v2148_v53 = vpack.c.bf16 %v74_v48, %v70_v47  ;;  %v413_v56 = vld [vmem:[%s3962_s3 + $0x100] sm:$0xff]  ;;  %2209 = vmatprep.subr.bf16.mxu0 %v3078_v44  ;;  %v2150_v63 = vpack.c.bf16 %v73_v55, %v69_v54  ;;  %v48_v46 = vld [vmem:[%s3961_s1 + $0x58] sm:$0xff]  ;;  %v2166_v49 = vpack.c.bf16 %v43_v45, %v39_v43 }
  0x14   :  { %v418_v51 = vld [vmem:[%s3962_s3 + $0x128] sm:$0xff]  ;;  %v417_v58 = vld [vmem:[%s3962_s3 + $0x120] sm:$0xff]  ;;  %2211 = vmatpush1.bf16.msra.mxu0 %v3099_v52  ;;  %v52_v47 = vld [vmem:[%s3961_s1 + $0x78] sm:$0xff] }
  0x15   :  { %v3111_v57 = vpack.c.bf16 %v418_v51, %v414_v50  ;;  %v78_v59 = vld [vmem:[%s3961_s1 + $0x148] sm:$0xff]  ;;  %2149 = vmatprep.subr.bf16.mxu1 %v2148_v53  ;;  %v3129_v0 = vpack.c.bf16 %v417_v58, %v413_v56  ;;  %v77_v2 = vld [vmem:[%s3961_s1 + $0x140] sm:$0xff]  ;;  %v2168_v50 = vpack.c.bf16 %v52_v47, %v48_v46  ;;  %v47_v51 = vld [vmem:[%s3961_s1 + $0x50] sm:$0xff] }
  0x16   :  { %v82_v60 = vld [vmem:[%s3961_s1 + $0x168] sm:$0xff]  ;;  %v81_v4 = vld [vmem:[%s3961_s1 + $0x160] sm:$0xff]  ;;  %2151 = vmatpush1.bf16.msra.mxu1 %v2150_v63  ;;  %v51_v53 = vld [vmem:[%s3961_s1 + $0x70] sm:$0xff] }
  0x17   :  { %v422_v61 = vld [vmem:[%s3962_s3 + $0x148] sm:$0xff]  ;;  %v2152_v1 = vpack.c.bf16 %v82_v60, %v78_v59  ;;  %v421_v5 = vld [vmem:[%s3962_s3 + $0x140] sm:$0xff]  ;;  %2213 = vmatprep.subr.bf16.mxu0 %v3111_v57  ;;  %v2154_v14 = vpack.c.bf16 %v81_v4, %v77_v2  ;;  %v56_v54 = vld [vmem:[%s3961_s1 + $0x98] sm:$0xff]  ;;  %v2170_v58 = vpack.c.bf16 %v51_v53, %v47_v51 }
  0x18   :  { %v426_v62 = vld [vmem:[%s3962_s3 + $0x168] sm:$0xff]  ;;  %v425_v7 = vld [vmem:[%s3962_s3 + $0x160] sm:$0xff]  ;;  %2215 = vmatpush1.bf16.msra.mxu0 %v3129_v0  ;;  %v60_v55 = vld [vmem:[%s3961_s1 + $0xb8] sm:$0xff] }
  0x19   :  { %v3141_v6 = vpack.c.bf16 %v426_v62, %v422_v61  ;;  %v86_v8 = vld [vmem:[%s3961_s1 + $0x188] sm:$0xff]  ;;  %2153 = vmatprep.subr.bf16.mxu1 %v2152_v1  ;;  %v3159_v15 = vpack.c.bf16 %v425_v7, %v421_v5  ;;  %v85_v17 = vld [vmem:[%s3961_s1 + $0x180] sm:$0xff]  ;;  %v2172_v59 = vpack.c.bf16 %v60_v55, %v56_v54  ;;  %v55_v60 = vld [vmem:[%s3961_s1 + $0x90] sm:$0xff] }
  0x1a   :  { %v90_v10 = vld [vmem:[%s3961_s1 + $0x1a8] sm:$0xff]  ;;  %v89_v18 = vld [vmem:[%s3961_s1 + $0x1a0] sm:$0xff]  ;;  %2155 = vmatpush1.bf16.msra.mxu1 %v2154_v14  ;;  %v59_v61 = vld [vmem:[%s3961_s1 + $0xb0] sm:$0xff] }
  0x1b   :  { %v430_v11 = vld [vmem:[%s3962_s3 + $0x188] sm:$0xff]  ;;  %v2156_v16 = vpack.c.bf16 %v90_v10, %v86_v8  ;;  %v429_v19 = vld [vmem:[%s3962_s3 + $0x180] sm:$0xff]  ;;  %2217 = vmatprep.subr.bf16.mxu0 %v3141_v6  ;;  %v2158_v28 = vpack.c.bf16 %v89_v18, %v85_v17  ;;  %v64_v62 = vld [vmem:[%s3961_s1 + $0xd8] sm:$0xff]  ;;  %v2174_v2 = vpack.c.bf16 %v59_v61, %v55_v60 }
  0x1c   :  { %v434_v12 = vld [vmem:[%s3962_s3 + $0x1a8] sm:$0xff]  ;;  %v433_v21 = vld [vmem:[%s3962_s3 + $0x1a0] sm:$0xff]  ;;  %2219 = vmatpush1.bf16.msra.mxu0 %v3159_v15  ;;  %v68_v63 = vld [vmem:[%s3961_s1 + $0xf8] sm:$0xff] }
  0x1d   :  { %v3171_v20 = vpack.c.bf16 %v434_v12, %v430_v11  ;;  %v94_v23 = vld [vmem:[%s3961_s1 + $0x1c8] sm:$0xff]  ;;  %2157 = vmatprep.subr.bf16.mxu1 %v2156_v16  ;;  %v3189_v29 = vpack.c.bf16 %v433_v21, %v429_v19  ;;  %v93_v31 = vld [vmem:[%s3961_s1 + $0x1c0] sm:$0xff]  ;;  %v3275_v1 = vld [vmem:[%s3963_s0 + $0x10] sm:$0xff]  ;;  %v2176_v4 = vpack.c.bf16 %v68_v63, %v64_v62 }
  0x1e   :  { %v98_v24 = vld [vmem:[%s3961_s1 + $0x1e8] sm:$0xff]  ;;  %v97_v32 = vld [vmem:[%s3961_s1 + $0x1e0] sm:$0xff]  ;;  %2159 = vmatpush1.bf16.msra.mxu1 %v2158_v28  ;;  %v63_v5 = vld [vmem:[%s3961_s1 + $0xd0] sm:$0xff] }
  0x1f   :  { %v438_v25 = vld [vmem:[%s3962_s3 + $0x1c8] sm:$0xff]  ;;  %v2160_v30 = vpack.c.bf16 %v98_v24, %v94_v23  ;;  %v437_v33 = vld [vmem:[%s3962_s3 + $0x1c0] sm:$0xff]  ;;  %2221 = vmatprep.subr.bf16.mxu0 %v3171_v20  ;;  %v2162_v40 = vpack.c.bf16 %v97_v32, %v93_v31  ;;  %v67_v7 = vld [vmem:[%s3961_s1 + $0xf0] sm:$0xff] }
  0x20   :  { %v442_v27 = vld [vmem:[%s3962_s3 + $0x1e8] sm:$0xff]  ;;  %v441_v36 = vld [vmem:[%s3962_s3 + $0x1e0] sm:$0xff]  ;;  %2223 = vmatpush1.bf16.msra.mxu0 %v3189_v29  ;;  %v72_v8 = vld [vmem:[%s3961_s1 + $0x118] sm:$0xff]  ;;  %v2178_v12 = vpack.c.bf16 %v67_v7, %v63_v5 }
  0x21   :  { %v3201_v34 = vpack.c.bf16 %v442_v27, %v438_v25  ;;  %2161 = vmatprep.subr.bf16.mxu1 %v2160_v30  ;;  %v3213_v41 = vpack.c.bf16 %v441_v36, %v437_v33  ;;  %v3231_v48 = vld [vmem:[%s3963_s0] sm:$0xff]  ;;  %v3252_v56 = vld [vmem:[%s3963_s0 + $0x8] sm:$0xff]  ;;  %v76_v10 = vld [vmem:[%s3961_s1 + $0x138] sm:$0xff] }
  0x22   :  { %2163 = vmatpush1.bf16.msra.mxu1 %v2162_v40  ;;  %v3296_v11 = vld [vmem:[%s3963_s0 + $0x18] sm:$0xff]  ;;  %v2180_v14 = vpack.c.bf16 %v76_v10, %v72_v8  ;;  %v71_v16 = vld [vmem:[%s3961_s1 + $0x110] sm:$0xff]  ;;  %v3317_v21 = vld [vmem:[%s3963_s0 + $0x20] sm:$0xff] }
  0x23   :  { %2225 = vmatprep.subr.bf16.mxu0 %v3201_v34  ;;  %2165 = vmatprep.subr.bf16.mxu1 %v2164_v42  ;;  %v75_v17 = vld [vmem:[%s3961_s1 + $0x130] sm:$0xff]  ;;  %v80_v18 = vld [vmem:[%s3961_s1 + $0x158] sm:$0xff]  ;;  %v3338_v31 = vld [vmem:[%s3963_s0 + $0x28] sm:$0xff] }
  0x24   :  { %2227 = vmatpush1.bf16.msra.mxu0 %v3213_v41  ;;  %v84_v19 = vld [vmem:[%s3961_s1 + $0x178] sm:$0xff]  ;;  %v2182_v23 = vpack.c.bf16 %v75_v17, %v71_v16  ;;  %v79_v25 = vld [vmem:[%s3961_s1 + $0x150] sm:$0xff] }
  0x25   :  { %2261 = vmatprep.subr.bf16.mxu0 %v2989_v9  ;;  %188 = vmatmul.mubr.f32.vlgmr.msra.gmra.mrb[0].mxu1 %v3231_v48  ;;  %v2184_v24 = vpack.c.bf16 %v84_v19, %v80_v18  ;;  %v83_v27 = vld [vmem:[%s3961_s1 + $0x170] sm:$0xff]  ;;  %v88_v28 = vld [vmem:[%s3961_s1 + $0x198] sm:$0xff] }
  0x26   :  { %2167 = vmatpush1.bf16.msra.mxu1 %v2166_v49  ;;  %193 = vmatprep.mubr.f32.mxu1 %v3968_v3  ;;  %v92_v30 = vld [vmem:[%s3961_s1 + $0x1b8] sm:$0xff]  ;;  %v2186_v32 = vpack.c.bf16 %v83_v27, %v79_v25  ;;  %v87_v36 = vld [vmem:[%s3961_s1 + $0x190] sm:$0xff] }
  0x27   :  { %515 = vmatmul.mubr.f32.vlgmr.msra.gmra.mrb[0].mxu0 %v3968_v3  ;;  %2169 = vmatprep.subr.bf16.mxu1 %v2168_v50  ;;  %v2188_v33 = vpack.c.bf16 %v92_v30, %v88_v28  ;;  %v91_v37 = vld [vmem:[%s3961_s1 + $0x1b0] sm:$0xff]  ;;  %v96_v38 = vld [vmem:[%s3961_s1 + $0x1d8] sm:$0xff] }
  0x28   :  { %2263 = vmatpush1.bf16.msra.mxu0 %v3000_v13  ;;  %694 = vmatprep.mubr.f32.mxu0 %v3968_v3  ;;  %v100_v40 = vld [vmem:[%s3961_s1 + $0x1f8] sm:$0xff]  ;;  %v3359_v42 = vld [vmem:[%s3963_s0 + $0x30] sm:$0xff]  ;;  %v2190_v43 = vpack.c.bf16 %v91_v37, %v87_v36 }
  0x29   :  { %194 = vmatmul.mubr.f32.gmra.mrb[2].mxu1 %v3252_v56  ;;  %2265 = vmatprep.subr.bf16.mxu0 %v3022_v22  ;;  %v2192_v45 = vpack.c.bf16 %v100_v40, %v96_v38  ;;  %v95_v46 = vld [vmem:[%s3961_s1 + $0x1d0] sm:$0xff]  ;;  %v384_v49 = vld [vmem:[%s3962_s3 + $0x18] sm:$0xff] }
  0x2a   :  { %2171 = vmatpush1.bf16.msra.mxu1 %v2170_v58  ;;  %199 = vmatprep.mubr.f32.mxu1 %v3968_v3  ;;  %v99_v47 = vld [vmem:[%s3961_s1 + $0x1f0] sm:$0xff]  ;;  %v388_v50 = vld [vmem:[%s3962_s3 + $0x38] sm:$0xff] }
  0x2b   :  { %2173 = vmatprep.subr.bf16.mxu1 %v2172_v59  ;;  %v3380_v51 = vld [vmem:[%s3963_s0 + $0x38] sm:$0xff]  ;;  %v2194_v53 = vpack.c.bf16 %v99_v47, %v95_v46  ;;  %v3382_v54 = vpack.c.bf16 %v388_v50, %v384_v49  ;;  %v383_v55 = vld [vmem:[%s3962_s3 + $0x10] sm:$0xff] }
  0x2c   :  { %2267 = vmatpush1.bf16.msra.mxu0 %v3033_v26  ;;  %v387_v58 = vld [vmem:[%s3962_s3 + $0x30] sm:$0xff]  ;;  %v392_v59 = vld [vmem:[%s3962_s3 + $0x58] sm:$0xff] }
  0x2d   :  { %200 = vmatmul.mubr.f32.gmra.mrb[4].mxu1 %v3275_v1  ;;  %2269 = vmatprep.subr.bf16.mxu0 %v3054_v35  ;;  %v396_v60 = vld [vmem:[%s3962_s3 + $0x78] sm:$0xff]  ;;  %v3400_v61 = vpack.c.bf16 %v387_v58, %v383_v55  ;;  %v391_v63 = vld [vmem:[%s3962_s3 + $0x50] sm:$0xff] }
  0x2e   :  { %2175 = vmatpush1.bf16.msra.mxu1 %v2174_v2  ;;  %205 = vmatprep.mubr.f32.mxu1 %v3968_v3  ;;  %v3403_v62 = vpack.c.bf16 %v396_v60, %v392_v59  ;;  %v395_v2 = vld [vmem:[%s3962_s3 + $0x70] sm:$0xff]  ;;  %v404_v5 = vld [vmem:[%s3962_s3 + $0xb8] sm:$0xff]  ;;  %v101_v59 = vld [vmem:[%s3964_s2] sm:$0xf] }
  0x2f   :  { %2177 = vmatprep.subr.bf16.mxu1 %v2176_v4  ;;  %v400_v4 = vld [vmem:[%s3962_s3 + $0x98] sm:$0xff]  ;;  %v3422_v7 = vpack.c.bf16 %v395_v2, %v391_v63  ;;  %v399_v10 = vld [vmem:[%s3962_s3 + $0x90] sm:$0xff] }
  0x30   :  { %2271 = vmatpush1.bf16.msra.mxu0 %v3066_v39  ;;  %v3425_v8 = vpack.c.bf16 %v404_v5, %v400_v4  ;;  %v407_v18 = vld [vmem:[%s3962_s3 + $0xd0] sm:$0xff]  ;;  %v428_v30 = vld [vmem:[%s3962_s3 + $0x178] sm:$0xff] }
  0x31   :  { %206 = vmatmul.mubr.f32.gmra.mrb[6].mxu1 %v3296_v11  ;;  %2273 = vmatprep.subr.bf16.mxu0 %v3078_v44  ;;  %v411_v19 = vld [vmem:[%s3962_s3 + $0xf0] sm:$0xff]  ;;  %v436_v38 = vld [vmem:[%s3962_s3 + $0x1b8] sm:$0xff] }
  0x32   :  { %2179 = vmatpush1.bf16.msra.mxu1 %v2178_v12  ;;  %211 = vmatprep.mubr.f32.mxu1 %v3968_v3  ;;  %v408_v12 = vld [vmem:[%s3962_s3 + $0xd8] sm:$0xff]  ;;  %v415_v27 = vld [vmem:[%s3962_s3 + $0x110] sm:$0xff] }
  0x33   :  { %2181 = vmatprep.subr.bf16.mxu1 %v2180_v14  ;;  %v412_v14 = vld [vmem:[%s3962_s3 + $0xf8] sm:$0xff]  ;;  %v419_v28 = vld [vmem:[%s3962_s3 + $0x130] sm:$0xff] }
  0x34   :  { %2275 = vmatpush1.bf16.msra.mxu0 %v3099_v52  ;;  %v3445_v17 = vpack.c.bf16 %v412_v14, %v408_v12  ;;  %v423_v36 = vld [vmem:[%s3962_s3 + $0x150] sm:$0xff]  ;;  %v444_v47 = vld [vmem:[%s3962_s3 + $0x1f8] sm:$0xff] }
  0x35   :  { %212 = vmatmul.mubr.f32.gmra.mrb[8].mxu1 %v3317_v21  ;;  %2277 = vmatprep.subr.bf16.mxu0 %v3111_v57  ;;  %v427_v37 = vld [vmem:[%s3962_s3 + $0x170] sm:$0xff] }
  0x36   :  { %2183 = vmatpush1.bf16.msra.mxu1 %v2182_v23  ;;  %217 = vmatprep.mubr.f32.mxu1 %v3968_v3  ;;  %v420_v23 = vld [vmem:[%s3962_s3 + $0x138] sm:$0xff]  ;;  %v3502_v40 = vpack.c.bf16 %v427_v37, %v423_v36  ;;  %v435_v46 = vld [vmem:[%s3962_s3 + $0x1b0] sm:$0xff] }
  0x37   :  { %2185 = vmatprep.subr.bf16.mxu1 %v2184_v24  ;;  %v3462_v24 = vpack.c.bf16 %v411_v19, %v407_v18  ;;  %v443_v55 = vld [vmem:[%s3962_s3 + $0x1f0] sm:$0xff] }
  0x38   :  { %2279 = vmatpush1.bf16.msra.mxu0 %v3129_v0 }
  0x39   :  { %218 = vmatmul.mubr.f32.gmra.mrb[10].mxu1 %v3338_v31  ;;  %2281 = vmatprep.subr.bf16.mxu0 %v3141_v6 }
  0x3a   :  { %2187 = vmatpush1.bf16.msra.mxu1 %v2186_v32  ;;  %223 = vmatprep.mubr.f32.mxu1 %v3968_v3  ;;  %v3482_v32 = vpack.c.bf16 %v419_v28, %v415_v27 }
  0x3b   :  { %2189 = vmatprep.subr.bf16.mxu1 %v2188_v33 }
  0x3c   :  { %2283 = vmatpush1.bf16.msra.mxu0 %v3159_v15 }
  0x3d   :  { %224 = vmatmul.mubr.f32.gmra.mrb[12].mxu1 %v3359_v42  ;;  %2285 = vmatprep.subr.bf16.mxu0 %v3171_v20 }
  0x3e   :  { %2191 = vmatpush1.bf16.msra.mxu1 %v2190_v43  ;;  %229 = vmatprep.mubr.f32.mxu1 %v3968_v3 }
  0x3f   :  { %2193 = vmatprep.subr.bf16.mxu1 %v2192_v45  ;;  %v431_v45 = vld [vmem:[%s3962_s3 + $0x190] sm:$0xff] }
  0x40   :  { %2287 = vmatpush1.bf16.msra.mxu0 %v3189_v29  ;;  %v3522_v49 = vpack.c.bf16 %v435_v46, %v431_v45 }
  0x41   :  { %230 = vmatmul.mubr.f32.gmra.mrb[14].mxu1 %v3380_v51  ;;  %2289 = vmatprep.subr.bf16.mxu0 %v3201_v34 }
  0x42   :  { %2195 = vmatpush1.bf16.msra.mxu1 %v2194_v53  ;;  %300 = vmatprep.mubr.f32.mxu1 %v3968_v3  ;;  %v439_v53 = vld [vmem:[%s3962_s3 + $0x1d0] sm:$0xff] }
  0x43   :  { %2229 = vmatprep.subr.bf16.mxu1 %v3382_v54 }
  0x44   :  { %2291 = vmatpush1.bf16.msra.mxu0 %v3213_v41 }
  0x45   :  { %301 = vmatmul.mubr.f32.vlgmr.msra.gmra.mrb[16].mxu1 %v3231_v48  ;;  %2325 = vmatprep.subr.bf16.mxu0 %v2989_v9  ;;  %v403_v48 = vld [vmem:[%s3962_s3 + $0xb0] sm:$0xff] }
  0x46   :  { %2231 = vmatpush1.bf16.msra.mxu1 %v3400_v61  ;;  %306 = vmatprep.mubr.f32.mxu1 %v3968_v3  ;;  %v3442_v16 = vpack.c.bf16 %v403_v48, %v399_v10 }
  0x47   :  { %2233 = vmatprep.subr.bf16.mxu1 %v3403_v62 }
  0x49   :  { %307 = vmatmul.mubr.f32.gmra.mrb[18].mxu1 %v3252_v56  ;;  %v416_v56 = vld [vmem:[%s3962_s3 + $0x118] sm:$0xff] }
  0x4a   :  { %2235 = vmatpush1.bf16.msra.mxu1 %v3422_v7  ;;  %312 = vmatprep.mubr.f32.mxu1 %v3968_v3  ;;  %v3465_v25 = vpack.c.bf16 %v420_v23, %v416_v56 }
  0x4b   :  { %2237 = vmatprep.subr.bf16.mxu1 %v3425_v8 }
  0x4d   :  { %313 = vmatmul.mubr.f32.gmra.mrb[20].mxu1 %v3275_v1  ;;  %v424_v1 = vld [vmem:[%s3962_s3 + $0x158] sm:$0xff] }
  0x4e   :  { %2239 = vmatpush1.bf16.msra.mxu1 %v3442_v16  ;;  %318 = vmatprep.mubr.f32.mxu1 %v3968_v3  ;;  %v3485_v33 = vpack.c.bf16 %v428_v30, %v424_v1 }
  0x4f   :  { %2241 = vmatprep.subr.bf16.mxu1 %v3445_v17 }
  0x51   :  { %319 = vmatmul.mubr.f32.gmra.mrb[22].mxu1 %v3296_v11  ;;  %v432_v11 = vld [vmem:[%s3962_s3 + $0x198] sm:$0xff] }
  0x52   :  { %2243 = vmatpush1.bf16.msra.mxu1 %v3462_v24  ;;  %324 = vmatprep.mubr.f32.mxu1 %v3968_v3  ;;  %v3505_v43 = vpack.c.bf16 %v436_v38, %v432_v11 }
  0x53   :  { %2245 = vmatprep.subr.bf16.mxu1 %v3465_v25 }
  0x55   :  { %325 = vmatmul.mubr.f32.gmra.mrb[24].mxu1 %v3317_v21  ;;  %v440_v21 = vld [vmem:[%s3962_s3 + $0x1d8] sm:$0xff] }
  0x56   :  { %2247 = vmatpush1.bf16.msra.mxu1 %v3482_v32  ;;  %330 = vmatprep.mubr.f32.mxu1 %v3968_v3  ;;  %v3525_v50 = vpack.c.bf16 %v444_v47, %v440_v21 }
  0x57   :  { %2249 = vmatprep.subr.bf16.mxu1 %v3485_v33 }
  0x59   :  { %331 = vmatmul.mubr.f32.gmra.mrb[26].mxu1 %v3338_v31  ;;  %v3536_v31 = vpack.c.bf16 %v443_v55, %v439_v53 }
  0x5a   :  { %2251 = vmatpush1.bf16.msra.mxu1 %v3502_v40  ;;  %336 = vmatprep.mubr.f32.mxu1 %v3968_v3 }
  0x5b   :  { %2253 = vmatprep.subr.bf16.mxu1 %v3505_v43 }
  0x5d   :  { %337 = vmatmul.mubr.f32.gmra.mrb[28].mxu1 %v3359_v42  ;;  %v103_v42 = vlaneseq }
  0x5e   :  { %2255 = vmatpush1.bf16.msra.mxu1 %v3522_v49  ;;  %342 = vmatprep.mubr.f32.mxu1 %v3968_v3 }
  0x5f   :  { %2257 = vmatprep.subr.bf16.mxu1 %v3525_v50 }
  0x61   :  { %343 = vmatmul.mubr.f32.gmra.mrb[30].mxu1 %v3380_v51  ;;  %v104_v51 = vshrl.u32 %v103_v42, 7 }
  0x62   :  { %2259 = vmatpush1.bf16.msra.mxu1 %v3536_v31  ;;  %585 = vmatprep.mubr.f32.mxu1 %v3968_v3 }
  0x63   :  { %2293 = vmatprep.subr.bf16.mxu1 %v3382_v54  ;;  %v105_v58 = vsub.s32 0, %v104_v51  ;;  %v109_v60 = vsub.s32 1, %v104_v51 }
  0x65   :  { %586 = vmatmul.mubr.f32.vlgmr.msra.gmra.mrb[16].mxu1 %v3968_v3  ;;  %v106_v63 = vrot.slane %v101_v59, %v105_v58  ;;  %v110_v2 = vrot.slane %v101_v59, %v109_v60 }
  0x66   :  { %2295 = vmatpush1.bf16.msra.mxu1 %v3400_v61  ;;  %765 = vmatprep.mubr.f32.mxu1 %v3968_v3 }
  0x67   :  { %2297 = vmatprep.subr.bf16.mxu1 %v3403_v62 }
  0x6a   :  { %2299 = vmatpush1.bf16.msra.mxu1 %v3422_v7 }
  0x6b   :  { %2301 = vmatprep.subr.bf16.mxu1 %v3425_v8 }
  0x6e   :  { %2303 = vmatpush1.bf16.msra.mxu1 %v3442_v16 }
  0x6f   :  { %2305 = vmatprep.subr.bf16.mxu1 %v3445_v17 }
  0x72   :  { %2307 = vmatpush1.bf16.msra.mxu1 %v3462_v24 }
  0x73   :  { %2309 = vmatprep.subr.bf16.mxu1 %v3465_v25 }
  0x76   :  { %2311 = vmatpush1.bf16.msra.mxu1 %v3482_v32 }
  0x77   :  { %2313 = vmatprep.subr.bf16.mxu1 %v3485_v33 }
  0x7a   :  { %2315 = vmatpush1.bf16.msra.mxu1 %v3502_v40 }
  0x7b   :  { %2317 = vmatprep.subr.bf16.mxu1 %v3505_v43 }
  0x7e   :  { %2319 = vmatpush1.bf16.msra.mxu1 %v3522_v49 }
  0x7f   :  { %2321 = vmatprep.subr.bf16.mxu1 %v3525_v50 }
  0x82   :  { %2323 = vmatpush1.bf16.msra.mxu1 %v3536_v31 }
  0x83   :  { %2357 = vmatprep.subr.bf16.mxu1 %v3382_v54 }
  0xf8   :  { %v189_v4 = vpop.f32.mrb[0].mxu1 }
  0xf9   :  { %v190_v5 = vadd.f32 %v189_v4, %v106_v63  ;;  %v191_v10 = vpop.f32.mrb[1].mxu1 }
  0xfa   :  { %v516_v48 = vpop.f32.mrb[0].mxu0  ;;  %v192_v12 = vadd.f32 %v191_v10, %v110_v2 }
  0xfb   :  { %v518_v14 = vpop.f32.mrb[1].mxu0  ;;  %v592_v18 = vadd.f32 %v516_v48, %v190_v5 }
  0xfc   :  { %v593_v19 = vadd.f32 %v518_v14, %v192_v12  ;;  %v195_v56 = vpop.f32.mrb[2].mxu1 }
  0xfd   :  { %v3564_v23 = vadd.f32 %v195_v56, %v106_v63  ;;  %v197_v27 = vpop.f32.mrb[3].mxu1 }
  0xfe   :  { %v3566_v28 = vadd.f32 %v197_v27, %v110_v2 }
 0x100   :  { %v201_v1 = vpop.f32.mrb[4].mxu1 }
 0x101   :  { %v3568_v30 = vadd.f32 %v201_v1, %v106_v63  ;;  %v203_v36 = vpop.f32.mrb[5].mxu1 }
 0x102   :  { %v3570_v37 = vadd.f32 %v203_v36, %v110_v2  ;;  %v2040_v36 = vmul.f32 -1.442695, %v593_v19 }
 0x104   :  { %v207_v11 = vpop.f32.mrb[6].mxu1  ;;  %2805 = vpow2.f32 %v2040_v36 }
 0x105   :  { %v3572_v38 = vadd.f32 %v207_v11, %v106_v63  ;;  %v209_v45 = vpop.f32.mrb[7].mxu1  ;;  %v2039_v11 = vmul.f32 -1.442695, %v592_v18 }
 0x106   :  { %v3574_v46 = vadd.f32 %v209_v45, %v110_v2  ;;  %v113_v45 = vsub.s32 2, %v104_v51 }
 0x107   :  { %2807 = vpow2.f32 %v2039_v11 }
 0x108   :  { %v213_v21 = vpop.f32.mrb[8].mxu1 }
 0x109   :  { %v3576_v47 = vadd.f32 %v213_v21, %v106_v63  ;;  %v215_v53 = vpop.f32.mrb[9].mxu1  ;;  %v117_v21 = vsub.s32 3, %v104_v51 }
 0x10a   :  { %v3578_v55 = vadd.f32 %v215_v53, %v110_v2 }
 0x10b   :  { %v3594_v3 = vrot.slane %v101_v59, %v117_v21 }
 0x10c   :  { %v219_v42 = vpop.f32.mrb[10].mxu1 }
 0x10d   :  { %v3580_v58 = vadd.f32 %v219_v42, %v106_v63  ;;  %v221_v60 = vpop.f32.mrb[11].mxu1 }
 0x10e   :  { %v3582_v4 = vadd.f32 %v221_v60, %v110_v2  ;;  %v2806_v53 = vpop.eup %2805  ;;  %v3592_v60 = vrot.slane %v101_v59, %v113_v45 }
 0x110   :  { %v225_v5 = vpop.f32.mrb[12].mxu1 }
 0x111   :  { %v3584_v10 = vadd.f32 %v225_v5, %v106_v63  ;;  %v227_v48 = vpop.f32.mrb[13].mxu1  ;;  %v2808_v42 = vpop.eup %2807  ;;  %v606_v5 = vadd.f32 1.0, %v2806_v53 }
 0x112   :  { %v3586_v12 = vadd.f32 %v227_v48, %v110_v2  ;;  %v605_v48 = vadd.f32 1.0, %v2808_v42 }
 0x113   :  { %2809 = vrcp.f32 %v606_v5  ;;  %v3972_v5 = vmov 0.0  }
 0x114   :  { %3970 = vst [vmem:[#allocation6_spill] sm:$0xff] %v3586_v12  ;;  %v231_v14 = vpop.f32.mrb[14].mxu1  ;;  %2811 = vrcp.f32 %v605_v48 }
 0x115   :  { %v3588_v56 = vadd.f32 %v231_v14, %v106_v63  ;;  %v233_v27 = vpop.f32.mrb[15].mxu1 }
 0x116   :  { %v3590_v1 = vadd.f32 %v233_v27, %v110_v2 }
 0x118   :  { %3971 = vst [vmem:[#allocation7_spill] sm:$0xff] %v3590_v1 }
 0x11d   :  { %v2810_v51 = vpop.eup %2809 }
 0x11e   :  { %v2812_v19 = vpop.eup %2811  ;;  %v616_v11 = vmul.f32 0.0, %v2810_v51 }
 0x138   :  { %v587_v12 = vpop.f32.mrb[16].mxu1 }
 0x139   :  { %v2772_v63 = vadd.f32 %v587_v12, %v3592_v60  ;;  %v589_v14 = vpop.f32.mrb[17].mxu1 }
 0x13a   :  { %v2773_v2 = vadd.f32 %v589_v14, %v3594_v3 }
 0x13b   :  { %v2041_v18 = vmul.f32 -1.442695, %v2772_v63 }
 0x13c   :  { %2813 = vtanh.f32 %v2773_v2 }
 0x13d   :  { %2815 = vpow2.f32 %v2041_v18 }
 0x146   :  { %v2814_v27 = vpop.eup %2813 }
 0x147   :  { %v2816_v36 = vpop.eup %2815  ;;  %v617_v45 = vmul.f32 %v2814_v27, %v2812_v19 }
 0x148   :  { %v607_v59 = vadd.f32 1.0, %v2816_v36 }
 0x149   :  { %v3598_v21 = vadd.f32 %v617_v45, %v616_v11 }
 0x14a   :  { %2817 = vrcp.f32 %v607_v59 }
 0x14b   :  { %2819 = vtanh.f32 %v3598_v21 }
 0x154   :  { %v2818_v12 = vpop.eup %2817 }
 0x155   :  { %v2820_v53 = vpop.eup %2819 }
 0x156   :  { %v3601_v42 = vmul.f32 %v2820_v53, %v2818_v12 }
 0x158   :  { %695 = vmatmul.mubr.f32.vlgmr.msra.gmra.mrb[2].mxu0 %v3601_v42  ;;  %766 = vmatmul.mubr.f32.vlgmr.msra.gmra.mrb[18].mxu1 %v3601_v42 }
 0x159   :  { %2327 = vmatpush1.bf16.msra.mxu0 %v3000_v13  ;;  %2359 = vmatpush1.bf16.msra.mxu1 %v3400_v61 }
 0x15a   :  { %2329 = vmatprep.subr.bf16.mxu0 %v3022_v22  ;;  %2361 = vmatprep.subr.bf16.mxu1 %v3403_v62 }
 0x15b   :  { %875 = vmatprep.mubr.f32.mxu0 %v3972_v5  ;;  %946 = vmatprep.mubr.f32.mxu1 %v3972_v5 }
 0x15d   :  { %2331 = vmatpush1.bf16.msra.mxu0 %v3033_v26  ;;  %2363 = vmatpush1.bf16.msra.mxu1 %v3422_v7 }
 0x15e   :  { %2333 = vmatprep.subr.bf16.mxu0 %v3054_v35  ;;  %2365 = vmatprep.subr.bf16.mxu1 %v3425_v8 }
 0x161   :  { %2335 = vmatpush1.bf16.msra.mxu0 %v3066_v39  ;;  %2367 = vmatpush1.bf16.msra.mxu1 %v3442_v16 }
 0x162   :  { %2337 = vmatprep.subr.bf16.mxu0 %v3078_v44  ;;  %2369 = vmatprep.subr.bf16.mxu1 %v3445_v17 }
 0x165   :  { %2339 = vmatpush1.bf16.msra.mxu0 %v3099_v52  ;;  %2371 = vmatpush1.bf16.msra.mxu1 %v3462_v24 }
 0x166   :  { %2341 = vmatprep.subr.bf16.mxu0 %v3111_v57  ;;  %2373 = vmatprep.subr.bf16.mxu1 %v3465_v25 }
 0x169   :  { %2343 = vmatpush1.bf16.msra.mxu0 %v3129_v0  ;;  %2375 = vmatpush1.bf16.msra.mxu1 %v3482_v32 }
 0x16a   :  { %2345 = vmatprep.subr.bf16.mxu0 %v3141_v6  ;;  %2377 = vmatprep.subr.bf16.mxu1 %v3485_v33 }
 0x16d   :  { %2347 = vmatpush1.bf16.msra.mxu0 %v3159_v15  ;;  %2379 = vmatpush1.bf16.msra.mxu1 %v3502_v40 }
 0x16e   :  { %2349 = vmatprep.subr.bf16.mxu0 %v3171_v20  ;;  %2381 = vmatprep.subr.bf16.mxu1 %v3505_v43 }
 0x171   :  { %2351 = vmatpush1.bf16.msra.mxu0 %v3189_v29  ;;  %2383 = vmatpush1.bf16.msra.mxu1 %v3522_v49 }
 0x172   :  { %2353 = vmatprep.subr.bf16.mxu0 %v3201_v34  ;;  %2385 = vmatprep.subr.bf16.mxu1 %v3525_v50 }
 0x175   :  { %2355 = vmatpush1.bf16.msra.mxu0 %v3213_v41  ;;  %2387 = vmatpush1.bf16.msra.mxu1 %v3536_v31 }
 0x176   :  { %2389 = vmatprep.subr.bf16.mxu0 %v2989_v9  ;;  %2421 = vmatprep.subr.bf16.mxu1 %v3382_v54 }
 0x22b   :  { %v696_v48 = vpop.f32.mrb[2].mxu0  ;;  %v767_v63 = vpop.f32.mrb[18].mxu1 }
 0x22c   :  { %v772_v14 = vadd.f32 %v696_v48, %v3564_v23  ;;  %v698_v2 = vpop.f32.mrb[3].mxu0  ;;  %v769_v18 = vpop.f32.mrb[19].mxu1  ;;  %v2774_v36 = vadd.f32 %v767_v63, %v3592_v60 }
 0x22d   :  { %v773_v51 = vadd.f32 %v698_v2, %v3566_v28  ;;  %v2775_v11 = vadd.f32 %v769_v18, %v3594_v3 }
 0x22e   :  { %v2042_v19 = vmul.f32 -1.442695, %v772_v14  ;;  %v2044_v45 = vmul.f32 -1.442695, %v2774_v36 }
 0x22f   :  { %v2043_v27 = vmul.f32 -1.442695, %v773_v51 }
 0x230   :  { %2821 = vpow2.f32 %v2042_v19 }
 0x231   :  { %2823 = vpow2.f32 %v2043_v27 }
 0x232   :  { %2825 = vtanh.f32 %v2775_v11 }
 0x233   :  { %2827 = vpow2.f32 %v2044_v45 }
 0x23a   :  { %v2822_v59 = vpop.eup %2821 }
 0x23b   :  { %v785_v12 = vadd.f32 1.0, %v2822_v59  ;;  %v2824_v53 = vpop.eup %2823 }
 0x23c   :  { %v786_v23 = vadd.f32 1.0, %v2824_v53  ;;  %v2826_v48 = vpop.eup %2825 }
 0x23d   :  { %2829 = vrcp.f32 %v785_v12  ;;  %v2828_v1 = vpop.eup %2827 }
 0x23e   :  { %2831 = vrcp.f32 %v786_v23  ;;  %v787_v51 = vadd.f32 1.0, %v2828_v1 }
 0x240   :  { %2833 = vrcp.f32 %v787_v51 }
 0x247   :  { %v2830_v28 = vpop.eup %2829 }
 0x248   :  { %v797_v14 = vmul.f32 %v2830_v28, %v2826_v48  ;;  %v2832_v2 = vpop.eup %2831 }
 0x249   :  { %v796_v19 = vmul.f32 %v2832_v2, %v3598_v21 }
 0x24a   :  { %v2834_v18 = vpop.eup %2833 }
 0x24b   :  { %v3644_v63 = vadd.f32 %v797_v14, %v796_v19 }
 0x24d   :  { %2835 = vtanh.f32 %v3644_v63 }
 0x257   :  { %v2836_v27 = vpop.eup %2835 }
 0x258   :  { %v3647_v36 = vmul.f32 %v2836_v27, %v2834_v18 }
 0x25a   :  { %876 = vmatmul.mubr.f32.vlgmr.msra.gmra.mrb[4].mxu0 %v3647_v36  ;;  %947 = vmatmul.mubr.f32.vlgmr.msra.gmra.mrb[20].mxu1 %v3647_v36 }
 0x25b   :  { %2391 = vmatpush1.bf16.msra.mxu0 %v3000_v13  ;;  %2423 = vmatpush1.bf16.msra.mxu1 %v3400_v61 }
 0x25c   :  { %2393 = vmatprep.subr.bf16.mxu0 %v3022_v22  ;;  %2425 = vmatprep.subr.bf16.mxu1 %v3403_v62 }
 0x25d   :  { %1056 = vmatprep.mubr.f32.mxu0 %v3972_v5  ;;  %1127 = vmatprep.mubr.f32.mxu1 %v3972_v5 }
 0x25f   :  { %2395 = vmatpush1.bf16.msra.mxu0 %v3033_v26  ;;  %2427 = vmatpush1.bf16.msra.mxu1 %v3422_v7 }
 0x260   :  { %2397 = vmatprep.subr.bf16.mxu0 %v3054_v35  ;;  %2429 = vmatprep.subr.bf16.mxu1 %v3425_v8 }
 0x263   :  { %2399 = vmatpush1.bf16.msra.mxu0 %v3066_v39  ;;  %2431 = vmatpush1.bf16.msra.mxu1 %v3442_v16 }
 0x264   :  { %2401 = vmatprep.subr.bf16.mxu0 %v3078_v44  ;;  %2433 = vmatprep.subr.bf16.mxu1 %v3445_v17 }
 0x267   :  { %2403 = vmatpush1.bf16.msra.mxu0 %v3099_v52  ;;  %2435 = vmatpush1.bf16.msra.mxu1 %v3462_v24 }
 0x268   :  { %2405 = vmatprep.subr.bf16.mxu0 %v3111_v57  ;;  %2437 = vmatprep.subr.bf16.mxu1 %v3465_v25 }
 0x26b   :  { %2407 = vmatpush1.bf16.msra.mxu0 %v3129_v0  ;;  %2439 = vmatpush1.bf16.msra.mxu1 %v3482_v32 }
 0x26c   :  { %2409 = vmatprep.subr.bf16.mxu0 %v3141_v6  ;;  %2441 = vmatprep.subr.bf16.mxu1 %v3485_v33 }
 0x26f   :  { %2411 = vmatpush1.bf16.msra.mxu0 %v3159_v15  ;;  %2443 = vmatpush1.bf16.msra.mxu1 %v3502_v40 }
 0x270   :  { %2413 = vmatprep.subr.bf16.mxu0 %v3171_v20  ;;  %2445 = vmatprep.subr.bf16.mxu1 %v3505_v43 }
 0x273   :  { %2415 = vmatpush1.bf16.msra.mxu0 %v3189_v29  ;;  %2447 = vmatpush1.bf16.msra.mxu1 %v3522_v49 }
 0x274   :  { %2417 = vmatprep.subr.bf16.mxu0 %v3201_v34  ;;  %2449 = vmatprep.subr.bf16.mxu1 %v3525_v50 }
 0x277   :  { %2419 = vmatpush1.bf16.msra.mxu0 %v3213_v41  ;;  %2451 = vmatpush1.bf16.msra.mxu1 %v3536_v31 }
 0x278   :  { %2453 = vmatprep.subr.bf16.mxu0 %v2989_v9  ;;  %2485 = vmatprep.subr.bf16.mxu1 %v3382_v54 }
 0x32d   :  { %v877_v1 = vpop.f32.mrb[4].mxu0  ;;  %v948_v21 = vpop.f32.mrb[20].mxu1 }
 0x32e   :  { %v953_v11 = vadd.f32 %v877_v1, %v3568_v30  ;;  %v879_v45 = vpop.f32.mrb[5].mxu0  ;;  %v950_v59 = vpop.f32.mrb[21].mxu1  ;;  %v2776_v48 = vadd.f32 %v948_v21, %v3592_v60 }
 0x32f   :  { %v954_v12 = vadd.f32 %v879_v45, %v3570_v37  ;;  %v2777_v28 = vadd.f32 %v950_v59, %v3594_v3 }
 0x330   :  { %v2045_v53 = vmul.f32 -1.442695, %v953_v11  ;;  %v2047_v14 = vmul.f32 -1.442695, %v2776_v48 }
 0x331   :  { %v2046_v23 = vmul.f32 -1.442695, %v954_v12 }
 0x332   :  { %2837 = vpow2.f32 %v2045_v53 }
 0x333   :  { %2839 = vpow2.f32 %v2046_v23 }
 0x334   :  { %2841 = vtanh.f32 %v2777_v28 }
 0x335   :  { %2843 = vpow2.f32 %v2047_v14 }
 0x33c   :  { %v2838_v2 = vpop.eup %2837 }
 0x33d   :  { %v966_v51 = vadd.f32 1.0, %v2838_v2  ;;  %v2840_v19 = vpop.eup %2839 }
 0x33e   :  { %v967_v30 = vadd.f32 1.0, %v2840_v19  ;;  %v2842_v18 = vpop.eup %2841 }
 0x33f   :  { %2845 = vrcp.f32 %v966_v51  ;;  %v2844_v27 = vpop.eup %2843 }
 0x340   :  { %2847 = vrcp.f32 %v967_v30  ;;  %v968_v45 = vadd.f32 1.0, %v2844_v27 }
 0x342   :  { %2849 = vrcp.f32 %v968_v45 }
 0x349   :  { %v2846_v37 = vpop.eup %2845 }
 0x34a   :  { %v978_v1 = vmul.f32 %v2846_v37, %v2842_v18  ;;  %v2848_v11 = vpop.eup %2847 }
 0x34b   :  { %v977_v12 = vmul.f32 %v2848_v11, %v3644_v63 }
 0x34c   :  { %v2850_v59 = vpop.eup %2849 }
 0x34d   :  { %v3690_v21 = vadd.f32 %v978_v1, %v977_v12 }
 0x34f   :  { %2851 = vtanh.f32 %v3690_v21 }
 0x359   :  { %v2852_v53 = vpop.eup %2851 }
 0x35a   :  { %v3693_v23 = vmul.f32 %v2852_v53, %v2850_v59 }
 0x35c   :  { %1057 = vmatmul.mubr.f32.vlgmr.msra.gmra.mrb[6].mxu0 %v3693_v23  ;;  %1128 = vmatmul.mubr.f32.vlgmr.msra.gmra.mrb[22].mxu1 %v3693_v23 }
 0x35d   :  { %2455 = vmatpush1.bf16.msra.mxu0 %v3000_v13  ;;  %2487 = vmatpush1.bf16.msra.mxu1 %v3400_v61 }
 0x35e   :  { %2457 = vmatprep.subr.bf16.mxu0 %v3022_v22  ;;  %2489 = vmatprep.subr.bf16.mxu1 %v3403_v62 }
 0x35f   :  { %1237 = vmatprep.mubr.f32.mxu0 %v3972_v5  ;;  %1308 = vmatprep.mubr.f32.mxu1 %v3972_v5 }
 0x361   :  { %2459 = vmatpush1.bf16.msra.mxu0 %v3033_v26  ;;  %2491 = vmatpush1.bf16.msra.mxu1 %v3422_v7 }
 0x362   :  { %2461 = vmatprep.subr.bf16.mxu0 %v3054_v35  ;;  %2493 = vmatprep.subr.bf16.mxu1 %v3425_v8 }
 0x365   :  { %2463 = vmatpush1.bf16.msra.mxu0 %v3066_v39  ;;  %2495 = vmatpush1.bf16.msra.mxu1 %v3442_v16 }
 0x366   :  { %2465 = vmatprep.subr.bf16.mxu0 %v3078_v44  ;;  %2497 = vmatprep.subr.bf16.mxu1 %v3445_v17 }
 0x369   :  { %2467 = vmatpush1.bf16.msra.mxu0 %v3099_v52  ;;  %2499 = vmatpush1.bf16.msra.mxu1 %v3462_v24 }
 0x36a   :  { %2469 = vmatprep.subr.bf16.mxu0 %v3111_v57  ;;  %2501 = vmatprep.subr.bf16.mxu1 %v3465_v25 }
 0x36d   :  { %2471 = vmatpush1.bf16.msra.mxu0 %v3129_v0  ;;  %2503 = vmatpush1.bf16.msra.mxu1 %v3482_v32 }
 0x36e   :  { %2473 = vmatprep.subr.bf16.mxu0 %v3141_v6  ;;  %2505 = vmatprep.subr.bf16.mxu1 %v3485_v33 }
 0x371   :  { %2475 = vmatpush1.bf16.msra.mxu0 %v3159_v15  ;;  %2507 = vmatpush1.bf16.msra.mxu1 %v3502_v40 }
 0x372   :  { %2477 = vmatprep.subr.bf16.mxu0 %v3171_v20  ;;  %2509 = vmatprep.subr.bf16.mxu1 %v3505_v43 }
 0x375   :  { %2479 = vmatpush1.bf16.msra.mxu0 %v3189_v29  ;;  %2511 = vmatpush1.bf16.msra.mxu1 %v3522_v49 }
 0x376   :  { %2481 = vmatprep.subr.bf16.mxu0 %v3201_v34  ;;  %2513 = vmatprep.subr.bf16.mxu1 %v3525_v50 }
 0x379   :  { %2483 = vmatpush1.bf16.msra.mxu0 %v3213_v41  ;;  %2515 = vmatpush1.bf16.msra.mxu1 %v3536_v31 }
 0x37a   :  { %2517 = vmatprep.subr.bf16.mxu0 %v2989_v9  ;;  %2549 = vmatprep.subr.bf16.mxu1 %v3382_v54 }
 0x42f   :  { %v1058_v63 = vpop.f32.mrb[6].mxu0  ;;  %v1129_v48 = vpop.f32.mrb[22].mxu1 }
 0x430   :  { %v1134_v28 = vadd.f32 %v1058_v63, %v3572_v38  ;;  %v1060_v14 = vpop.f32.mrb[7].mxu0  ;;  %v1131_v2 = vpop.f32.mrb[23].mxu1  ;;  %v2778_v18 = vadd.f32 %v1129_v48, %v3592_v60 }
 0x431   :  { %v1135_v51 = vadd.f32 %v1060_v14, %v3574_v46  ;;  %v2779_v27 = vadd.f32 %v1131_v2, %v3594_v3 }
 0x432   :  { %v2048_v19 = vmul.f32 -1.442695, %v1134_v28  ;;  %v2050_v37 = vmul.f32 -1.442695, %v2778_v18 }
 0x433   :  { %v2049_v30 = vmul.f32 -1.442695, %v1135_v51 }
 0x434   :  { %2853 = vpow2.f32 %v2048_v19 }
 0x435   :  { %2855 = vpow2.f32 %v2049_v30 }
 0x436   :  { %2857 = vtanh.f32 %v2779_v27 }
 0x437   :  { %2859 = vpow2.f32 %v2050_v37 }
 0x43e   :  { %v2854_v1 = vpop.eup %2853 }
 0x43f   :  { %v1147_v11 = vadd.f32 1.0, %v2854_v1  ;;  %v2856_v45 = vpop.eup %2855 }
 0x440   :  { %v1148_v38 = vadd.f32 1.0, %v2856_v45  ;;  %v2858_v12 = vpop.eup %2857 }
 0x441   :  { %2861 = vrcp.f32 %v1147_v11  ;;  %v2860_v59 = vpop.eup %2859 }
 0x442   :  { %2863 = vrcp.f32 %v1148_v38  ;;  %v1149_v28 = vadd.f32 1.0, %v2860_v59 }
 0x444   :  { %2865 = vrcp.f32 %v1149_v28 }
 0x44b   :  { %v2862_v46 = vpop.eup %2861 }
 0x44c   :  { %v1159_v53 = vmul.f32 %v2862_v46, %v2858_v12  ;;  %v2864_v63 = vpop.eup %2863 }
 0x44d   :  { %v1158_v14 = vmul.f32 %v2864_v63, %v3690_v21 }
 0x44e   :  { %v2866_v2 = vpop.eup %2865 }
 0x44f   :  { %v3736_v48 = vadd.f32 %v1159_v53, %v1158_v14 }
 0x451   :  { %2867 = vtanh.f32 %v3736_v48 }
 0x45b   :  { %v2868_v51 = vpop.eup %2867 }
 0x45c   :  { %v3739_v19 = vmul.f32 %v2868_v51, %v2866_v2 }
 0x45e   :  { %1238 = vmatmul.mubr.f32.vlgmr.msra.gmra.mrb[8].mxu0 %v3739_v19  ;;  %1309 = vmatmul.mubr.f32.vlgmr.msra.gmra.mrb[24].mxu1 %v3739_v19 }
 0x45f   :  { %2519 = vmatpush1.bf16.msra.mxu0 %v3000_v13  ;;  %2551 = vmatpush1.bf16.msra.mxu1 %v3400_v61 }
 0x460   :  { %2521 = vmatprep.subr.bf16.mxu0 %v3022_v22  ;;  %2553 = vmatprep.subr.bf16.mxu1 %v3403_v62 }
 0x461   :  { %1418 = vmatprep.mubr.f32.mxu0 %v3972_v5  ;;  %1489 = vmatprep.mubr.f32.mxu1 %v3972_v5 }
 0x463   :  { %2523 = vmatpush1.bf16.msra.mxu0 %v3033_v26  ;;  %2555 = vmatpush1.bf16.msra.mxu1 %v3422_v7 }
 0x464   :  { %2525 = vmatprep.subr.bf16.mxu0 %v3054_v35  ;;  %2557 = vmatprep.subr.bf16.mxu1 %v3425_v8 }
 0x467   :  { %2527 = vmatpush1.bf16.msra.mxu0 %v3066_v39  ;;  %2559 = vmatpush1.bf16.msra.mxu1 %v3442_v16 }
 0x468   :  { %2529 = vmatprep.subr.bf16.mxu0 %v3078_v44  ;;  %2561 = vmatprep.subr.bf16.mxu1 %v3445_v17 }
 0x46b   :  { %2531 = vmatpush1.bf16.msra.mxu0 %v3099_v52  ;;  %2563 = vmatpush1.bf16.msra.mxu1 %v3462_v24 }
 0x46c   :  { %2533 = vmatprep.subr.bf16.mxu0 %v3111_v57  ;;  %2565 = vmatprep.subr.bf16.mxu1 %v3465_v25 }
 0x46f   :  { %2535 = vmatpush1.bf16.msra.mxu0 %v3129_v0  ;;  %2567 = vmatpush1.bf16.msra.mxu1 %v3482_v32 }
 0x470   :  { %2537 = vmatprep.subr.bf16.mxu0 %v3141_v6  ;;  %2569 = vmatprep.subr.bf16.mxu1 %v3485_v33 }
 0x473   :  { %2539 = vmatpush1.bf16.msra.mxu0 %v3159_v15  ;;  %2571 = vmatpush1.bf16.msra.mxu1 %v3502_v40 }
 0x474   :  { %2541 = vmatprep.subr.bf16.mxu0 %v3171_v20  ;;  %2573 = vmatprep.subr.bf16.mxu1 %v3505_v43 }
 0x477   :  { %2543 = vmatpush1.bf16.msra.mxu0 %v3189_v29  ;;  %2575 = vmatpush1.bf16.msra.mxu1 %v3522_v49 }
 0x478   :  { %2545 = vmatprep.subr.bf16.mxu0 %v3201_v34  ;;  %2577 = vmatprep.subr.bf16.mxu1 %v3525_v50 }
 0x47b   :  { %2547 = vmatpush1.bf16.msra.mxu0 %v3213_v41  ;;  %2579 = vmatpush1.bf16.msra.mxu1 %v3536_v31 }
 0x47c   :  { %2581 = vmatprep.subr.bf16.mxu0 %v2989_v9  ;;  %2613 = vmatprep.subr.bf16.mxu1 %v3382_v54 }
 0x531   :  { %v1239_v21 = vpop.f32.mrb[8].mxu0  ;;  %v1310_v30 = vpop.f32.mrb[24].mxu1 }
 0x532   :  { %v1315_v18 = vadd.f32 %v1239_v21, %v3576_v47  ;;  %v1241_v27 = vpop.f32.mrb[9].mxu0  ;;  %v1312_v37 = vpop.f32.mrb[25].mxu1  ;;  %v2780_v38 = vadd.f32 %v1310_v30, %v3592_v60 }
 0x533   :  { %v1316_v1 = vadd.f32 %v1241_v27, %v3578_v55  ;;  %v2781_v12 = vadd.f32 %v1312_v37, %v3594_v3 }
 0x534   :  { %v2051_v11 = vmul.f32 -1.442695, %v1315_v18  ;;  %v2053_v59 = vmul.f32 -1.442695, %v2780_v38 }
 0x535   :  { %v2052_v45 = vmul.f32 -1.442695, %v1316_v1 }
 0x536   :  { %2869 = vpow2.f32 %v2051_v11 }
 0x537   :  { %2871 = vpow2.f32 %v2052_v45 }
 0x538   :  { %2873 = vtanh.f32 %v2781_v12 }
 0x539   :  { %2875 = vpow2.f32 %v2053_v59 }
 0x540   :  { %v2870_v46 = vpop.eup %2869 }
 0x541   :  { %v1328_v53 = vadd.f32 1.0, %v2870_v46  ;;  %v2872_v63 = vpop.eup %2871 }
 0x542   :  { %v1329_v47 = vadd.f32 1.0, %v2872_v63  ;;  %v2874_v28 = vpop.eup %2873 }
 0x543   :  { %2877 = vrcp.f32 %v1328_v53  ;;  %v2876_v14 = vpop.eup %2875 }
 0x544   :  { %2879 = vrcp.f32 %v1329_v47  ;;  %v1330_v21 = vadd.f32 1.0, %v2876_v14 }
 0x546   :  { %2881 = vrcp.f32 %v1330_v21 }
 0x54d   :  { %v2878_v55 = vpop.eup %2877 }
 0x54e   :  { %v1340_v2 = vmul.f32 %v2878_v55, %v2874_v28  ;;  %v2880_v51 = vpop.eup %2879 }
 0x54f   :  { %v1339_v18 = vmul.f32 %v2880_v51, %v3736_v48 }
 0x550   :  { %v2882_v27 = vpop.eup %2881 }
 0x551   :  { %v3782_v30 = vadd.f32 %v1340_v2, %v1339_v18 }
 0x553   :  { %2883 = vtanh.f32 %v3782_v30 }
 0x55d   :  { %v2884_v37 = vpop.eup %2883 }
 0x55e   :  { %v3785_v1 = vmul.f32 %v2884_v37, %v2882_v27 }
 0x560   :  { %1419 = vmatmul.mubr.f32.vlgmr.msra.gmra.mrb[10].mxu0 %v3785_v1  ;;  %1490 = vmatmul.mubr.f32.vlgmr.msra.gmra.mrb[26].mxu1 %v3785_v1 }
 0x561   :  { %2583 = vmatpush1.bf16.msra.mxu0 %v3000_v13  ;;  %2615 = vmatpush1.bf16.msra.mxu1 %v3400_v61 }
 0x562   :  { %2585 = vmatprep.subr.bf16.mxu0 %v3022_v22  ;;  %2617 = vmatprep.subr.bf16.mxu1 %v3403_v62 }
 0x563   :  { %1599 = vmatprep.mubr.f32.mxu0 %v3972_v5  ;;  %1670 = vmatprep.mubr.f32.mxu1 %v3972_v5 }
 0x565   :  { %2587 = vmatpush1.bf16.msra.mxu0 %v3033_v26  ;;  %2619 = vmatpush1.bf16.msra.mxu1 %v3422_v7 }
 0x566   :  { %2589 = vmatprep.subr.bf16.mxu0 %v3054_v35  ;;  %2621 = vmatprep.subr.bf16.mxu1 %v3425_v8 }
 0x569   :  { %2591 = vmatpush1.bf16.msra.mxu0 %v3066_v39  ;;  %2623 = vmatpush1.bf16.msra.mxu1 %v3442_v16 }
 0x56a   :  { %2593 = vmatprep.subr.bf16.mxu0 %v3078_v44  ;;  %2625 = vmatprep.subr.bf16.mxu1 %v3445_v17 }
 0x56d   :  { %2595 = vmatpush1.bf16.msra.mxu0 %v3099_v52  ;;  %2627 = vmatpush1.bf16.msra.mxu1 %v3462_v24 }
 0x56e   :  { %2597 = vmatprep.subr.bf16.mxu0 %v3111_v57  ;;  %2629 = vmatprep.subr.bf16.mxu1 %v3465_v25 }
 0x571   :  { %2599 = vmatpush1.bf16.msra.mxu0 %v3129_v0  ;;  %2631 = vmatpush1.bf16.msra.mxu1 %v3482_v32 }
 0x572   :  { %2601 = vmatprep.subr.bf16.mxu0 %v3141_v6  ;;  %2633 = vmatprep.subr.bf16.mxu1 %v3485_v33 }
 0x575   :  { %2603 = vmatpush1.bf16.msra.mxu0 %v3159_v15  ;;  %2635 = vmatpush1.bf16.msra.mxu1 %v3502_v40 }
 0x576   :  { %2605 = vmatprep.subr.bf16.mxu0 %v3171_v20  ;;  %2637 = vmatprep.subr.bf16.mxu1 %v3505_v43 }
 0x579   :  { %2607 = vmatpush1.bf16.msra.mxu0 %v3189_v29  ;;  %2639 = vmatpush1.bf16.msra.mxu1 %v3522_v49 }
 0x57a   :  { %2609 = vmatprep.subr.bf16.mxu0 %v3201_v34  ;;  %2641 = vmatprep.subr.bf16.mxu1 %v3525_v50 }
 0x57d   :  { %2611 = vmatpush1.bf16.msra.mxu0 %v3213_v41  ;;  %2643 = vmatpush1.bf16.msra.mxu1 %v3536_v31 }
 0x57e   :  { %2645 = vmatprep.subr.bf16.mxu0 %v2989_v9  ;;  %2677 = vmatprep.subr.bf16.mxu1 %v3382_v54 }
 0x633   :  { %v1420_v48 = vpop.f32.mrb[10].mxu0  ;;  %v1491_v11 = vpop.f32.mrb[26].mxu1 }
 0x634   :  { %v1496_v45 = vadd.f32 %v1420_v48, %v3580_v58  ;;  %v1422_v38 = vpop.f32.mrb[11].mxu0  ;;  %v1493_v12 = vpop.f32.mrb[27].mxu1  ;;  %v2782_v63 = vadd.f32 %v1491_v11, %v3592_v60 }
 0x635   :  { %v1497_v59 = vadd.f32 %v1422_v38, %v3582_v4  ;;  %v2783_v47 = vadd.f32 %v1493_v12, %v3594_v3  ;;  %v1903_v38 = vld [vmem:[%s3965_s4 + $0x20] sm:$0xff]  ;;  %v1904_v12 = vld [vmem:[%s3965_s4 + $0x28] sm:$0xff] }
 0x636   :  { %v2054_v46 = vmul.f32 -1.442695, %v1496_v45  ;;  %v2056_v28 = vmul.f32 -1.442695, %v2782_v63 }
 0x637   :  { %v2055_v53 = vmul.f32 -1.442695, %v1497_v59  ;;  %v2716_v59 = vpack.c.bf16 %v1904_v12, %v1903_v38 }
 0x638   :  { %2885 = vpow2.f32 %v2054_v46  ;;  %v1905_v46 = vld [vmem:[%s3965_s4 + $0x30] sm:$0xff] }
 0x639   :  { %2887 = vpow2.f32 %v2055_v53  ;;  %v1906_v53 = vld [vmem:[%s3965_s4 + $0x38] sm:$0xff] }
 0x63a   :  { %2889 = vtanh.f32 %v2783_v47  ;;  %v2720_v63 = vpack.c.bf16 %v1906_v53, %v1905_v46  ;;  %v1907_v47 = vld [vmem:[%s3965_s4 + $0x40] sm:$0xff] }
 0x63b   :  { %2891 = vpow2.f32 %v2056_v28 }
 0x642   :  { %v2886_v9 = vpop.eup %2885 }
 0x643   :  { %v1509_v14 = vadd.f32 1.0, %v2886_v9  ;;  %v2888_v54 = vpop.eup %2887  ;;  %v1909_v9 = vld [vmem:[%s3965_s4 + $0x50] sm:$0xff] }
 0x644   :  { %v1510_v58 = vadd.f32 1.0, %v2888_v54  ;;  %v2890_v55 = vpop.eup %2889 }
 0x645   :  { %2893 = vrcp.f32 %v1509_v14  ;;  %v2892_v2 = vpop.eup %2891  ;;  %v1910_v14 = vld [vmem:[%s3965_s4 + $0x58] sm:$0xff] }
 0x646   :  { %2895 = vrcp.f32 %v1510_v58  ;;  %v1511_v18 = vadd.f32 1.0, %v2892_v2  ;;  %v2728_v54 = vpack.c.bf16 %v1910_v14, %v1909_v9  ;;  %v1911_v58 = vld [vmem:[%s3965_s4 + $0x60] sm:$0xff] }
 0x648   :  { %2897 = vrcp.f32 %v1511_v18 }
 0x64f   :  { %v2894_v4 = vpop.eup %2893 }
 0x650   :  { %v1521_v51 = vmul.f32 %v2894_v4, %v2890_v55  ;;  %v2896_v21 = vpop.eup %2895  ;;  %v1912_v55 = vld [vmem:[%s3965_s4 + $0x68] sm:$0xff]  ;;  %v1913_v4 = vld [vmem:[%s3965_s4 + $0x70] sm:$0xff] }
 0x651   :  { %v1520_v27 = vmul.f32 %v2896_v21, %v3782_v30  ;;  %v2732_v2 = vpack.c.bf16 %v1912_v55, %v1911_v58 }
 0x652   :  { %v2898_v48 = vpop.eup %2897 }
 0x653   :  { %v3828_v37 = vadd.f32 %v1521_v51, %v1520_v27  ;;  %v1914_v51 = vld [vmem:[%s3965_s4 + $0x78] sm:$0xff] }
 0x654   :  { %v2736_v21 = vpack.c.bf16 %v1914_v51, %v1913_v4 }
 0x655   :  { %2899 = vtanh.f32 %v3828_v37 }
 0x65f   :  { %v2900_v11 = vpop.eup %2899 }
 0x660   :  { %v3831_v45 = vmul.f32 %v2900_v11, %v2898_v48 }
 0x662   :  { %1600 = vmatmul.mubr.f32.vlgmr.msra.gmra.mrb[12].mxu0 %v3831_v45  ;;  %1671 = vmatmul.mubr.f32.vlgmr.msra.gmra.mrb[28].mxu1 %v3831_v45 }
 0x663   :  { %2647 = vmatpush1.bf16.msra.mxu0 %v3000_v13  ;;  %2679 = vmatpush1.bf16.msra.mxu1 %v3400_v61  ;;  %v1899_v13 = vld [vmem:[%s3965_s4] sm:$0xff] }
 0x664   :  { %2649 = vmatprep.subr.bf16.mxu0 %v3022_v22  ;;  %2681 = vmatprep.subr.bf16.mxu1 %v3403_v62  ;;  %v1900_v22 = vld [vmem:[%s3965_s4 + $0x8] sm:$0xff] }
 0x665   :  { %1780 = vmatprep.mubr.f32.mxu0 %v3972_v5  ;;  %1851 = vmatprep.mubr.f32.mxu1 %v3972_v5 }
 0x667   :  { %2651 = vmatpush1.bf16.msra.mxu0 %v3033_v26  ;;  %2683 = vmatpush1.bf16.msra.mxu1 %v3422_v7  ;;  %v2708_v26 = vpack.c.bf16 %v1900_v22, %v1899_v13  ;;  %v3974_v13 = vld [vmem:[#allocation7_spill] sm:$0xff] }
 0x668   :  { %2653 = vmatprep.subr.bf16.mxu0 %v3054_v35  ;;  %2685 = vmatprep.subr.bf16.mxu1 %v3425_v8 }
 0x66b   :  { %2655 = vmatpush1.bf16.msra.mxu0 %v3066_v39  ;;  %2687 = vmatpush1.bf16.msra.mxu1 %v3442_v16 }
 0x66c   :  { %2657 = vmatprep.subr.bf16.mxu0 %v3078_v44  ;;  %2689 = vmatprep.subr.bf16.mxu1 %v3445_v17 }
 0x66f   :  { %2659 = vmatpush1.bf16.msra.mxu0 %v3099_v52  ;;  %2691 = vmatpush1.bf16.msra.mxu1 %v3462_v24 }
 0x670   :  { %2661 = vmatprep.subr.bf16.mxu0 %v3111_v57  ;;  %2693 = vmatprep.subr.bf16.mxu1 %v3465_v25 }
 0x673   :  { %2663 = vmatpush1.bf16.msra.mxu0 %v3129_v0  ;;  %2695 = vmatpush1.bf16.msra.mxu1 %v3482_v32  ;;  %v3973_v0 = vld [vmem:[#allocation6_spill] sm:$0xff] }
 0x674   :  { %2665 = vmatprep.subr.bf16.mxu0 %v3141_v6  ;;  %2697 = vmatprep.subr.bf16.mxu1 %v3485_v33 }
 0x677   :  { %2667 = vmatpush1.bf16.msra.mxu0 %v3159_v15  ;;  %2699 = vmatpush1.bf16.msra.mxu1 %v3502_v40 }
 0x678   :  { %2669 = vmatprep.subr.bf16.mxu0 %v3171_v20  ;;  %2701 = vmatprep.subr.bf16.mxu1 %v3505_v43 }
 0x67b   :  { %2671 = vmatpush1.bf16.msra.mxu0 %v3189_v29  ;;  %2703 = vmatpush1.bf16.msra.mxu1 %v3522_v49  ;;  %v1901_v49 = vld [vmem:[%s3965_s4 + $0x10] sm:$0xff] }
 0x67c   :  { %2673 = vmatprep.subr.bf16.mxu0 %v3201_v34  ;;  %2705 = vmatprep.subr.bf16.mxu1 %v3525_v50  ;;  %v1902_v50 = vld [vmem:[%s3965_s4 + $0x18] sm:$0xff] }
 0x67d   :  { %v2712_v30 = vpack.c.bf16 %v1902_v50, %v1901_v49 }
 0x67f   :  { %2675 = vmatpush1.bf16.msra.mxu0 %v3213_v41  ;;  %2707 = vmatpush1.bf16.msra.mxu1 %v3536_v31 }
 0x680   :  { %2709 = vmatprep.subr.bf16.mxu0 %v2708_v26 }
 0x735   :  { %v1601_v35 = vpop.f32.mrb[12].mxu0  ;;  %v1672_v39 = vpop.f32.mrb[28].mxu1 }
 0x736   :  { %v1677_v44 = vadd.f32 %v1601_v35, %v3584_v10  ;;  %v1603_v52 = vpop.f32.mrb[13].mxu0  ;;  %v1674_v57 = vpop.f32.mrb[29].mxu1  ;;  %v2784_v29 = vadd.f32 %v1672_v39, %v3592_v60 }
 0x737   :  { %v1678_v6 = vadd.f32 %v1603_v52, %v3973_v0  ;;  %v2785_v34 = vadd.f32 %v1674_v57, %v3594_v3 }
 0x738   :  { %v2057_v15 = vmul.f32 -1.442695, %v1677_v44  ;;  %v2059_v41 = vmul.f32 -1.442695, %v2784_v29 }
 0x739   :  { %v2058_v20 = vmul.f32 -1.442695, %v1678_v6 }
 0x73a   :  { %2901 = vpow2.f32 %v2057_v15 }
 0x73b   :  { %2903 = vpow2.f32 %v2058_v20 }
 0x73c   :  { %2905 = vtanh.f32 %v2785_v34 }
 0x73d   :  { %2907 = vpow2.f32 %v2059_v41 }
 0x744   :  { %v2902_v61 = vpop.eup %2901 }
 0x745   :  { %v1690_v62 = vadd.f32 1.0, %v2902_v61  ;;  %v2904_v7 = vpop.eup %2903 }
 0x746   :  { %v1691_v8 = vadd.f32 1.0, %v2904_v7  ;;  %v2906_v16 = vpop.eup %2905 }
 0x747   :  { %2909 = vrcp.f32 %v1690_v62  ;;  %v2908_v17 = vpop.eup %2907 }
 0x748   :  { %2911 = vrcp.f32 %v1691_v8  ;;  %v1692_v33 = vadd.f32 1.0, %v2908_v17 }
 0x74a   :  { %2913 = vrcp.f32 %v1692_v33 }
 0x751   :  { %v2910_v24 = vpop.eup %2909 }
 0x752   :  { %v1702_v25 = vmul.f32 %v2910_v24, %v2906_v16  ;;  %v2912_v32 = vpop.eup %2911 }
 0x753   :  { %v1701_v40 = vmul.f32 %v2912_v32, %v3828_v37 }
 0x754   :  { %v2914_v31 = vpop.eup %2913 }
 0x755   :  { %v3878_v43 = vadd.f32 %v1702_v25, %v1701_v40 }
 0x757   :  { %2915 = vtanh.f32 %v3878_v43 }
 0x761   :  { %v2916_v10 = vpop.eup %2915 }
 0x762   :  { %v1705_v5 = vmul.f32 %v2916_v10, %v2914_v31 }
 0x764   :  { %1781 = vmatmul.mubr.f32.vlgmr.msra.gmra.mrb[14].mxu0 %v1705_v5  ;;  %1852 = vmatmul.mubr.f32.vlgmr.msra.gmra.mrb[30].mxu1 %v1705_v5 }
 0x765   :  { %2711 = vmatpush3.bf16.msra.mxu0 %v2708_v26  ;;  %2120 = vmatprep.mubr.f32.mxu0 %v3601_v42  ;;  %v1908_v42 = vld [vmem:[%s3965_s4 + $0x48] sm:$0xff] }
 0x766   :  { %2713 = vmatprep.subr.bf16.mxu0 %v2712_v30  ;;  %v2724_v28 = vpack.c.bf16 %v1908_v42, %v1907_v47 }
 0x769   :  { %2715 = vmatpush3.bf16.msra.mxu0 %v2712_v30 }
 0x76a   :  { %2717 = vmatprep.subr.bf16.mxu0 %v2716_v59 }
 0x76d   :  { %2719 = vmatpush3.bf16.msra.mxu0 %v2716_v59 }
 0x76e   :  { %2721 = vmatprep.subr.bf16.mxu0 %v2720_v63 }
 0x771   :  { %2723 = vmatpush3.bf16.msra.mxu0 %v2720_v63 }
 0x772   :  { %2725 = vmatprep.subr.bf16.mxu0 %v2724_v28 }
 0x775   :  { %2727 = vmatpush3.bf16.msra.mxu0 %v2724_v28 }
 0x776   :  { %2729 = vmatprep.subr.bf16.mxu0 %v2728_v54 }
 0x779   :  { %2731 = vmatpush3.bf16.msra.mxu0 %v2728_v54 }
 0x77a   :  { %2733 = vmatprep.subr.bf16.mxu0 %v2732_v2 }
 0x77d   :  { %2735 = vmatpush3.bf16.msra.mxu0 %v2732_v2 }
 0x77e   :  { %2737 = vmatprep.subr.bf16.mxu0 %v2736_v21 }
 0x781   :  { %2739 = vmatpush3.bf16.msra.mxu0 %v2736_v21 }
 0x784   :  { %2121 = vmatmul.mubr.f32.vlgmr.msra.gmra.mrb[16].mxu0 %v3647_v36 }
 0x785   :  { %2123 = vmatprep.mubr.f32.mxu0 %v3693_v23 }
 0x788   :  { %2124 = vmatmul.mubr.f32.gmra.mrb[18].mxu0 %v3739_v19 }
 0x789   :  { %2126 = vmatprep.mubr.f32.mxu0 %v3785_v1 }
 0x78c   :  { %2127 = vmatmul.mubr.f32.gmra.mrb[20].mxu0 %v3831_v45 }
 0x78d   :  { %2129 = vmatprep.mubr.f32.mxu0 %v1705_v5 }
 0x837   :  { %v1782_v18 = vpop.f32.mrb[14].mxu0  ;;  %v1853_v27 = vpop.f32.mrb[30].mxu1 }
 0x838   :  { %v1858_v37 = vadd.f32 %v1782_v18, %v3588_v56  ;;  %v1784_v48 = vpop.f32.mrb[15].mxu0  ;;  %v1855_v11 = vpop.f32.mrb[31].mxu1  ;;  %v2786_v36 = vadd.f32 %v1853_v27, %v3592_v60  ;;  %v2063_v60 = vld [vmem:[%s3966_s5] ss:$0 sm:$0xff] }
 0x839   :  { %v1859_v22 = vadd.f32 %v1784_v48, %v3974_v13  ;;  %v2787_v23 = vadd.f32 %v1855_v11, %v3594_v3 }
 0x83a   :  { %v2060_v26 = vmul.f32 -1.442695, %v1858_v37  ;;  %v2062_v19 = vmul.f32 -1.442695, %v2786_v36 }
 0x83b   :  { %v2061_v35 = vmul.f32 -1.442695, %v1859_v22 }
 0x83c   :  { %2917 = vpow2.f32 %v2060_v26 }
 0x83d   :  { %2919 = vpow2.f32 %v2061_v35 }
 0x83e   :  { %2921 = vtanh.f32 %v2787_v23 }
 0x83f   :  { %2923 = vpow2.f32 %v2062_v19 }
 0x846   :  { %v2918_v1 = vpop.eup %2917 }
 0x847   :  { %v1871_v45 = vadd.f32 1.0, %v2918_v1  ;;  %v2920_v39 = vpop.eup %2919 }
 0x848   :  { %v1872_v56 = vadd.f32 1.0, %v2920_v39  ;;  %v2922_v44 = vpop.eup %2921 }
 0x849   :  { %2925 = vrcp.f32 %v1871_v45  ;;  %v2924_v52 = vpop.eup %2923 }
 0x84a   :  { %2927 = vrcp.f32 %v1872_v56  ;;  %v1873_v15 = vadd.f32 1.0, %v2924_v52 }
 0x84c   :  { %2929 = vrcp.f32 %v1873_v15 }
 0x853   :  { %v2926_v57 = vpop.eup %2925 }
 0x854   :  { %v1883_v0 = vmul.f32 %v2926_v57, %v2922_v44  ;;  %v2928_v6 = vpop.eup %2927 }
 0x855   :  { %v1882_v3 = vmul.f32 %v2928_v6, %v3878_v43 }
 0x856   :  { %v2930_v33 = vpop.eup %2929 }
 0x857   :  { %v2122_v20 = vpop.f32.mrb[16].mxu0  ;;  %v1884_v29 = vadd.f32 %v1883_v0, %v1882_v3 }
 0x858   :  { %v1994_v34 = vadd.f32 %v2122_v20, %v2063_v60  ;;  %v1988_v41 = vpop.f32.mrb[17].mxu0 }
 0x859   :  { %v1989_v61 = vadd.f32 %v2063_v60, %v1988_v41  ;;  %2931 = vtanh.f32 %v1884_v29 }
 0x85a   :  { %2028 = vst [vmem:[%s3967_s6 + $0x8] sm:$0xff] %v1994_v34 }
 0x85b   :  { %2027 = vst [vmem:[%s3967_s6] sm:$0xff] %v1989_v61  ;;  %v2125_v62 = vpop.f32.mrb[18].mxu0 }
 0x85c   :  { %v2004_v7 = vadd.f32 %v2125_v62, %v2063_v60  ;;  %v1998_v8 = vpop.f32.mrb[19].mxu0 }
 0x85d   :  { %v1999_v16 = vadd.f32 %v2063_v60, %v1998_v8 }
 0x85e   :  { %2030 = vst [vmem:[%s3967_s6 + $0x18] sm:$0xff] %v2004_v7 }
 0x85f   :  { %2029 = vst [vmem:[%s3967_s6 + $0x10] sm:$0xff] %v1999_v16  ;;  %v2128_v17 = vpop.f32.mrb[20].mxu0 }
 0x860   :  { %v2014_v24 = vadd.f32 %v2128_v17, %v2063_v60  ;;  %v2008_v25 = vpop.f32.mrb[21].mxu0 }
 0x861   :  { %v2009_v32 = vadd.f32 %v2063_v60, %v2008_v25 }
 0x862   :  { %2032 = vst [vmem:[%s3967_s6 + $0x28] sm:$0xff] %v2014_v24 }
 0x863   :  { %2031 = vst [vmem:[%s3967_s6 + $0x20] sm:$0xff] %v2009_v32  ;;  %v2932_v40 = vpop.eup %2931 }
 0x864   :  { %v1886_v43 = vmul.f32 %v2932_v40, %v2930_v33 }
 0x866   :  { %2130 = vmatmul.mubr.f32.gmra.mrb[22].mxu0 %v1886_v43 }
 0x939   :  { %v2131_v49 = vpop.f32.mrb[22].mxu0 }
 0x93a   :  { %v2024_v50 = vadd.f32 %v2131_v49, %v2063_v60  ;;  %v2018_v31 = vpop.f32.mrb[23].mxu0 }
 0x93b   :  { %v2019_v10 = vadd.f32 %v2063_v60, %v2018_v31 }
 0x93c   :  { %2034 = vst [vmem:[%s3967_s6 + $0x38] sm:$0xff] %v2024_v50 }
 0x93d   :  { %2033 = vst [vmem:[%s3967_s6 + $0x30] sm:$0xff] %v2019_v10 }

// kernel: lstm_model_forward.2
= control target key start
LH: loop header
LB: loop body
LE: loop exit
PB: predicated region body
PF: predicated region fallthrough
CT: control target
= control target key end

     0   :  { %9 = vsyncpa [#allocation6], 0  ;;  %s4645_s0 = inlined_call_operand.vmem [shape: f32[8,8,768], index: 0, kind: input, shape index: {}]   ;;  %s4646_s1 = inlined_call_operand.hbm [shape: f32[768,512], index: 1, kind: input, shape index: {}]   ;;  %s4647_s2 = inlined_call_operand.hbm [shape: f32[1,512], index: 2, kind: input, shape index: {}]   ;;  %s4648_s3 = inlined_call_operand.hbm [shape: f32[128,512], index: 3, kind: input, shape index: {}]   ;;  %s4649_s4 = inlined_call_operand.vmem [shape: f32[8,8,128], index: 4, kind: output, shape index: {}]  }
   0x1   :  { %10 = vsyncpa [#allocation8], 0  ;;  %s4001_s15 = smov [#allocation7]   ;;  %s4002_s17 = smov [#allocation5]  }
   0x2   :  { %s31_s16 = sshll.u32 %s4001_s15, 4  ;;  %s18_s18 = sshll.u32 %s4002_s17, 4  ;;  %s32_s16 = int_to_ptr.vmem [resolvable:$true] %s31_s16  ;;  %s4032_s18 = int_to_ptr.vmem [resolvable:$true] %s18_s18 }
   0x3   :  { %s3931_s21 = scalar_lea.hbm %s4647_s2, 64 }
   0x4   :  { %p3932_p0 = scmp.ne.s32.totalorder %s4647_s2, %s3931_s21  ;;  %p3935_p1 = scmp.lt.u32.totalorder %s3931_s21, %s4647_s2 }
   0x6   :  { %p3937_p2 = pnand %p3935_p1, %p3932_p0 }
   0x8   :  { %3940 = shalt.err (!%p3937_p2)
}
   0x9   :  { %s3941_s26 = scalar_lea.vmem %s32_s16, 64  ;;  %p3946_p4 = scmp.lt.s32.totalorder %s32_s16, %s32_s16 }
   0xa   :  { %p3942_p3 = scmp.ne.s32.totalorder %s32_s16, %s3941_s26  ;;  %p3947_p5 = scmp.lt.s32.totalorder %s3941_s26, %s3941_s26 }
   0xc   :  { %p3948_p6 = por %p3947_p5, %p3946_p4 }
   0xe   :  { %p3949_p7 = pnand %p3948_p6, %p3942_p3 }
  0x10   :  { %3952 = shalt.err (!%p3949_p7)
}
  0x11   :  { %34 = dma.hbm_to_vmem [thread:$0]  %s4647_s2, 64, %s32_s16, [#allocation8]  }
  0x12   :  { %s3953_s5 = scalar_lea.hbm %s4646_s1, 49152 }
  0x13   :  { %p3954_p8 = scmp.ne.s32.totalorder %s4646_s1, %s3953_s5  ;;  %p3957_p9 = scmp.lt.u32.totalorder %s3953_s5, %s4646_s1 }
  0x15   :  { %p3959_p10 = pnand %p3957_p9, %p3954_p8 }
  0x17   :  { %3962 = shalt.err (!%p3959_p10)
}
  0x18   :  { %s3963_s10 = scalar_lea.vmem %s4032_s18, 49152  ;;  %p3968_p12 = scmp.lt.s32.totalorder %s4032_s18, %s4032_s18 }
  0x19   :  { %p3964_p11 = scmp.ne.s32.totalorder %s4032_s18, %s3963_s10  ;;  %p3969_p13 = scmp.lt.s32.totalorder %s3963_s10, %s3963_s10 }
  0x1b   :  { %p3970_p0 = por %p3969_p13, %p3968_p12 }
  0x1d   :  { %p3971_p1 = pnand %p3970_p0, %p3964_p11 }
  0x1f   :  { %3974 = shalt.err (!%p3971_p1)
}
  0x20   :  { %s4003_s2 = smov 512   ;;  %s4004_s11 = smov 32  }
  0x21   :  { %24 = dma.hbm_to_vmem [thread:$0]  %s4646_s1, 49152, %s4032_s18, [#allocation6], %s4003_s2, %s4003_s2, %s4004_s11  }
  0x22   :  { %s4005_s14 = smov [#allocation9]   ;;  %s3975_s19 = scalar_lea.hbm %s4648_s3, 8192 }
  0x23   :  { %s40_s15 = sshll.u32 %s4005_s14, 4  ;;  %p3976_p2 = scmp.ne.s32.totalorder %s4648_s3, %s3975_s19  ;;  %s41_s15 = int_to_ptr.vmem [resolvable:$true] %s40_s15 }
  0x24   :  { %p3979_p3 = scmp.lt.u32.totalorder %s3975_s19, %s4648_s3 }
  0x26   :  { %p3981_p4 = pnand %p3979_p3, %p3976_p2 }
  0x28   :  { %3984 = shalt.err (!%p3981_p4)
}
  0x29   :  { %s3985_s24 = scalar_lea.vmem %s41_s15, 8192  ;;  %p3990_p6 = scmp.lt.s32.totalorder %s41_s15, %s41_s15 }
  0x2a   :  { %p3986_p5 = scmp.ne.s32.totalorder %s41_s15, %s3985_s24  ;;  %p3991_p7 = scmp.lt.s32.totalorder %s3985_s24, %s3985_s24 }
  0x2c   :  { %p3992_p8 = por %p3991_p7, %p3990_p6 }
  0x2e   :  { %p3993_p9 = pnand %p3992_p8, %p3986_p5 }
  0x30   :  { %3996 = shalt.err (!%p3993_p9)
}
  0x31   :  { %46 = dma.hbm_to_vmem [thread:$0]  %s4648_s3, 8192, %s41_s15, [#allocation8], %s4003_s2, %s4003_s2, %s4004_s11  }
  0x32   :  { %3997 = dma.done.wait [#allocation6], 49152  }
  0x33   :  { %3998 = vsyncadd [#allocation6], 4294918144 }
  0x34   :  { %3999 = dma.done.wait [#allocation8], 8256  }
  0x35   :  { %4000 = vsyncadd [#allocation8], 4294959040  ;;  %v111_v0 = vld [vmem:[#allocation5 + $0x8] sm:$0xff]  ;;  %v113_v2 = vld [vmem:[#allocation5 + $0x18] sm:$0xff] }
  0x36   :  { %v115_v1 = vld [vmem:[#allocation5 + $0x28] sm:$0xff]  ;;  %v117_v4 = vld [vmem:[#allocation5 + $0x38] sm:$0xff]  ;;  %v110_v5 = vld [vmem:[#allocation5] sm:$0xff] }
  0x37   :  { %v2773_v3 = vpack.c.bf16 %v115_v1, %v111_v0  ;;  %v114_v6 = vld [vmem:[#allocation5 + $0x20] sm:$0xff]  ;;  %v2965_v7 = vpack.c.bf16 %v117_v4, %v113_v2  ;;  %v112_v9 = vld [vmem:[#allocation5 + $0x10] sm:$0xff]  ;;  %v119_v11 = vld [vmem:[#allocation5 + $0x48] sm:$0xff] }
  0x38   :  { %v2775_v8 = vpack.c.bf16 %v114_v6, %v110_v5  ;;  %v116_v10 = vld [vmem:[#allocation5 + $0x30] sm:$0xff]  ;;  %v123_v13 = vld [vmem:[#allocation5 + $0x68] sm:$0xff]  ;;  %v121_v14 = vld [vmem:[#allocation5 + $0x58] sm:$0xff] }
  0x39   :  { %2774 = vmatprep.subr.bf16.mxu0 %v2773_v3  ;;  %v2967_v12 = vpack.c.bf16 %v116_v10, %v112_v9  ;;  %v125_v15 = vld [vmem:[#allocation5 + $0x78] sm:$0xff]  ;;  %2966 = vmatprep.subr.bf16.mxu1 %v2965_v7  ;;  %v2777_v16 = vpack.c.bf16 %v123_v13, %v119_v11  ;;  %v118_v18 = vld [vmem:[#allocation5 + $0x40] sm:$0xff]  ;;  %v120_v20 = vld [vmem:[#allocation5 + $0x50] sm:$0xff] }
  0x3a   :  { %2776 = vmatpush1.bf16.msra.mxu0 %v2775_v8  ;;  %v2969_v17 = vpack.c.bf16 %v125_v15, %v121_v14  ;;  %v122_v19 = vld [vmem:[#allocation5 + $0x60] sm:$0xff]  ;;  %v124_v22 = vld [vmem:[#allocation5 + $0x70] sm:$0xff]  ;;  %v127_v23 = vld [vmem:[#allocation5 + $0x88] sm:$0xff] }
  0x3b   :  { %2968 = vmatpush1.bf16.msra.mxu1 %v2967_v12  ;;  %v2779_v21 = vpack.c.bf16 %v122_v19, %v118_v18  ;;  %v131_v24 = vld [vmem:[#allocation5 + $0xa8] sm:$0xff]  ;;  %2778 = vmatprep.subr.bf16.mxu0 %v2777_v16  ;;  %v2971_v25 = vpack.c.bf16 %v124_v22, %v120_v20  ;;  %v129_v27 = vld [vmem:[#allocation5 + $0x98] sm:$0xff]  ;;  %v126_v29 = vld [vmem:[#allocation5 + $0x80] sm:$0xff] }
  0x3c   :  { %2970 = vmatprep.subr.bf16.mxu1 %v2969_v17  ;;  %v2781_v26 = vpack.c.bf16 %v131_v24, %v127_v23  ;;  %v133_v28 = vld [vmem:[#allocation5 + $0xb8] sm:$0xff]  ;;  %v130_v31 = vld [vmem:[#allocation5 + $0xa0] sm:$0xff]  ;;  %v128_v32 = vld [vmem:[#allocation5 + $0x90] sm:$0xff] }
  0x3d   :  { %v2973_v30 = vpack.c.bf16 %v133_v28, %v129_v27  ;;  %v132_v33 = vld [vmem:[#allocation5 + $0xb0] sm:$0xff]  ;;  %v2783_v34 = vpack.c.bf16 %v130_v31, %v126_v29  ;;  %v135_v35 = vld [vmem:[#allocation5 + $0xc8] sm:$0xff]  ;;  %v137_v37 = vld [vmem:[#allocation5 + $0xd8] sm:$0xff] }
  0x3e   :  { %2780 = vmatpush1.bf16.msra.mxu0 %v2779_v21  ;;  %v139_v36 = vld [vmem:[#allocation5 + $0xe8] sm:$0xff]  ;;  %v2975_v38 = vpack.c.bf16 %v132_v33, %v128_v32  ;;  %v141_v40 = vld [vmem:[#allocation5 + $0xf8] sm:$0xff]  ;;  %v134_v41 = vld [vmem:[#allocation5 + $0xc0] sm:$0xff] }
  0x3f   :  { %2972 = vmatpush1.bf16.msra.mxu1 %v2971_v25  ;;  %2782 = vmatprep.subr.bf16.mxu0 %v2781_v26  ;;  %v2785_v39 = vpack.c.bf16 %v139_v36, %v135_v35  ;;  %v138_v42 = vld [vmem:[#allocation5 + $0xe0] sm:$0xff]  ;;  %v2977_v43 = vpack.c.bf16 %v141_v40, %v137_v37  ;;  %v136_v44 = vld [vmem:[#allocation5 + $0xd0] sm:$0xff]  ;;  %v143_v46 = vld [vmem:[#allocation5 + $0x108] sm:$0xff] }
  0x40   :  { %2974 = vmatprep.subr.bf16.mxu1 %v2973_v30  ;;  %v140_v45 = vld [vmem:[#allocation5 + $0xf0] sm:$0xff]  ;;  %v147_v47 = vld [vmem:[#allocation5 + $0x128] sm:$0xff]  ;;  %v145_v48 = vld [vmem:[#allocation5 + $0x118] sm:$0xff]  ;;  %v2787_v50 = vpack.c.bf16 %v138_v42, %v134_v41 }
  0x41   :  { %v149_v49 = vld [vmem:[#allocation5 + $0x138] sm:$0xff]  ;;  %v2979_v51 = vpack.c.bf16 %v140_v45, %v136_v44  ;;  %v2789_v52 = vpack.c.bf16 %v147_v47, %v143_v46  ;;  %v142_v53 = vld [vmem:[#allocation5 + $0x100] sm:$0xff]  ;;  %v144_v55 = vld [vmem:[#allocation5 + $0x110] sm:$0xff] }
  0x42   :  { %2784 = vmatpush1.bf16.msra.mxu0 %v2783_v34  ;;  %v146_v54 = vld [vmem:[#allocation5 + $0x120] sm:$0xff]  ;;  %v2981_v56 = vpack.c.bf16 %v149_v49, %v145_v48  ;;  %v148_v57 = vld [vmem:[#allocation5 + $0x130] sm:$0xff]  ;;  %v151_v58 = vld [vmem:[#allocation5 + $0x148] sm:$0xff] }
  0x43   :  { %2976 = vmatpush1.bf16.msra.mxu1 %v2975_v38  ;;  %2786 = vmatprep.subr.bf16.mxu0 %v2785_v39  ;;  %v155_v59 = vld [vmem:[#allocation5 + $0x168] sm:$0xff]  ;;  %v153_v60 = vld [vmem:[#allocation5 + $0x158] sm:$0xff]  ;;  %v2791_v62 = vpack.c.bf16 %v146_v54, %v142_v53  ;;  %v2983_v63 = vpack.c.bf16 %v148_v57, %v144_v55  ;;  %v150_v1 = vld [vmem:[#allocation5 + $0x140] sm:$0xff] }
  0x44   :  { %2978 = vmatprep.subr.bf16.mxu1 %v2977_v43  ;;  %v157_v61 = vld [vmem:[#allocation5 + $0x178] sm:$0xff]  ;;  %v2793_v0 = vpack.c.bf16 %v155_v59, %v151_v58  ;;  %v154_v2 = vld [vmem:[#allocation5 + $0x160] sm:$0xff]  ;;  %v152_v3 = vld [vmem:[#allocation5 + $0x150] sm:$0xff] }
  0x45   :  { %v2985_v4 = vpack.c.bf16 %v157_v61, %v153_v60  ;;  %v156_v5 = vld [vmem:[#allocation5 + $0x170] sm:$0xff]  ;;  %v159_v6 = vld [vmem:[#allocation5 + $0x188] sm:$0xff]  ;;  %v161_v8 = vld [vmem:[#allocation5 + $0x198] sm:$0xff]  ;;  %v2795_v10 = vpack.c.bf16 %v154_v2, %v150_v1 }
  0x46   :  { %2788 = vmatpush1.bf16.msra.mxu0 %v2787_v50  ;;  %v163_v7 = vld [vmem:[#allocation5 + $0x1a8] sm:$0xff]  ;;  %v165_v9 = vld [vmem:[#allocation5 + $0x1b8] sm:$0xff]  ;;  %v2987_v11 = vpack.c.bf16 %v156_v5, %v152_v3  ;;  %v158_v13 = vld [vmem:[#allocation5 + $0x180] sm:$0xff] }
  0x47   :  { %2980 = vmatpush1.bf16.msra.mxu1 %v2979_v51  ;;  %2790 = vmatprep.subr.bf16.mxu0 %v2789_v52  ;;  %v2797_v12 = vpack.c.bf16 %v163_v7, %v159_v6  ;;  %v162_v14 = vld [vmem:[#allocation5 + $0x1a0] sm:$0xff]  ;;  %v160_v15 = vld [vmem:[#allocation5 + $0x190] sm:$0xff]  ;;  %v2989_v16 = vpack.c.bf16 %v165_v9, %v161_v8  ;;  %v167_v18 = vld [vmem:[#allocation5 + $0x1c8] sm:$0xff] }
  0x48   :  { %2982 = vmatprep.subr.bf16.mxu1 %v2981_v56  ;;  %v164_v17 = vld [vmem:[#allocation5 + $0x1b0] sm:$0xff]  ;;  %v171_v19 = vld [vmem:[#allocation5 + $0x1e8] sm:$0xff]  ;;  %v169_v20 = vld [vmem:[#allocation5 + $0x1d8] sm:$0xff]  ;;  %v2799_v22 = vpack.c.bf16 %v162_v14, %v158_v13 }
  0x49   :  { %v173_v21 = vld [vmem:[#allocation5 + $0x1f8] sm:$0xff]  ;;  %v2991_v23 = vpack.c.bf16 %v164_v17, %v160_v15  ;;  %v2801_v24 = vpack.c.bf16 %v171_v19, %v167_v18  ;;  %v166_v25 = vld [vmem:[#allocation5 + $0x1c0] sm:$0xff]  ;;  %v168_v27 = vld [vmem:[#allocation5 + $0x1d0] sm:$0xff] }
  0x4a   :  { %2792 = vmatpush1.bf16.msra.mxu0 %v2791_v62  ;;  %v170_v26 = vld [vmem:[#allocation5 + $0x1e0] sm:$0xff]  ;;  %v2993_v28 = vpack.c.bf16 %v173_v21, %v169_v20  ;;  %v172_v29 = vld [vmem:[#allocation5 + $0x1f0] sm:$0xff]  ;;  %v175_v30 = vld [vmem:[#allocation5 + $0x208] sm:$0xff] }
  0x4b   :  { %2984 = vmatpush1.bf16.msra.mxu1 %v2983_v63  ;;  %2794 = vmatprep.subr.bf16.mxu0 %v2793_v0  ;;  %v179_v31 = vld [vmem:[#allocation5 + $0x228] sm:$0xff]  ;;  %v177_v32 = vld [vmem:[#allocation5 + $0x218] sm:$0xff]  ;;  %v2803_v34 = vpack.c.bf16 %v170_v26, %v166_v25  ;;  %v2995_v35 = vpack.c.bf16 %v172_v29, %v168_v27  ;;  %v174_v37 = vld [vmem:[#allocation5 + $0x200] sm:$0xff] }
  0x4c   :  { %2986 = vmatprep.subr.bf16.mxu1 %v2985_v4  ;;  %v181_v33 = vld [vmem:[#allocation5 + $0x238] sm:$0xff]  ;;  %v2805_v36 = vpack.c.bf16 %v179_v31, %v175_v30  ;;  %v178_v38 = vld [vmem:[#allocation5 + $0x220] sm:$0xff]  ;;  %v176_v39 = vld [vmem:[#allocation5 + $0x210] sm:$0xff] }
  0x4d   :  { %v2997_v40 = vpack.c.bf16 %v181_v33, %v177_v32  ;;  %v180_v41 = vld [vmem:[#allocation5 + $0x230] sm:$0xff]  ;;  %v183_v42 = vld [vmem:[#allocation5 + $0x248] sm:$0xff]  ;;  %v185_v44 = vld [vmem:[#allocation5 + $0x258] sm:$0xff]  ;;  %v2807_v46 = vpack.c.bf16 %v178_v38, %v174_v37 }
  0x4e   :  { %2796 = vmatpush1.bf16.msra.mxu0 %v2795_v10  ;;  %v187_v43 = vld [vmem:[#allocation5 + $0x268] sm:$0xff]  ;;  %v189_v45 = vld [vmem:[#allocation5 + $0x278] sm:$0xff]  ;;  %v2999_v47 = vpack.c.bf16 %v180_v41, %v176_v39  ;;  %v182_v49 = vld [vmem:[#allocation5 + $0x240] sm:$0xff] }
  0x4f   :  { %2988 = vmatpush1.bf16.msra.mxu1 %v2987_v11  ;;  %2798 = vmatprep.subr.bf16.mxu0 %v2797_v12  ;;  %v2809_v48 = vpack.c.bf16 %v187_v43, %v183_v42  ;;  %v186_v50 = vld [vmem:[#allocation5 + $0x260] sm:$0xff]  ;;  %v184_v51 = vld [vmem:[#allocation5 + $0x250] sm:$0xff]  ;;  %v3001_v52 = vpack.c.bf16 %v189_v45, %v185_v44  ;;  %v191_v54 = vld [vmem:[#allocation5 + $0x288] sm:$0xff] }
  0x50   :  { %2990 = vmatprep.subr.bf16.mxu1 %v2989_v16  ;;  %v188_v53 = vld [vmem:[#allocation5 + $0x270] sm:$0xff]  ;;  %v195_v55 = vld [vmem:[#allocation5 + $0x2a8] sm:$0xff]  ;;  %v193_v56 = vld [vmem:[#allocation5 + $0x298] sm:$0xff]  ;;  %v2811_v58 = vpack.c.bf16 %v186_v50, %v182_v49 }
  0x51   :  { %v197_v57 = vld [vmem:[#allocation5 + $0x2b8] sm:$0xff]  ;;  %v3003_v59 = vpack.c.bf16 %v188_v53, %v184_v51  ;;  %v2813_v60 = vpack.c.bf16 %v195_v55, %v191_v54  ;;  %v190_v61 = vld [vmem:[#allocation5 + $0x280] sm:$0xff]  ;;  %v192_v63 = vld [vmem:[#allocation5 + $0x290] sm:$0xff] }
  0x52   :  { %2800 = vmatpush1.bf16.msra.mxu0 %v2799_v22  ;;  %v194_v62 = vld [vmem:[#allocation5 + $0x2a0] sm:$0xff]  ;;  %v3005_v0 = vpack.c.bf16 %v197_v57, %v193_v56  ;;  %v196_v1 = vld [vmem:[#allocation5 + $0x2b0] sm:$0xff]  ;;  %v199_v2 = vld [vmem:[#allocation5 + $0x2c8] sm:$0xff] }
  0x53   :  { %2992 = vmatpush1.bf16.msra.mxu1 %v2991_v23  ;;  %2802 = vmatprep.subr.bf16.mxu0 %v2801_v24  ;;  %v203_v3 = vld [vmem:[#allocation5 + $0x2e8] sm:$0xff]  ;;  %v201_v4 = vld [vmem:[#allocation5 + $0x2d8] sm:$0xff]  ;;  %v2815_v6 = vpack.c.bf16 %v194_v62, %v190_v61  ;;  %v198_v7 = vld [vmem:[#allocation5 + $0x2c0] sm:$0xff]  ;;  %v3007_v8 = vpack.c.bf16 %v196_v1, %v192_v63 }
  0x54   :  { %2994 = vmatprep.subr.bf16.mxu1 %v2993_v28  ;;  %v205_v5 = vld [vmem:[#allocation5 + $0x2f8] sm:$0xff]  ;;  %v2817_v9 = vpack.c.bf16 %v203_v3, %v199_v2  ;;  %v202_v10 = vld [vmem:[#allocation5 + $0x2e0] sm:$0xff]  ;;  %v200_v11 = vld [vmem:[#allocation5 + $0x2d0] sm:$0xff] }
  0x55   :  { %v204_v12 = vld [vmem:[#allocation5 + $0x2f0] sm:$0xff]  ;;  %v3009_v13 = vpack.c.bf16 %v205_v5, %v201_v4  ;;  %v207_v14 = vld [vmem:[#allocation5 + $0x308] sm:$0xff]  ;;  %v209_v17 = vld [vmem:[#allocation5 + $0x318] sm:$0xff]  ;;  %v2819_v19 = vpack.c.bf16 %v202_v10, %v198_v7 }
  0x56   :  { %2804 = vmatpush1.bf16.msra.mxu0 %v2803_v34  ;;  %v211_v15 = vld [vmem:[#allocation5 + $0x328] sm:$0xff]  ;;  %v213_v18 = vld [vmem:[#allocation5 + $0x338] sm:$0xff]  ;;  %v3011_v20 = vpack.c.bf16 %v204_v12, %v200_v11  ;;  %v206_v22 = vld [vmem:[#allocation5 + $0x300] sm:$0xff] }
  0x57   :  { %2996 = vmatpush1.bf16.msra.mxu1 %v2995_v35  ;;  %2806 = vmatprep.subr.bf16.mxu0 %v2805_v36  ;;  %v63_v16 = vld [vmem:[%s4645_s0 + $0x8] sm:$0xff]  ;;  %v2821_v21 = vpack.c.bf16 %v211_v15, %v207_v14  ;;  %v210_v23 = vld [vmem:[#allocation5 + $0x320] sm:$0xff]  ;;  %v208_v24 = vld [vmem:[#allocation5 + $0x310] sm:$0xff]  ;;  %v3013_v25 = vpack.c.bf16 %v213_v18, %v209_v17 }
  0x58   :  { %2998 = vmatprep.subr.bf16.mxu1 %v2997_v40  ;;  %580 = vmatprep.mubr.f32.mxu0 %v63_v16  ;;  %v212_v26 = vld [vmem:[#allocation5 + $0x330] sm:$0xff]  ;;  %v215_v27 = vld [vmem:[#allocation5 + $0x348] sm:$0xff]  ;;  %v217_v29 = vld [vmem:[#allocation5 + $0x358] sm:$0xff]  ;;  %v2823_v31 = vpack.c.bf16 %v210_v23, %v206_v22 }
  0x59   :  { %919 = vmatprep.mubr.f32.mxu1 %v63_v16  ;;  %v219_v28 = vld [vmem:[#allocation5 + $0x368] sm:$0xff]  ;;  %v221_v30 = vld [vmem:[#allocation5 + $0x378] sm:$0xff]  ;;  %v3015_v32 = vpack.c.bf16 %v212_v26, %v208_v24  ;;  %v214_v34 = vld [vmem:[#allocation5 + $0x340] sm:$0xff] }
  0x5a   :  { %2808 = vmatpush1.bf16.msra.mxu0 %v2807_v46  ;;  %v2825_v33 = vpack.c.bf16 %v219_v28, %v215_v27  ;;  %v218_v35 = vld [vmem:[#allocation5 + $0x360] sm:$0xff]  ;;  %v216_v36 = vld [vmem:[#allocation5 + $0x350] sm:$0xff]  ;;  %v3017_v37 = vpack.c.bf16 %v221_v30, %v217_v29  ;;  %v223_v39 = vld [vmem:[#allocation5 + $0x388] sm:$0xff] }
  0x5b   :  { %3000 = vmatpush1.bf16.msra.mxu1 %v2999_v47  ;;  %2810 = vmatprep.subr.bf16.mxu0 %v2809_v48  ;;  %v220_v38 = vld [vmem:[#allocation5 + $0x370] sm:$0xff]  ;;  %v227_v40 = vld [vmem:[#allocation5 + $0x3a8] sm:$0xff]  ;;  %v225_v41 = vld [vmem:[#allocation5 + $0x398] sm:$0xff]  ;;  %v2827_v43 = vpack.c.bf16 %v218_v35, %v214_v34 }
  0x5c   :  { %3002 = vmatprep.subr.bf16.mxu1 %v3001_v52  ;;  %v229_v42 = vld [vmem:[#allocation5 + $0x3b8] sm:$0xff]  ;;  %v3019_v44 = vpack.c.bf16 %v220_v38, %v216_v36  ;;  %v2829_v45 = vpack.c.bf16 %v227_v40, %v223_v39  ;;  %v222_v46 = vld [vmem:[#allocation5 + $0x380] sm:$0xff]  ;;  %v224_v48 = vld [vmem:[#allocation5 + $0x390] sm:$0xff] }
  0x5d   :  { %v226_v47 = vld [vmem:[#allocation5 + $0x3a0] sm:$0xff]  ;;  %v3021_v49 = vpack.c.bf16 %v229_v42, %v225_v41  ;;  %v228_v50 = vld [vmem:[#allocation5 + $0x3b0] sm:$0xff]  ;;  %v231_v51 = vld [vmem:[#allocation5 + $0x3c8] sm:$0xff] }
  0x5e   :  { %2812 = vmatpush1.bf16.msra.mxu0 %v2811_v58  ;;  %v235_v52 = vld [vmem:[#allocation5 + $0x3e8] sm:$0xff]  ;;  %v233_v53 = vld [vmem:[#allocation5 + $0x3d8] sm:$0xff]  ;;  %v2831_v55 = vpack.c.bf16 %v226_v47, %v222_v46  ;;  %v3023_v56 = vpack.c.bf16 %v228_v50, %v224_v48  ;;  %v230_v58 = vld [vmem:[#allocation5 + $0x3c0] sm:$0xff] }
  0x5f   :  { %3004 = vmatpush1.bf16.msra.mxu1 %v3003_v59  ;;  %2814 = vmatprep.subr.bf16.mxu0 %v2813_v60  ;;  %v237_v54 = vld [vmem:[#allocation5 + $0x3f8] sm:$0xff]  ;;  %v2833_v57 = vpack.c.bf16 %v235_v52, %v231_v51  ;;  %v234_v59 = vld [vmem:[#allocation5 + $0x3e0] sm:$0xff]  ;;  %v232_v60 = vld [vmem:[#allocation5 + $0x3d0] sm:$0xff] }
  0x60   :  { %3006 = vmatprep.subr.bf16.mxu1 %v3005_v0  ;;  %v3025_v61 = vpack.c.bf16 %v237_v54, %v233_v53  ;;  %v236_v62 = vld [vmem:[#allocation5 + $0x3f0] sm:$0xff]  ;;  %v239_v63 = vld [vmem:[#allocation5 + $0x408] sm:$0xff]  ;;  %v241_v1 = vld [vmem:[#allocation5 + $0x418] sm:$0xff]  ;;  %v2835_v3 = vpack.c.bf16 %v234_v59, %v230_v58 }
  0x61   :  { %v243_v0 = vld [vmem:[#allocation5 + $0x428] sm:$0xff]  ;;  %v245_v2 = vld [vmem:[#allocation5 + $0x438] sm:$0xff]  ;;  %v3027_v4 = vpack.c.bf16 %v236_v62, %v232_v60  ;;  %v242_v7 = vld [vmem:[#allocation5 + $0x420] sm:$0xff] }
  0x62   :  { %2816 = vmatpush1.bf16.msra.mxu0 %v2815_v6  ;;  %v2837_v5 = vpack.c.bf16 %v243_v0, %v239_v63  ;;  %v238_v6 = vld [vmem:[#allocation5 + $0x400] sm:$0xff]  ;;  %v244_v10 = vld [vmem:[#allocation5 + $0x430] sm:$0xff]  ;;  %v247_v11 = vld [vmem:[#allocation5 + $0x448] sm:$0xff] }
  0x63   :  { %3008 = vmatpush1.bf16.msra.mxu1 %v3007_v8  ;;  %2818 = vmatprep.subr.bf16.mxu0 %v2817_v9  ;;  %v240_v8 = vld [vmem:[#allocation5 + $0x410] sm:$0xff]  ;;  %v3029_v9 = vpack.c.bf16 %v245_v2, %v241_v1  ;;  %v251_v12 = vld [vmem:[#allocation5 + $0x468] sm:$0xff]  ;;  %v253_v14 = vld [vmem:[#allocation5 + $0x478] sm:$0xff]  ;;  %v2839_v16 = vpack.c.bf16 %v242_v7, %v238_v6 }
  0x64   :  { %3010 = vmatprep.subr.bf16.mxu1 %v3009_v13  ;;  %v249_v13 = vld [vmem:[#allocation5 + $0x458] sm:$0xff]  ;;  %v62_v15 = vld [vmem:[%s4645_s0] sm:$0xff]  ;;  %v3031_v17 = vpack.c.bf16 %v244_v10, %v240_v8  ;;  %v2841_v18 = vpack.c.bf16 %v251_v12, %v247_v11  ;;  %v252_v23 = vld [vmem:[#allocation5 + $0x470] sm:$0xff] }
  0x65   :  { %v3033_v22 = vpack.c.bf16 %v253_v14, %v249_v13  ;;  %v255_v24 = vld [vmem:[#allocation5 + $0x488] sm:$0xff]  ;;  %v257_v26 = vld [vmem:[#allocation5 + $0x498] sm:$0xff]  ;;  %v254_v30 = vld [vmem:[#allocation5 + $0x480] sm:$0xff] }
  0x66   :  { %2820 = vmatpush1.bf16.msra.mxu0 %v2819_v19  ;;  %v246_v19 = vld [vmem:[#allocation5 + $0x440] sm:$0xff]  ;;  %v261_v27 = vld [vmem:[#allocation5 + $0x4b8] sm:$0xff]  ;;  %v256_v34 = vld [vmem:[#allocation5 + $0x490] sm:$0xff] }
  0x67   :  { %3012 = vmatpush1.bf16.msra.mxu1 %v3011_v20  ;;  %2822 = vmatprep.subr.bf16.mxu0 %v2821_v21  ;;  %v250_v20 = vld [vmem:[#allocation5 + $0x460] sm:$0xff]  ;;  %v248_v21 = vld [vmem:[#allocation5 + $0x450] sm:$0xff]  ;;  %v69_v28 = vld [vmem:[%s4645_s0 + $0x38] sm:$0xff]  ;;  %v3037_v36 = vpack.c.bf16 %v261_v27, %v257_v26 }
  0x68   :  { %3014 = vmatprep.subr.bf16.mxu1 %v3013_v25  ;;  %v259_v25 = vld [vmem:[#allocation5 + $0x4a8] sm:$0xff]  ;;  %v2843_v29 = vpack.c.bf16 %v250_v20, %v246_v19  ;;  %v68_v35 = vld [vmem:[%s4645_s0 + $0x30] sm:$0xff]  ;;  %v265_v40 = vld [vmem:[#allocation5 + $0x4d8] sm:$0xff] }
  0x69   :  { %v263_v38 = vld [vmem:[#allocation5 + $0x4c8] sm:$0xff]  ;;  %v269_v41 = vld [vmem:[#allocation5 + $0x4f8] sm:$0xff]  ;;  %v262_v47 = vld [vmem:[#allocation5 + $0x4c0] sm:$0xff] }
  0x6a   :  { %2824 = vmatpush1.bf16.msra.mxu0 %v2823_v31  ;;  %v3035_v31 = vpack.c.bf16 %v252_v23, %v248_v21  ;;  %v267_v39 = vld [vmem:[#allocation5 + $0x4e8] sm:$0xff]  ;;  %v266_v48 = vld [vmem:[#allocation5 + $0x4e0] sm:$0xff]  ;;  %v3041_v50 = vpack.c.bf16 %v269_v41, %v265_v40  ;;  %v268_v51 = vld [vmem:[#allocation5 + $0x4f0] sm:$0xff] }
  0x6b   :  { %3016 = vmatpush1.bf16.msra.mxu1 %v3015_v32  ;;  %2826 = vmatprep.subr.bf16.mxu0 %v2825_v33  ;;  %v2845_v32 = vpack.c.bf16 %v259_v25, %v255_v24  ;;  %v258_v33 = vld [vmem:[#allocation5 + $0x4a0] sm:$0xff]  ;;  %v75_v42 = vld [vmem:[%s4645_s0 + $0x68] sm:$0xff]  ;;  %v2849_v46 = vpack.c.bf16 %v267_v39, %v263_v38  ;;  %v273_v54 = vld [vmem:[#allocation5 + $0x518] sm:$0xff] }
  0x6c   :  { %3018 = vmatprep.subr.bf16.mxu1 %v3017_v37  ;;  %v260_v37 = vld [vmem:[#allocation5 + $0x4b0] sm:$0xff]  ;;  %v271_v52 = vld [vmem:[#allocation5 + $0x508] sm:$0xff]  ;;  %v274_v62 = vld [vmem:[#allocation5 + $0x520] sm:$0xff] }
  0x6d   :  { %v275_v53 = vld [vmem:[#allocation5 + $0x528] sm:$0xff]  ;;  %v80_v58 = vld [vmem:[%s4645_s0 + $0x90] sm:$0xff]  ;;  %v86_v8 = vld [vmem:[%s4645_s0 + $0xc0] sm:$0xff] }
  0x6e   :  { %2828 = vmatpush1.bf16.msra.mxu0 %v2827_v43  ;;  %v2847_v43 = vpack.c.bf16 %v258_v33, %v254_v30  ;;  %v2853_v60 = vpack.c.bf16 %v275_v53, %v271_v52  ;;  %v272_v63 = vld [vmem:[#allocation5 + $0x510] sm:$0xff]  ;;  %v279_v2 = vld [vmem:[#allocation5 + $0x548] sm:$0xff]  ;;  %v278_v11 = vld [vmem:[#allocation5 + $0x540] sm:$0xff] }
  0x6f   :  { %3020 = vmatpush1.bf16.msra.mxu1 %v3019_v44  ;;  %2830 = vmatprep.subr.bf16.mxu0 %v2829_v45  ;;  %v74_v44 = vld [vmem:[%s4645_s0 + $0x60] sm:$0xff]  ;;  %v3039_v45 = vpack.c.bf16 %v260_v37, %v256_v34  ;;  %v276_v1 = vld [vmem:[#allocation5 + $0x530] sm:$0xff]  ;;  %v87_v6 = vld [vmem:[%s4645_s0 + $0xc8] sm:$0xff] }
  0x70   :  { %3022 = vmatprep.subr.bf16.mxu1 %v3021_v49  ;;  %v264_v49 = vld [vmem:[#allocation5 + $0x4d0] sm:$0xff]  ;;  %v282_v12 = vld [vmem:[#allocation5 + $0x560] sm:$0xff]  ;;  %v293_v19 = vld [vmem:[#allocation5 + $0x5b8] sm:$0xff] }
  0x71   :  { %v3043_v59 = vpack.c.bf16 %v268_v51, %v264_v49  ;;  %v280_v13 = vld [vmem:[#allocation5 + $0x550] sm:$0xff]  ;;  %v93_v20 = vld [vmem:[%s4645_s0 + $0xf8] sm:$0xff]  ;;  %v2859_v21 = vpack.c.bf16 %v282_v12, %v278_v11  ;;  %v286_v25 = vld [vmem:[#allocation5 + $0x580] sm:$0xff] }
  0x72   :  { %2832 = vmatpush1.bf16.msra.mxu0 %v2831_v55  ;;  %v277_v55 = vld [vmem:[#allocation5 + $0x538] sm:$0xff]  ;;  %v290_v26 = vld [vmem:[#allocation5 + $0x5a0] sm:$0xff]  ;;  %v288_v27 = vld [vmem:[#allocation5 + $0x590] sm:$0xff] }
  0x73   :  { %3024 = vmatpush1.bf16.msra.mxu1 %v3023_v56  ;;  %2834 = vmatprep.subr.bf16.mxu0 %v2833_v57  ;;  %v81_v56 = vld [vmem:[%s4645_s0 + $0x98] sm:$0xff]  ;;  %v2851_v57 = vpack.c.bf16 %v266_v48, %v262_v47  ;;  %v3045_v0 = vpack.c.bf16 %v277_v55, %v273_v54  ;;  %v295_v30 = vld [vmem:[#allocation5 + $0x5c8] sm:$0xff]  ;;  %v294_v39 = vld [vmem:[#allocation5 + $0x5c0] sm:$0xff] }
  0x74   :  { %3026 = vmatprep.subr.bf16.mxu1 %v3025_v61  ;;  %v270_v61 = vld [vmem:[#allocation5 + $0x500] sm:$0xff]  ;;  %v301_v33 = vld [vmem:[#allocation5 + $0x5f8] sm:$0xff]  ;;  %v99_v34 = vld [vmem:[%s4645_s0 + $0x128] sm:$0xff] }
  0x75   :  { %v2855_v7 = vpack.c.bf16 %v274_v62, %v270_v61  ;;  %v298_v40 = vld [vmem:[#allocation5 + $0x5e0] sm:$0xff]  ;;  %v296_v41 = vld [vmem:[#allocation5 + $0x5d0] sm:$0xff]  ;;  %v309_v47 = vld [vmem:[#allocation5 + $0x638] sm:$0xff] }
  0x76   :  { %2836 = vmatpush1.bf16.msra.mxu0 %v2835_v3  ;;  %v283_v3 = vld [vmem:[#allocation5 + $0x568] sm:$0xff]  ;;  %v105_v48 = vld [vmem:[%s4645_s0 + $0x158] sm:$0xff]  ;;  %v2867_v49 = vpack.c.bf16 %v298_v40, %v294_v39  ;;  %v302_v53 = vld [vmem:[#allocation5 + $0x600] sm:$0xff] }
  0x77   :  { %3028 = vmatpush1.bf16.msra.mxu1 %v3027_v4  ;;  %2838 = vmatprep.subr.bf16.mxu0 %v2837_v5  ;;  %v281_v4 = vld [vmem:[#allocation5 + $0x558] sm:$0xff]  ;;  %v2857_v10 = vpack.c.bf16 %v283_v3, %v279_v2  ;;  %v306_v54 = vld [vmem:[#allocation5 + $0x620] sm:$0xff]  ;;  %v304_v55 = vld [vmem:[#allocation5 + $0x610] sm:$0xff] }
  0x78   :  { %3030 = vmatprep.subr.bf16.mxu1 %v3029_v9  ;;  %v285_v5 = vld [vmem:[#allocation5 + $0x578] sm:$0xff]  ;;  %v3047_v9 = vpack.c.bf16 %v276_v1, %v272_v63  ;;  %v2871_v63 = vpack.c.bf16 %v306_v54, %v302_v53  ;;  %v310_v2 = vld [vmem:[#allocation5 + $0x640] sm:$0xff]  ;;  %v336_v40 = vld [vmem:[#allocation5 + $0x710] sm:$0xff] }
  0x79   :  { %581 = vmatmul.mubr.f32.vlgmr.msra.gmra.mrb[0].mxu0 %v62_v15  ;;  %v3049_v14 = vpack.c.bf16 %v285_v5, %v281_v4  ;;  %v317_v61 = vld [vmem:[#allocation5 + $0x678] sm:$0xff]  ;;  %v314_v3 = vld [vmem:[#allocation5 + $0x660] sm:$0xff]  ;;  %v312_v4 = vld [vmem:[#allocation5 + $0x650] sm:$0xff] }
  0x7a   :  { %2840 = vmatpush1.bf16.msra.mxu0 %v2839_v16  ;;  %920 = vmatmul.mubr.f32.vlgmr.msra.gmra.mrb[0].mxu1 %v62_v15  ;;  %v284_v15 = vld [vmem:[#allocation5 + $0x570] sm:$0xff]  ;;  %v287_v16 = vld [vmem:[#allocation5 + $0x588] sm:$0xff]  ;;  %v65_v62 = vld [vmem:[%s4645_s0 + $0x18] sm:$0xff]  ;;  %v2875_v11 = vpack.c.bf16 %v314_v3, %v310_v2 }
  0x7b   :  { %3032 = vmatpush1.bf16.msra.mxu1 %v3031_v17  ;;  %2842 = vmatprep.subr.bf16.mxu0 %v2841_v18  ;;  %v291_v17 = vld [vmem:[#allocation5 + $0x5a8] sm:$0xff]  ;;  %v289_v18 = vld [vmem:[#allocation5 + $0x598] sm:$0xff]  ;;  %v3051_v23 = vpack.c.bf16 %v284_v15, %v280_v13  ;;  %v322_v15 = vld [vmem:[#allocation5 + $0x6a0] sm:$0xff] }
  0x7c   :  { %3034 = vmatprep.subr.bf16.mxu1 %v3033_v22  ;;  %586 = vmatprep.mubr.f32.mxu0 %v69_v28  ;;  %v92_v22 = vld [vmem:[%s4645_s0 + $0xf0] sm:$0xff]  ;;  %v2861_v24 = vpack.c.bf16 %v291_v17, %v287_v16  ;;  %v338_v39 = vld [vmem:[#allocation5 + $0x720] sm:$0xff]  ;;  %v359_v3 = vld [vmem:[#allocation5 + $0x7c8] sm:$0xff] }
  0x7d   :  { %925 = vmatprep.mubr.f32.mxu1 %v69_v28  ;;  %587 = vmatmul.mubr.f32.gmra.mrb[2].mxu0 %v68_v35  ;;  %v3053_v28 = vpack.c.bf16 %v293_v19, %v289_v18  ;;  %v320_v16 = vld [vmem:[#allocation5 + $0x690] sm:$0xff]  ;;  %v327_v19 = vld [vmem:[#allocation5 + $0x6c8] sm:$0xff] }
  0x7e   :  { %2844 = vmatpush1.bf16.msra.mxu0 %v2843_v29  ;;  %926 = vmatmul.mubr.f32.gmra.mrb[2].mxu1 %v68_v35  ;;  %v292_v29 = vld [vmem:[#allocation5 + $0x5b0] sm:$0xff]  ;;  %v2863_v35 = vpack.c.bf16 %v290_v26, %v286_v25  ;;  %v326_v26 = vld [vmem:[#allocation5 + $0x6c0] sm:$0xff] }
  0x7f   :  { %3036 = vmatpush1.bf16.msra.mxu1 %v3035_v31  ;;  %2846 = vmatprep.subr.bf16.mxu0 %v2845_v32  ;;  %v299_v31 = vld [vmem:[#allocation5 + $0x5e8] sm:$0xff]  ;;  %v297_v32 = vld [vmem:[#allocation5 + $0x5d8] sm:$0xff]  ;;  %v3055_v37 = vpack.c.bf16 %v292_v29, %v288_v27  ;;  %v324_v18 = vld [vmem:[#allocation5 + $0x6b0] sm:$0xff] }
  0x80   :  { %3038 = vmatprep.subr.bf16.mxu1 %v3037_v36  ;;  %592 = vmatprep.mubr.f32.mxu0 %v75_v42  ;;  %v98_v36 = vld [vmem:[%s4645_s0 + $0x120] sm:$0xff]  ;;  %v2865_v38 = vpack.c.bf16 %v299_v31, %v295_v30  ;;  %v332_v30 = vld [vmem:[#allocation5 + $0x6f0] sm:$0xff]  ;;  %v335_v31 = vld [vmem:[#allocation5 + $0x708] sm:$0xff] }
  0x81   :  { %931 = vmatprep.mubr.f32.mxu1 %v75_v42  ;;  %593 = vmatmul.mubr.f32.gmra.mrb[4].mxu0 %v74_v44  ;;  %v3057_v42 = vpack.c.bf16 %v301_v33, %v297_v32  ;;  %v330_v27 = vld [vmem:[#allocation5 + $0x6e0] sm:$0xff]  ;;  %v339_v32 = vld [vmem:[#allocation5 + $0x728] sm:$0xff]  ;;  %v337_v33 = vld [vmem:[#allocation5 + $0x718] sm:$0xff] }
  0x82   :  { %2848 = vmatpush1.bf16.msra.mxu0 %v2847_v43  ;;  %932 = vmatmul.mubr.f32.gmra.mrb[4].mxu1 %v74_v44  ;;  %v300_v43 = vld [vmem:[#allocation5 + $0x5f0] sm:$0xff]  ;;  %v303_v44 = vld [vmem:[#allocation5 + $0x608] sm:$0xff] }
  0x83   :  { %3040 = vmatpush1.bf16.msra.mxu1 %v3039_v45  ;;  %2850 = vmatprep.subr.bf16.mxu0 %v2849_v46  ;;  %v307_v45 = vld [vmem:[#allocation5 + $0x628] sm:$0xff]  ;;  %v305_v46 = vld [vmem:[#allocation5 + $0x618] sm:$0xff]  ;;  %v3059_v51 = vpack.c.bf16 %v300_v43, %v296_v41  ;;  %v348_v54 = vld [vmem:[#allocation5 + $0x770] sm:$0xff] }
  0x84   :  { %3042 = vmatprep.subr.bf16.mxu1 %v3041_v50  ;;  %598 = vmatprep.mubr.f32.mxu0 %v81_v56  ;;  %v104_v50 = vld [vmem:[%s4645_s0 + $0x150] sm:$0xff]  ;;  %v2869_v52 = vpack.c.bf16 %v307_v45, %v303_v44  ;;  %v343_v43 = vld [vmem:[#allocation5 + $0x748] sm:$0xff]  ;;  %v345_v45 = vld [vmem:[#allocation5 + $0x758] sm:$0xff] }
  0x85   :  { %937 = vmatprep.mubr.f32.mxu1 %v81_v56  ;;  %599 = vmatmul.mubr.f32.gmra.mrb[6].mxu0 %v80_v58  ;;  %v3061_v56 = vpack.c.bf16 %v309_v47, %v305_v46  ;;  %v347_v44 = vld [vmem:[#allocation5 + $0x768] sm:$0xff]  ;;  %v349_v46 = vld [vmem:[#allocation5 + $0x778] sm:$0xff]  ;;  %v356_v2 = vld [vmem:[#allocation5 + $0x7b0] sm:$0xff] }
  0x86   :  { %2852 = vmatpush1.bf16.msra.mxu0 %v2851_v57  ;;  %938 = vmatmul.mubr.f32.gmra.mrb[6].mxu1 %v80_v58  ;;  %v308_v57 = vld [vmem:[#allocation5 + $0x630] sm:$0xff]  ;;  %v311_v58 = vld [vmem:[#allocation5 + $0x648] sm:$0xff]  ;;  %v3081_v53 = vpack.c.bf16 %v349_v46, %v345_v45  ;;  %v70_v46 = vld [vmem:[%s4645_s0 + $0x40] sm:$0xff] }
  0x87   :  { %3044 = vmatpush1.bf16.msra.mxu1 %v3043_v59  ;;  %2854 = vmatprep.subr.bf16.mxu0 %v2853_v60  ;;  %v315_v59 = vld [vmem:[#allocation5 + $0x668] sm:$0xff]  ;;  %v313_v60 = vld [vmem:[#allocation5 + $0x658] sm:$0xff] }
  0x88   :  { %3046 = vmatprep.subr.bf16.mxu1 %v3045_v0  ;;  %604 = vmatprep.mubr.f32.mxu0 %v87_v6  ;;  %v3063_v0 = vpack.c.bf16 %v308_v57, %v304_v55  ;;  %v2873_v1 = vpack.c.bf16 %v315_v59, %v311_v58  ;;  %v3065_v5 = vpack.c.bf16 %v317_v61, %v313_v60  ;;  %v351_v55 = vld [vmem:[#allocation5 + $0x788] sm:$0xff]  ;;  %v353_v57 = vld [vmem:[#allocation5 + $0x798] sm:$0xff] }
  0x89   :  { %943 = vmatprep.mubr.f32.mxu1 %v87_v6  ;;  %605 = vmatmul.mubr.f32.gmra.mrb[8].mxu0 %v86_v8  ;;  %v316_v6 = vld [vmem:[#allocation5 + $0x670] sm:$0xff]  ;;  %v357_v58 = vld [vmem:[#allocation5 + $0x7b8] sm:$0xff] }
  0x8a   :  { %2856 = vmatpush1.bf16.msra.mxu0 %v2855_v7  ;;  %944 = vmatmul.mubr.f32.gmra.mrb[8].mxu1 %v86_v8  ;;  %v319_v7 = vld [vmem:[#allocation5 + $0x688] sm:$0xff]  ;;  %v3067_v12 = vpack.c.bf16 %v316_v6, %v312_v4  ;;  %v365_v6 = vld [vmem:[#allocation5 + $0x7f8] sm:$0xff] }
  0x8b   :  { %3048 = vmatpush1.bf16.msra.mxu1 %v3047_v9  ;;  %2858 = vmatprep.subr.bf16.mxu0 %v2857_v10  ;;  %v323_v8 = vld [vmem:[#allocation5 + $0x6a8] sm:$0xff]  ;;  %v321_v9 = vld [vmem:[#allocation5 + $0x698] sm:$0xff] }
  0x8c   :  { %3050 = vmatprep.subr.bf16.mxu1 %v3049_v14  ;;  %610 = vmatprep.mubr.f32.mxu0 %v93_v20  ;;  %v325_v10 = vld [vmem:[#allocation5 + $0x6b8] sm:$0xff]  ;;  %v2877_v13 = vpack.c.bf16 %v323_v8, %v319_v7  ;;  %v318_v14 = vld [vmem:[#allocation5 + $0x680] sm:$0xff]  ;;  %v363_v4 = vld [vmem:[#allocation5 + $0x7e8] sm:$0xff] }
  0x8d   :  { %949 = vmatprep.mubr.f32.mxu1 %v93_v20  ;;  %611 = vmatmul.mubr.f32.gmra.mrb[10].mxu0 %v92_v22  ;;  %v3069_v17 = vpack.c.bf16 %v325_v10, %v321_v9  ;;  %v331_v20 = vld [vmem:[#allocation5 + $0x6e8] sm:$0xff]  ;;  %v2897_v9 = vpack.c.bf16 %v363_v4, %v359_v3  ;;  %v358_v10 = vld [vmem:[#allocation5 + $0x7c0] sm:$0xff]  ;;  %v396_v3 = vld [vmem:[#allocation5 + $0x8f0] sm:$0xff] }
  0x8e   :  { %2860 = vmatpush1.bf16.msra.mxu0 %v2859_v21  ;;  %950 = vmatmul.mubr.f32.gmra.mrb[10].mxu1 %v92_v22  ;;  %v329_v21 = vld [vmem:[#allocation5 + $0x6d8] sm:$0xff]  ;;  %v2881_v25 = vpack.c.bf16 %v331_v20, %v327_v19  ;;  %v399_v4 = vld [vmem:[#allocation5 + $0x908] sm:$0xff] }
  0x8f   :  { %3052 = vmatpush1.bf16.msra.mxu1 %v3051_v23  ;;  %2862 = vmatprep.subr.bf16.mxu0 %v2861_v24  ;;  %v333_v22 = vld [vmem:[#allocation5 + $0x6f8] sm:$0xff]  ;;  %v2879_v23 = vpack.c.bf16 %v322_v15, %v318_v14  ;;  %v3071_v24 = vpack.c.bf16 %v324_v18, %v320_v16  ;;  %v364_v14 = vld [vmem:[#allocation5 + $0x7f0] sm:$0xff]  ;;  %v367_v15 = vld [vmem:[#allocation5 + $0x808] sm:$0xff] }
  0x90   :  { %3054 = vmatprep.subr.bf16.mxu1 %v3053_v28  ;;  %616 = vmatprep.mubr.f32.mxu0 %v99_v34  ;;  %v328_v28 = vld [vmem:[#allocation5 + $0x6d0] sm:$0xff]  ;;  %v3073_v29 = vpack.c.bf16 %v333_v22, %v329_v21  ;;  %v371_v16 = vld [vmem:[#allocation5 + $0x828] sm:$0xff]  ;;  %v373_v18 = vld [vmem:[#allocation5 + $0x838] sm:$0xff] }
  0x91   :  { %955 = vmatprep.mubr.f32.mxu1 %v99_v34  ;;  %617 = vmatmul.mubr.f32.gmra.mrb[12].mxu0 %v98_v36  ;;  %v341_v34 = vld [vmem:[#allocation5 + $0x738] sm:$0xff]  ;;  %v2901_v21 = vpack.c.bf16 %v371_v16, %v367_v15  ;;  %v366_v22 = vld [vmem:[#allocation5 + $0x800] sm:$0xff]  ;;  %v400_v15 = vld [vmem:[#allocation5 + $0x910] sm:$0xff] }
  0x92   :  { %2864 = vmatpush1.bf16.msra.mxu0 %v2863_v35  ;;  %956 = vmatmul.mubr.f32.gmra.mrb[12].mxu1 %v98_v36  ;;  %v2883_v35 = vpack.c.bf16 %v330_v27, %v326_v26  ;;  %v3075_v36 = vpack.c.bf16 %v332_v30, %v328_v28  ;;  %v3077_v41 = vpack.c.bf16 %v341_v34, %v337_v33  ;;  %v372_v26 = vld [vmem:[#allocation5 + $0x830] sm:$0xff]  ;;  %v375_v27 = vld [vmem:[#allocation5 + $0x848] sm:$0xff]  ;;  %v381_v30 = vld [vmem:[#allocation5 + $0x878] sm:$0xff] }
  0x93   :  { %3056 = vmatpush1.bf16.msra.mxu1 %v3055_v37  ;;  %2866 = vmatprep.subr.bf16.mxu0 %v2865_v38  ;;  %v2885_v37 = vpack.c.bf16 %v339_v32, %v335_v31  ;;  %v334_v38 = vld [vmem:[#allocation5 + $0x700] sm:$0xff]  ;;  %v379_v28 = vld [vmem:[#allocation5 + $0x868] sm:$0xff]  ;;  %v64_v31 = vld [vmem:[%s4645_s0 + $0x10] sm:$0xff] }
  0x94   :  { %3058 = vmatprep.subr.bf16.mxu1 %v3057_v42  ;;  %622 = vmatprep.mubr.f32.mxu0 %v105_v48  ;;  %v340_v42 = vld [vmem:[#allocation5 + $0x730] sm:$0xff]  ;;  %v2887_v47 = vpack.c.bf16 %v338_v39, %v334_v38  ;;  %v2905_v34 = vpack.c.bf16 %v379_v28, %v375_v27  ;;  %v406_v27 = vld [vmem:[#allocation5 + $0x940] sm:$0xff] }
  0x95   :  { %961 = vmatprep.mubr.f32.mxu1 %v105_v48  ;;  %623 = vmatmul.mubr.f32.gmra.mrb[14].mxu0 %v104_v50  ;;  %v3079_v48 = vpack.c.bf16 %v340_v42, %v336_v40  ;;  %v380_v39 = vld [vmem:[#allocation5 + $0x870] sm:$0xff]  ;;  %v383_v40 = vld [vmem:[#allocation5 + $0x888] sm:$0xff]  ;;  %v385_v42 = vld [vmem:[#allocation5 + $0x898] sm:$0xff] }
  0x96   :  { %2868 = vmatpush1.bf16.msra.mxu0 %v2867_v49  ;;  %962 = vmatmul.mubr.f32.gmra.mrb[14].mxu1 %v104_v50  ;;  %v2889_v49 = vpack.c.bf16 %v347_v44, %v343_v43  ;;  %v342_v50 = vld [vmem:[#allocation5 + $0x740] sm:$0xff]  ;;  %v389_v43 = vld [vmem:[#allocation5 + $0x8b8] sm:$0xff]  ;;  %v71_v44 = vld [vmem:[%s4645_s0 + $0x48] sm:$0xff] }
  0x97   :  { %3060 = vmatpush1.bf16.msra.mxu1 %v3059_v51  ;;  %2870 = vmatprep.subr.bf16.mxu0 %v2869_v52  ;;  %v346_v51 = vld [vmem:[#allocation5 + $0x760] sm:$0xff]  ;;  %v344_v52 = vld [vmem:[#allocation5 + $0x750] sm:$0xff] }
  0x98   :  { %3062 = vmatprep.subr.bf16.mxu1 %v3061_v56  ;;  %693 = vmatprep.mubr.f32.mxu0 %v65_v62  ;;  %v355_v56 = vld [vmem:[#allocation5 + $0x7a8] sm:$0xff]  ;;  %v2891_v59 = vpack.c.bf16 %v346_v51, %v342_v50  ;;  %v3083_v60 = vpack.c.bf16 %v348_v54, %v344_v52  ;;  %v386_v50 = vld [vmem:[#allocation5 + $0x8a0] sm:$0xff]  ;;  %v384_v51 = vld [vmem:[#allocation5 + $0x890] sm:$0xff]  ;;  %v3101_v52 = vpack.c.bf16 %v389_v43, %v385_v42 }
  0x99   :  { %1032 = vmatprep.mubr.f32.mxu1 %v65_v62  ;;  %v2893_v61 = vpack.c.bf16 %v355_v56, %v351_v55  ;;  %v350_v62 = vld [vmem:[#allocation5 + $0x780] sm:$0xff]  ;;  %v391_v54 = vld [vmem:[#allocation5 + $0x8c8] sm:$0xff]  ;;  %v393_v56 = vld [vmem:[#allocation5 + $0x8d8] sm:$0xff] }
  0x9a   :  { %2872 = vmatpush1.bf16.msra.mxu0 %v2871_v63  ;;  %v354_v63 = vld [vmem:[#allocation5 + $0x7a0] sm:$0xff]  ;;  %v395_v55 = vld [vmem:[#allocation5 + $0x8e8] sm:$0xff]  ;;  %v416_v43 = vld [vmem:[#allocation5 + $0x990] sm:$0xff] }
  0x9b   :  { %3064 = vmatpush1.bf16.msra.mxu1 %v3063_v0  ;;  %2874 = vmatprep.subr.bf16.mxu0 %v2873_v1  ;;  %v352_v0 = vld [vmem:[#allocation5 + $0x790] sm:$0xff]  ;;  %v3085_v1 = vpack.c.bf16 %v357_v58, %v353_v57  ;;  %v2895_v7 = vpack.c.bf16 %v354_v63, %v350_v62  ;;  %v397_v57 = vld [vmem:[#allocation5 + $0x8f8] sm:$0xff]  ;;  %v2913_v62 = vpack.c.bf16 %v395_v55, %v391_v54  ;;  %v390_v63 = vld [vmem:[#allocation5 + $0x8c0] sm:$0xff] }
  0x9c   :  { %3066 = vmatprep.subr.bf16.mxu1 %v3065_v5  ;;  %v361_v5 = vld [vmem:[#allocation5 + $0x7d8] sm:$0xff]  ;;  %v3087_v8 = vpack.c.bf16 %v356_v2, %v352_v0  ;;  %v394_v0 = vld [vmem:[#allocation5 + $0x8e0] sm:$0xff]  ;;  %v3105_v2 = vpack.c.bf16 %v397_v57, %v393_v56  ;;  %v424_v57 = vld [vmem:[#allocation5 + $0x9d0] sm:$0xff] }
  0x9d   :  { %v77_v58 = vld [vmem:[%s4645_s0 + $0x78] sm:$0xff]  ;;  %v410_v28 = vld [vmem:[#allocation5 + $0x960] sm:$0xff] }
  0x9e   :  { %2876 = vmatpush1.bf16.msra.mxu0 %v2875_v11  ;;  %v362_v11 = vld [vmem:[#allocation5 + $0x7e0] sm:$0xff] }
  0x9f   :  { %3068 = vmatpush1.bf16.msra.mxu1 %v3067_v12  ;;  %2878 = vmatprep.subr.bf16.mxu0 %v2877_v13  ;;  %v360_v12 = vld [vmem:[#allocation5 + $0x7d0] sm:$0xff]  ;;  %v3089_v13 = vpack.c.bf16 %v365_v6, %v361_v5  ;;  %v2899_v19 = vpack.c.bf16 %v362_v11, %v358_v10  ;;  %v403_v5 = vld [vmem:[#allocation5 + $0x928] sm:$0xff]  ;;  %v401_v6 = vld [vmem:[#allocation5 + $0x918] sm:$0xff] }
  0xa0   :  { %3070 = vmatprep.subr.bf16.mxu1 %v3069_v17  ;;  %v369_v17 = vld [vmem:[#allocation5 + $0x818] sm:$0xff]  ;;  %v3091_v20 = vpack.c.bf16 %v364_v14, %v360_v12  ;;  %v82_v10 = vld [vmem:[%s4645_s0 + $0xa0] sm:$0xff]  ;;  %v2917_v12 = vpack.c.bf16 %v403_v5, %v399_v4 }
  0xa1   :  { %v402_v14 = vld [vmem:[#allocation5 + $0x920] sm:$0xff] }
  0xa2   :  { %2880 = vmatpush1.bf16.msra.mxu0 %v2879_v23  ;;  %v370_v23 = vld [vmem:[#allocation5 + $0x820] sm:$0xff] }
  0xa3   :  { %3072 = vmatpush1.bf16.msra.mxu1 %v3071_v24  ;;  %2882 = vmatprep.subr.bf16.mxu0 %v2881_v25  ;;  %v368_v24 = vld [vmem:[#allocation5 + $0x810] sm:$0xff]  ;;  %v3093_v25 = vpack.c.bf16 %v373_v18, %v369_v17  ;;  %v2903_v32 = vpack.c.bf16 %v370_v23, %v366_v22  ;;  %v407_v18 = vld [vmem:[#allocation5 + $0x948] sm:$0xff]  ;;  %v89_v22 = vld [vmem:[%s4645_s0 + $0xd8] sm:$0xff] }
  0xa4   :  { %3074 = vmatprep.subr.bf16.mxu1 %v3073_v29  ;;  %v377_v29 = vld [vmem:[#allocation5 + $0x858] sm:$0xff]  ;;  %v3095_v33 = vpack.c.bf16 %v372_v26, %v368_v24  ;;  %v404_v17 = vld [vmem:[#allocation5 + $0x930] sm:$0xff]  ;;  %v418_v42 = vld [vmem:[#allocation5 + $0x9a0] sm:$0xff] }
  0xa5   :  { %v3097_v38 = vpack.c.bf16 %v381_v30, %v377_v29  ;;  %v88_v24 = vld [vmem:[%s4645_s0 + $0xd0] sm:$0xff]  ;;  %v422_v55 = vld [vmem:[#allocation5 + $0x9c0] sm:$0xff] }
  0xa6   :  { %2884 = vmatpush1.bf16.msra.mxu0 %v2883_v35  ;;  %v374_v35 = vld [vmem:[#allocation5 + $0x840] sm:$0xff]  ;;  %v408_v29 = vld [vmem:[#allocation5 + $0x950] sm:$0xff] }
  0xa7   :  { %3076 = vmatpush1.bf16.msra.mxu1 %v3075_v36  ;;  %2886 = vmatprep.subr.bf16.mxu0 %v2885_v37  ;;  %v378_v36 = vld [vmem:[#allocation5 + $0x860] sm:$0xff]  ;;  %v376_v37 = vld [vmem:[#allocation5 + $0x850] sm:$0xff] }
  0xa8   :  { %3078 = vmatprep.subr.bf16.mxu1 %v3077_v41  ;;  %v387_v41 = vld [vmem:[#allocation5 + $0x8a8] sm:$0xff]  ;;  %v2907_v45 = vpack.c.bf16 %v378_v36, %v374_v35  ;;  %v421_v35 = vld [vmem:[#allocation5 + $0x9b8] sm:$0xff]  ;;  %v426_v56 = vld [vmem:[#allocation5 + $0x9e0] sm:$0xff] }
  0xa9   :  { %v95_v36 = vld [vmem:[%s4645_s0 + $0x108] sm:$0xff]  ;;  %v430_v5 = vld [vmem:[#allocation5 + $0xa00] sm:$0xff] }
  0xaa   :  { %2888 = vmatpush1.bf16.msra.mxu0 %v2887_v47  ;;  %v3099_v47 = vpack.c.bf16 %v380_v39, %v376_v37  ;;  %v2923_v37 = vpack.c.bf16 %v410_v28, %v406_v27 }
  0xab   :  { %3080 = vmatpush1.bf16.msra.mxu1 %v3079_v48  ;;  %2890 = vmatprep.subr.bf16.mxu0 %v2889_v49  ;;  %v2909_v48 = vpack.c.bf16 %v387_v41, %v383_v40  ;;  %v382_v49 = vld [vmem:[#allocation5 + $0x880] sm:$0xff] }
  0xac   :  { %3082 = vmatprep.subr.bf16.mxu1 %v3081_v53  ;;  %v388_v53 = vld [vmem:[#allocation5 + $0x8b0] sm:$0xff]  ;;  %v414_v41 = vld [vmem:[#allocation5 + $0x980] sm:$0xff] }
  0xae   :  { %2892 = vmatpush1.bf16.msra.mxu0 %v2891_v59  ;;  %v2911_v59 = vpack.c.bf16 %v386_v50, %v382_v49  ;;  %v429_v49 = vld [vmem:[#allocation5 + $0x9f8] sm:$0xff] }
  0xaf   :  { %3084 = vmatpush1.bf16.msra.mxu1 %v3083_v60  ;;  %2894 = vmatprep.subr.bf16.mxu0 %v2893_v61  ;;  %v76_v60 = vld [vmem:[%s4645_s0 + $0x70] sm:$0xff]  ;;  %v3103_v61 = vpack.c.bf16 %v388_v53, %v384_v51  ;;  %v101_v50 = vld [vmem:[%s4645_s0 + $0x138] sm:$0xff]  ;;  %v2927_v51 = vpack.c.bf16 %v418_v42, %v414_v41  ;;  %v454_v42 = vld [vmem:[#allocation5 + $0xac0] sm:$0xff] }
  0xb0   :  { %3086 = vmatprep.subr.bf16.mxu1 %v3085_v1  ;;  %v392_v1 = vld [vmem:[#allocation5 + $0x8d0] sm:$0xff] }
  0xb1   :  { %v3107_v11 = vpack.c.bf16 %v396_v3, %v392_v1  ;;  %v2931_v1 = vpack.c.bf16 %v426_v56, %v422_v55  ;;  %v466_v55 = vld [vmem:[#allocation5 + $0xb20] sm:$0xff]  ;;  %v464_v56 = vld [vmem:[#allocation5 + $0xb10] sm:$0xff] }
  0xb2   :  { %2896 = vmatpush1.bf16.msra.mxu0 %v2895_v7  ;;  %v405_v7 = vld [vmem:[#allocation5 + $0x938] sm:$0xff] }
  0xb3   :  { %3088 = vmatpush1.bf16.msra.mxu1 %v3087_v8  ;;  %2898 = vmatprep.subr.bf16.mxu0 %v2897_v9  ;;  %v83_v8 = vld [vmem:[%s4645_s0 + $0xa8] sm:$0xff]  ;;  %v2915_v9 = vpack.c.bf16 %v394_v0, %v390_v63  ;;  %v3109_v16 = vpack.c.bf16 %v405_v7, %v401_v6  ;;  %v437_v63 = vld [vmem:[#allocation5 + $0xa38] sm:$0xff]  ;;  %v434_v6 = vld [vmem:[#allocation5 + $0xa20] sm:$0xff] }
  0xb4   :  { %3090 = vmatprep.subr.bf16.mxu1 %v3089_v13  ;;  %v398_v13 = vld [vmem:[#allocation5 + $0x900] sm:$0xff]  ;;  %v107_v0 = vld [vmem:[%s4645_s0 + $0x168] sm:$0xff]  ;;  %v432_v7 = vld [vmem:[#allocation5 + $0xa10] sm:$0xff] }
  0xb5   :  { %v2919_v23 = vpack.c.bf16 %v402_v14, %v398_v13  ;;  %v445_v13 = vld [vmem:[#allocation5 + $0xa78] sm:$0xff]  ;;  %v67_v14 = vld [vmem:[%s4645_s0 + $0x28] sm:$0xff] }
  0xb6   :  { %2900 = vmatpush1.bf16.msra.mxu0 %v2899_v19  ;;  %v411_v19 = vld [vmem:[#allocation5 + $0x968] sm:$0xff] }
  0xb7   :  { %3092 = vmatpush1.bf16.msra.mxu1 %v3091_v20  ;;  %2902 = vmatprep.subr.bf16.mxu0 %v2901_v21  ;;  %v409_v20 = vld [vmem:[#allocation5 + $0x958] sm:$0xff]  ;;  %v2921_v26 = vpack.c.bf16 %v411_v19, %v407_v18  ;;  %v438_v18 = vld [vmem:[#allocation5 + $0xa40] sm:$0xff] }
  0xb8   :  { %3094 = vmatprep.subr.bf16.mxu1 %v3093_v25  ;;  %v413_v21 = vld [vmem:[#allocation5 + $0x978] sm:$0xff]  ;;  %v3111_v25 = vpack.c.bf16 %v404_v17, %v400_v15  ;;  %v2935_v15 = vpack.c.bf16 %v434_v6, %v430_v5  ;;  %v442_v19 = vld [vmem:[#allocation5 + $0xa60] sm:$0xff]  ;;  %v476_v6 = vld [vmem:[#allocation5 + $0xb70] sm:$0xff] }
  0xb9   :  { %694 = vmatmul.mubr.f32.vlgmr.msra.gmra.mrb[0].mxu0 %v64_v31  ;;  %v3113_v30 = vpack.c.bf16 %v413_v21, %v409_v20  ;;  %v440_v20 = vld [vmem:[#allocation5 + $0xa50] sm:$0xff]  ;;  %v2939_v27 = vpack.c.bf16 %v442_v19, %v438_v18  ;;  %v487_v19 = vld [vmem:[#allocation5 + $0xbc8] sm:$0xff] }
  0xba   :  { %2904 = vmatpush1.bf16.msra.mxu0 %v2903_v32  ;;  %1033 = vmatmul.mubr.f32.vlgmr.msra.gmra.mrb[0].mxu1 %v64_v31  ;;  %v412_v31 = vld [vmem:[#allocation5 + $0x970] sm:$0xff]  ;;  %v415_v32 = vld [vmem:[#allocation5 + $0x988] sm:$0xff] }
  0xbb   :  { %3096 = vmatpush1.bf16.msra.mxu1 %v3095_v33  ;;  %2906 = vmatprep.subr.bf16.mxu0 %v2905_v34  ;;  %v419_v33 = vld [vmem:[#allocation5 + $0x9a8] sm:$0xff]  ;;  %v417_v34 = vld [vmem:[#allocation5 + $0x998] sm:$0xff]  ;;  %v3115_v39 = vpack.c.bf16 %v412_v31, %v408_v29  ;;  %v450_v31 = vld [vmem:[#allocation5 + $0xaa0] sm:$0xff] }
  0xbc   :  { %3098 = vmatprep.subr.bf16.mxu1 %v3097_v38  ;;  %699 = vmatprep.mubr.f32.mxu0 %v71_v44  ;;  %v94_v38 = vld [vmem:[%s4645_s0 + $0x100] sm:$0xff]  ;;  %v2925_v40 = vpack.c.bf16 %v419_v33, %v415_v32  ;;  %v448_v32 = vld [vmem:[#allocation5 + $0xa90] sm:$0xff] }
  0xbd   :  { %1038 = vmatprep.mubr.f32.mxu1 %v71_v44  ;;  %700 = vmatmul.mubr.f32.gmra.mrb[2].mxu0 %v70_v46  ;;  %v3117_v44 = vpack.c.bf16 %v421_v35, %v417_v34  ;;  %v452_v34 = vld [vmem:[#allocation5 + $0xab0] sm:$0xff]  ;;  %v455_v35 = vld [vmem:[#allocation5 + $0xac8] sm:$0xff] }
  0xbe   :  { %2908 = vmatpush1.bf16.msra.mxu0 %v2907_v45  ;;  %1039 = vmatmul.mubr.f32.gmra.mrb[2].mxu1 %v70_v46  ;;  %v420_v45 = vld [vmem:[#allocation5 + $0x9b0] sm:$0xff]  ;;  %v423_v46 = vld [vmem:[#allocation5 + $0x9c8] sm:$0xff] }
  0xbf   :  { %3100 = vmatpush1.bf16.msra.mxu1 %v3099_v47  ;;  %2910 = vmatprep.subr.bf16.mxu0 %v2909_v48  ;;  %v427_v47 = vld [vmem:[#allocation5 + $0x9e8] sm:$0xff]  ;;  %v425_v48 = vld [vmem:[#allocation5 + $0x9d8] sm:$0xff]  ;;  %v3119_v53 = vpack.c.bf16 %v420_v45, %v416_v43  ;;  %v458_v43 = vld [vmem:[#allocation5 + $0xae0] sm:$0xff] }
  0xc0   :  { %3102 = vmatprep.subr.bf16.mxu1 %v3101_v52  ;;  %705 = vmatprep.mubr.f32.mxu0 %v77_v58  ;;  %v100_v52 = vld [vmem:[%s4645_s0 + $0x130] sm:$0xff]  ;;  %v2929_v54 = vpack.c.bf16 %v427_v47, %v423_v46  ;;  %v463_v47 = vld [vmem:[#allocation5 + $0xb08] sm:$0xff] }
  0xc1   :  { %1044 = vmatprep.mubr.f32.mxu1 %v77_v58  ;;  %706 = vmatmul.mubr.f32.gmra.mrb[4].mxu0 %v76_v60  ;;  %v3121_v58 = vpack.c.bf16 %v429_v49, %v425_v48  ;;  %v460_v46 = vld [vmem:[#allocation5 + $0xaf0] sm:$0xff]  ;;  %v467_v48 = vld [vmem:[#allocation5 + $0xb28] sm:$0xff]  ;;  %v465_v49 = vld [vmem:[#allocation5 + $0xb18] sm:$0xff] }
  0xc2   :  { %2912 = vmatpush1.bf16.msra.mxu0 %v2911_v59  ;;  %1045 = vmatmul.mubr.f32.gmra.mrb[4].mxu1 %v76_v60  ;;  %v428_v59 = vld [vmem:[#allocation5 + $0x9f0] sm:$0xff]  ;;  %v431_v60 = vld [vmem:[#allocation5 + $0xa08] sm:$0xff] }
  0xc3   :  { %3104 = vmatpush1.bf16.msra.mxu1 %v3103_v61  ;;  %2914 = vmatprep.subr.bf16.mxu0 %v2913_v62  ;;  %v435_v61 = vld [vmem:[#allocation5 + $0xa28] sm:$0xff]  ;;  %v433_v62 = vld [vmem:[#allocation5 + $0xa18] sm:$0xff]  ;;  %v3123_v3 = vpack.c.bf16 %v428_v59, %v424_v57  ;;  %v484_v18 = vld [vmem:[#allocation5 + $0xbb0] sm:$0xff] }
  0xc4   :  { %3106 = vmatprep.subr.bf16.mxu1 %v3105_v2  ;;  %711 = vmatprep.mubr.f32.mxu0 %v83_v8  ;;  %v106_v2 = vld [vmem:[%s4645_s0 + $0x160] sm:$0xff]  ;;  %v2933_v4 = vpack.c.bf16 %v435_v61, %v431_v60  ;;  %v471_v59 = vld [vmem:[#allocation5 + $0xb48] sm:$0xff]  ;;  %v473_v61 = vld [vmem:[#allocation5 + $0xb58] sm:$0xff] }
  0xc5   :  { %1050 = vmatprep.mubr.f32.mxu1 %v83_v8  ;;  %712 = vmatmul.mubr.f32.gmra.mrb[6].mxu0 %v82_v10  ;;  %v3125_v8 = vpack.c.bf16 %v437_v63, %v433_v62  ;;  %v475_v60 = vld [vmem:[#allocation5 + $0xb68] sm:$0xff]  ;;  %v477_v62 = vld [vmem:[#allocation5 + $0xb78] sm:$0xff] }
  0xc6   :  { %2916 = vmatpush1.bf16.msra.mxu0 %v2915_v9  ;;  %1051 = vmatmul.mubr.f32.gmra.mrb[6].mxu1 %v82_v10  ;;  %v436_v9 = vld [vmem:[#allocation5 + $0xa30] sm:$0xff]  ;;  %v439_v10 = vld [vmem:[#allocation5 + $0xa48] sm:$0xff]  ;;  %v3145_v5 = vpack.c.bf16 %v477_v62, %v473_v61  ;;  %v1245_v61 = vld [vmem:[#allocation9 + $0x98] sm:$0xff] }
  0xc7   :  { %3108 = vmatpush1.bf16.msra.mxu1 %v3107_v11  ;;  %2918 = vmatprep.subr.bf16.mxu0 %v2917_v12  ;;  %v443_v11 = vld [vmem:[#allocation5 + $0xa68] sm:$0xff]  ;;  %v441_v12 = vld [vmem:[#allocation5 + $0xa58] sm:$0xff] }
  0xc8   :  { %3110 = vmatprep.subr.bf16.mxu1 %v3109_v16  ;;  %717 = vmatprep.mubr.f32.mxu0 %v89_v22  ;;  %v3127_v16 = vpack.c.bf16 %v436_v9, %v432_v7  ;;  %v2937_v17 = vpack.c.bf16 %v443_v11, %v439_v10  ;;  %v3129_v21 = vpack.c.bf16 %v445_v13, %v441_v12  ;;  %v479_v7 = vld [vmem:[#allocation5 + $0xb88] sm:$0xff]  ;;  %v481_v9 = vld [vmem:[#allocation5 + $0xb98] sm:$0xff] }
  0xc9   :  { %1056 = vmatprep.mubr.f32.mxu1 %v89_v22  ;;  %718 = vmatmul.mubr.f32.gmra.mrb[8].mxu0 %v88_v24  ;;  %v444_v22 = vld [vmem:[#allocation5 + $0xa70] sm:$0xff]  ;;  %v485_v10 = vld [vmem:[#allocation5 + $0xbb8] sm:$0xff] }
  0xca   :  { %2920 = vmatpush1.bf16.msra.mxu0 %v2919_v23  ;;  %1057 = vmatmul.mubr.f32.gmra.mrb[8].mxu1 %v88_v24  ;;  %v447_v23 = vld [vmem:[#allocation5 + $0xa88] sm:$0xff]  ;;  %v3131_v28 = vpack.c.bf16 %v444_v22, %v440_v20  ;;  %v493_v22 = vld [vmem:[#allocation5 + $0xbf8] sm:$0xff] }
  0xcb   :  { %3112 = vmatpush1.bf16.msra.mxu1 %v3111_v25  ;;  %2922 = vmatprep.subr.bf16.mxu0 %v2921_v26  ;;  %v451_v24 = vld [vmem:[#allocation5 + $0xaa8] sm:$0xff]  ;;  %v449_v25 = vld [vmem:[#allocation5 + $0xa98] sm:$0xff] }
  0xcc   :  { %3114 = vmatprep.subr.bf16.mxu1 %v3113_v30  ;;  %723 = vmatprep.mubr.f32.mxu0 %v95_v36  ;;  %v453_v26 = vld [vmem:[#allocation5 + $0xab8] sm:$0xff]  ;;  %v2941_v29 = vpack.c.bf16 %v451_v24, %v447_v23  ;;  %v446_v30 = vld [vmem:[#allocation5 + $0xa80] sm:$0xff]  ;;  %v491_v20 = vld [vmem:[#allocation5 + $0xbe8] sm:$0xff] }
  0xcd   :  { %1062 = vmatprep.mubr.f32.mxu1 %v95_v36  ;;  %724 = vmatmul.mubr.f32.gmra.mrb[10].mxu0 %v94_v38  ;;  %v3133_v33 = vpack.c.bf16 %v453_v26, %v449_v25  ;;  %v459_v36 = vld [vmem:[#allocation5 + $0xae8] sm:$0xff]  ;;  %v2961_v25 = vpack.c.bf16 %v491_v20, %v487_v19  ;;  %v486_v26 = vld [vmem:[#allocation5 + $0xbc0] sm:$0xff]  ;;  %v1256_v19 = vld [vmem:[#allocation9 + $0xf0] sm:$0xff] }
  0xce   :  { %2924 = vmatpush1.bf16.msra.mxu0 %v2923_v37  ;;  %1063 = vmatmul.mubr.f32.gmra.mrb[10].mxu1 %v94_v38  ;;  %v457_v37 = vld [vmem:[#allocation5 + $0xad8] sm:$0xff]  ;;  %v2945_v41 = vpack.c.bf16 %v459_v36, %v455_v35 }
  0xcf   :  { %3116 = vmatpush1.bf16.msra.mxu1 %v3115_v39  ;;  %2926 = vmatprep.subr.bf16.mxu0 %v2925_v40  ;;  %v461_v38 = vld [vmem:[#allocation5 + $0xaf8] sm:$0xff]  ;;  %v2943_v39 = vpack.c.bf16 %v450_v31, %v446_v30  ;;  %v3135_v40 = vpack.c.bf16 %v452_v34, %v448_v32  ;;  %v492_v30 = vld [vmem:[#allocation5 + $0xbf0] sm:$0xff] }
  0xd0   :  { %3118 = vmatprep.subr.bf16.mxu1 %v3117_v44  ;;  %729 = vmatprep.mubr.f32.mxu0 %v101_v50  ;;  %v456_v44 = vld [vmem:[#allocation5 + $0xad0] sm:$0xff]  ;;  %v3137_v45 = vpack.c.bf16 %v461_v38, %v457_v37  ;;  %v1233_v34 = vld [vmem:[#allocation9 + $0x38] sm:$0xff]  ;;  %v1226_v38 = vld [vmem:[#allocation9] sm:$0xff] }
  0xd1   :  { %1068 = vmatprep.mubr.f32.mxu1 %v101_v50  ;;  %730 = vmatmul.mubr.f32.gmra.mrb[12].mxu0 %v100_v52  ;;  %v469_v50 = vld [vmem:[#allocation5 + $0xb38] sm:$0xff]  ;;  %v1227_v31 = vld [vmem:[#allocation9 + $0x8] sm:$0xff] }
  0xd2   :  { %2928 = vmatpush1.bf16.msra.mxu0 %v2927_v51  ;;  %1069 = vmatmul.mubr.f32.gmra.mrb[12].mxu1 %v100_v52  ;;  %v2947_v51 = vpack.c.bf16 %v458_v43, %v454_v42  ;;  %v3139_v52 = vpack.c.bf16 %v460_v46, %v456_v44  ;;  %v3141_v57 = vpack.c.bf16 %v469_v50, %v465_v49  ;;  %v1231_v32 = vld [vmem:[#allocation9 + $0x28] sm:$0xff]  ;;  %v1232_v42 = vld [vmem:[#allocation9 + $0x30] sm:$0xff]  ;;  %v1234_v50 = vld [vmem:[#allocation9 + $0x40] sm:$0xff] }
  0xd3   :  { %3120 = vmatpush1.bf16.msra.mxu1 %v3119_v53  ;;  %2930 = vmatprep.subr.bf16.mxu0 %v2929_v54  ;;  %v2949_v53 = vpack.c.bf16 %v467_v48, %v463_v47  ;;  %v462_v54 = vld [vmem:[#allocation5 + $0xb00] sm:$0xff]  ;;  %v4174_v37 = vpack.c.bf16 %v1231_v32, %v1227_v31  ;;  %v1235_v43 = vld [vmem:[#allocation9 + $0x48] sm:$0xff]  ;;  %v1260_v32 = vld [vmem:[#allocation9 + $0x110] sm:$0xff] }
  0xd4   :  { %3122 = vmatprep.subr.bf16.mxu1 %v3121_v58  ;;  %735 = vmatprep.mubr.f32.mxu0 %v107_v0  ;;  %v468_v58 = vld [vmem:[#allocation5 + $0xb30] sm:$0xff]  ;;  %v2951_v63 = vpack.c.bf16 %v466_v55, %v462_v54  ;;  %v1237_v47 = vld [vmem:[#allocation9 + $0x58] sm:$0xff] }
  0xd5   :  { %1074 = vmatprep.mubr.f32.mxu1 %v107_v0  ;;  %736 = vmatmul.mubr.f32.gmra.mrb[14].mxu0 %v106_v2  ;;  %v3143_v0 = vpack.c.bf16 %v468_v58, %v464_v56  ;;  %v1239_v44 = vld [vmem:[#allocation9 + $0x68] sm:$0xff]  ;;  %v1241_v48 = vld [vmem:[#allocation9 + $0x78] sm:$0xff]  ;;  %v1236_v54 = vld [vmem:[#allocation9 + $0x50] sm:$0xff] }
  0xd6   :  { %2932 = vmatpush1.bf16.msra.mxu0 %v2931_v1  ;;  %1075 = vmatmul.mubr.f32.gmra.mrb[14].mxu1 %v106_v2  ;;  %v2953_v1 = vpack.c.bf16 %v475_v60, %v471_v59  ;;  %v470_v2 = vld [vmem:[#allocation5 + $0xb40] sm:$0xff]  ;;  %v1240_v55 = vld [vmem:[#allocation9 + $0x70] sm:$0xff]  ;;  %v4192_v56 = vpack.c.bf16 %v1241_v48, %v1237_v47  ;;  %v1247_v58 = vld [vmem:[#allocation9 + $0xa8] sm:$0xff] }
  0xd7   :  { %3124 = vmatpush1.bf16.msra.mxu1 %v3123_v3  ;;  %2934 = vmatprep.subr.bf16.mxu0 %v2933_v4  ;;  %v474_v3 = vld [vmem:[#allocation5 + $0xb60] sm:$0xff]  ;;  %v472_v4 = vld [vmem:[#allocation5 + $0xb50] sm:$0xff]  ;;  %v97_v47 = vld [vmem:[%s4645_s0 + $0x118] sm:$0xff] }
  0xd8   :  { %3126 = vmatprep.subr.bf16.mxu1 %v3125_v8  ;;  %806 = vmatprep.mubr.f32.mxu0 %v67_v14  ;;  %v483_v8 = vld [vmem:[#allocation5 + $0xba8] sm:$0xff]  ;;  %v2955_v11 = vpack.c.bf16 %v474_v3, %v470_v2  ;;  %v3147_v12 = vpack.c.bf16 %v476_v6, %v472_v4  ;;  %v72_v59 = vld [vmem:[%s4645_s0 + $0x50] sm:$0xff]  ;;  %v1249_v62 = vld [vmem:[#allocation9 + $0xb8] sm:$0xff] }
  0xd9   :  { %1145 = vmatprep.mubr.f32.mxu1 %v67_v14  ;;  %v2957_v13 = vpack.c.bf16 %v483_v8, %v479_v7  ;;  %v478_v14 = vld [vmem:[#allocation5 + $0xb80] sm:$0xff]  ;;  %v79_v2 = vld [vmem:[%s4645_s0 + $0x88] sm:$0xff]  ;;  %v1244_v4 = vld [vmem:[#allocation9 + $0x90] sm:$0xff]  ;;  %v4210_v6 = vpack.c.bf16 %v1249_v62, %v1245_v61 }
  0xda   :  { %2936 = vmatpush1.bf16.msra.mxu0 %v2935_v15  ;;  %v482_v15 = vld [vmem:[#allocation5 + $0xba0] sm:$0xff]  ;;  %v1251_v7 = vld [vmem:[#allocation9 + $0xc8] sm:$0xff] }
  0xdb   :  { %3128 = vmatpush1.bf16.msra.mxu1 %v3127_v16  ;;  %2938 = vmatprep.subr.bf16.mxu0 %v2937_v17  ;;  %v480_v16 = vld [vmem:[#allocation5 + $0xb90] sm:$0xff]  ;;  %v3149_v17 = vpack.c.bf16 %v485_v10, %v481_v9  ;;  %v2959_v23 = vpack.c.bf16 %v482_v15, %v478_v14  ;;  %v78_v9 = vld [vmem:[%s4645_s0 + $0x80] sm:$0xff] }
  0xdc   :  { %3130 = vmatprep.subr.bf16.mxu1 %v3129_v21  ;;  %v489_v21 = vld [vmem:[#allocation5 + $0xbd8] sm:$0xff]  ;;  %v3151_v24 = vpack.c.bf16 %v484_v18, %v480_v16  ;;  %v1255_v8 = vld [vmem:[#allocation9 + $0xe8] sm:$0xff]  ;;  %v1250_v14 = vld [vmem:[#allocation9 + $0xc0] sm:$0xff] }
  0xdd   :  { %v1254_v15 = vld [vmem:[#allocation9 + $0xe0] sm:$0xff]  ;;  %v85_v16 = vld [vmem:[%s4645_s0 + $0xb8] sm:$0xff] }
  0xde   :  { %2940 = vmatpush1.bf16.msra.mxu0 %v2939_v27  ;;  %v490_v27 = vld [vmem:[#allocation5 + $0xbe0] sm:$0xff]  ;;  %v1252_v18 = vld [vmem:[#allocation9 + $0xd0] sm:$0xff] }
  0xdf   :  { %3132 = vmatpush1.bf16.msra.mxu1 %v3131_v28  ;;  %2942 = vmatprep.subr.bf16.mxu0 %v2941_v29  ;;  %v488_v28 = vld [vmem:[#allocation5 + $0xbd0] sm:$0xff]  ;;  %v3153_v29 = vpack.c.bf16 %v493_v22, %v489_v21  ;;  %v2963_v35 = vpack.c.bf16 %v490_v27, %v486_v26  ;;  %v1265_v26 = vld [vmem:[#allocation9 + $0x138] sm:$0xff]  ;;  %v4237_v27 = vpack.c.bf16 %v1256_v19, %v1252_v18  ;;  %v1282_v19 = vld [vmem:[#allocation9 + $0x1c0] sm:$0xff] }
  0xe0   :  { %3134 = vmatprep.subr.bf16.mxu1 %v3133_v33  ;;  %v1229_v33 = vld [vmem:[#allocation9 + $0x18] sm:$0xff]  ;;  %v3155_v36 = vpack.c.bf16 %v492_v30, %v488_v28  ;;  %v1259_v21 = vld [vmem:[#allocation9 + $0x108] sm:$0xff]  ;;  %v1258_v28 = vld [vmem:[#allocation9 + $0x100] sm:$0xff] }
  0xe1   :  { %v1263_v22 = vld [vmem:[#allocation9 + $0x128] sm:$0xff]  ;;  %v1281_v61 = vld [vmem:[#allocation9 + $0x1b8] sm:$0xff] }
  0xe2   :  { %2944 = vmatpush1.bf16.msra.mxu0 %v2943_v39  ;;  %v1230_v39 = vld [vmem:[#allocation9 + $0x20] sm:$0xff]  ;;  %v4243_v31 = vpack.c.bf16 %v1263_v22, %v1259_v21  ;;  %v109_v22 = vld [vmem:[%s4645_s0 + $0x178] sm:$0xff] }
  0xe3   :  { %3136 = vmatpush1.bf16.msra.mxu1 %v3135_v40  ;;  %2946 = vmatprep.subr.bf16.mxu0 %v2945_v41  ;;  %v4176_v40 = vpack.c.bf16 %v1233_v34, %v1229_v33  ;;  %v1228_v41 = vld [vmem:[#allocation9 + $0x10] sm:$0xff]  ;;  %v4181_v46 = vpack.c.bf16 %v1230_v39, %v1226_v38  ;;  %v91_v30 = vld [vmem:[%s4645_s0 + $0xe8] sm:$0xff]  ;;  %v90_v38 = vld [vmem:[%s4645_s0 + $0xe0] sm:$0xff] }
  0xe4   :  { %3138 = vmatprep.subr.bf16.mxu1 %v3137_v45  ;;  %v66_v45 = vld [vmem:[%s4645_s0 + $0x20] sm:$0xff]  ;;  %v4184_v49 = vpack.c.bf16 %v1232_v42, %v1228_v41  ;;  %v1264_v33 = vld [vmem:[#allocation9 + $0x130] sm:$0xff] }
  0xe5   :  { %v1269_v41 = vld [vmem:[#allocation9 + $0x158] sm:$0xff]  ;;  %v1286_v21 = vld [vmem:[#allocation9 + $0x1e0] sm:$0xff] }
  0xe6   :  { %2948 = vmatpush1.bf16.msra.mxu0 %v2947_v51  ;;  %v1238_v51 = vld [vmem:[#allocation9 + $0x60] sm:$0xff]  ;;  %v1273_v42 = vld [vmem:[#allocation9 + $0x178] sm:$0xff] }
  0xe7   :  { %3140 = vmatpush1.bf16.msra.mxu1 %v3139_v52  ;;  %2950 = vmatprep.subr.bf16.mxu0 %v2949_v53  ;;  %v73_v52 = vld [vmem:[%s4645_s0 + $0x58] sm:$0xff]  ;;  %v4190_v53 = vpack.c.bf16 %v1239_v44, %v1235_v43  ;;  %v4198_v60 = vpack.c.bf16 %v1238_v51, %v1234_v50  ;;  %v4255_v43 = vpack.c.bf16 %v1264_v33, %v1260_v32  ;;  %v1266_v44 = vld [vmem:[#allocation9 + $0x140] sm:$0xff]  ;;  %v4006_v33 = vmov 0.0  }
  0xe8   :  { %3142 = vmatprep.subr.bf16.mxu1 %v3141_v57  ;;  %v1243_v57 = vld [vmem:[#allocation9 + $0x88] sm:$0xff]  ;;  %v1268_v50 = vld [vmem:[#allocation9 + $0x150] sm:$0xff] }
  0xe9   :  { %v4207_v3 = vpack.c.bf16 %v1247_v58, %v1243_v57  ;;  %v1272_v51 = vld [vmem:[#allocation9 + $0x170] sm:$0xff] }
  0xea   :  { %2952 = vmatpush1.bf16.msra.mxu0 %v2951_v63  ;;  %v4201_v63 = vpack.c.bf16 %v1240_v55, %v1236_v54  ;;  %v1275_v54 = vld [vmem:[#allocation9 + $0x188] sm:$0xff]  ;;  %v4273_v62 = vpack.c.bf16 %v1272_v51, %v1268_v50 }
  0xeb   :  { %3144 = vmatpush1.bf16.msra.mxu1 %v3143_v0  ;;  %2954 = vmatprep.subr.bf16.mxu0 %v2953_v1  ;;  %v1242_v0 = vld [vmem:[#allocation9 + $0x80] sm:$0xff]  ;;  %v1279_v55 = vld [vmem:[#allocation9 + $0x1a8] sm:$0xff] }
  0xec   :  { %3146 = vmatprep.subr.bf16.mxu1 %v3145_v5  ;;  %v1246_v1 = vld [vmem:[#allocation9 + $0xa0] sm:$0xff]  ;;  %v1248_v5 = vld [vmem:[#allocation9 + $0xb0] sm:$0xff] }
  0xed   :  { %v4216_v10 = vpack.c.bf16 %v1246_v1, %v1242_v0  ;;  %v96_v57 = vld [vmem:[%s4645_s0 + $0x110] sm:$0xff]  ;;  %v1274_v0 = vld [vmem:[#allocation9 + $0x180] sm:$0xff] }
  0xee   :  { %2956 = vmatpush1.bf16.msra.mxu0 %v2955_v11  ;;  %v1253_v11 = vld [vmem:[#allocation9 + $0xd8] sm:$0xff]  ;;  %v1278_v1 = vld [vmem:[#allocation9 + $0x1a0] sm:$0xff] }
  0xef   :  { %3148 = vmatpush1.bf16.msra.mxu1 %v3147_v12  ;;  %2958 = vmatprep.subr.bf16.mxu0 %v2957_v13  ;;  %v1257_v12 = vld [vmem:[#allocation9 + $0xf8] sm:$0xff]  ;;  %v4219_v13 = vpack.c.bf16 %v1248_v5, %v1244_v4  ;;  %v4279_v4 = vpack.c.bf16 %v1279_v55, %v1275_v54  ;;  %v1276_v5 = vld [vmem:[#allocation9 + $0x190] sm:$0xff] }
  0xf0   :  { %3150 = vmatprep.subr.bf16.mxu1 %v3149_v17  ;;  %v4225_v17 = vpack.c.bf16 %v1255_v8, %v1251_v7  ;;  %v4228_v20 = vpack.c.bf16 %v1257_v12, %v1253_v11  ;;  %v1280_v7 = vld [vmem:[#allocation9 + $0x1b0] sm:$0xff]  ;;  %v1287_v11 = vld [vmem:[#allocation9 + $0x1e8] sm:$0xff]  ;;  %v102_v12 = vld [vmem:[%s4645_s0 + $0x140] sm:$0xff] }
  0xf1   :  { %v4291_v18 = vpack.c.bf16 %v1280_v7, %v1276_v5 }
  0xf2   :  { %2960 = vmatpush1.bf16.msra.mxu0 %v2959_v23  ;;  %v84_v23 = vld [vmem:[%s4645_s0 + $0xb0] sm:$0xff] }
  0xf3   :  { %3152 = vmatpush1.bf16.msra.mxu1 %v3151_v24  ;;  %2962 = vmatprep.subr.bf16.mxu0 %v2961_v25  ;;  %v4234_v24 = vpack.c.bf16 %v1254_v15, %v1250_v14  ;;  %v1261_v25 = vld [vmem:[#allocation9 + $0x118] sm:$0xff]  ;;  %v4288_v14 = vpack.c.bf16 %v1278_v1, %v1274_v0 }
  0xf4   :  { %3154 = vmatprep.subr.bf16.mxu1 %v3153_v29  ;;  %v1262_v29 = vld [vmem:[#allocation9 + $0x120] sm:$0xff]  ;;  %v4246_v34 = vpack.c.bf16 %v1265_v26, %v1261_v25  ;;  %v1285_v15 = vld [vmem:[#allocation9 + $0x1d8] sm:$0xff]  ;;  %v1284_v25 = vld [vmem:[#allocation9 + $0x1d0] sm:$0xff] }
  0xf5   :  { %v4252_v39 = vpack.c.bf16 %v1262_v29, %v1258_v28  ;;  %v1288_v26 = vld [vmem:[#allocation9 + $0x1f0] sm:$0xff] }
  0xf6   :  { %2964 = vmatpush1.bf16.msra.mxu0 %v2963_v35  ;;  %v1267_v35 = vld [vmem:[#allocation9 + $0x148] sm:$0xff]  ;;  %v4309_v32 = vpack.c.bf16 %v1288_v26, %v1284_v25 }
  0xf7   :  { %3156 = vmatpush1.bf16.msra.mxu1 %v3155_v36  ;;  %3158 = vmatprep.subr.bf16.mxu0 %v4174_v37  ;;  %v1271_v36 = vld [vmem:[#allocation9 + $0x168] sm:$0xff] }
  0xf8   :  { %3190 = vmatprep.subr.bf16.mxu1 %v4176_v40  ;;  %v4261_v48 = vpack.c.bf16 %v1271_v36, %v1267_v35  ;;  %v108_v29 = vld [vmem:[%s4645_s0 + $0x170] sm:$0xff]  ;;  %v496_v35 = vlaneseq }
  0xf9   :  { %807 = vmatmul.mubr.f32.vlgmr.msra.gmra.mrb[0].mxu0 %v66_v45 }
  0xfa   :  { %1146 = vmatmul.mubr.f32.vlgmr.msra.gmra.mrb[0].mxu1 %v66_v45  ;;  %3160 = vmatpush1.bf16.msra.mxu0 %v4181_v46  ;;  %v1270_v45 = vld [vmem:[#allocation9 + $0x160] sm:$0xff]  ;;  %v497_v36 = vshrl.u32 %v496_v35, 7 }
  0xfb   :  { %3192 = vmatpush1.bf16.msra.mxu1 %v4184_v49  ;;  %812 = vmatprep.mubr.f32.mxu0 %v73_v52  ;;  %v4270_v58 = vpack.c.bf16 %v1270_v45, %v1266_v44 }
  0xfc   :  { %1151 = vmatprep.mubr.f32.mxu1 %v73_v52  ;;  %3162 = vmatprep.subr.bf16.mxu0 %v4190_v53  ;;  %v4264_v52 = vpack.c.bf16 %v1273_v42, %v1269_v41  ;;  %v494_v41 = vld [vmem:[#allocation7] sm:$0xf]  ;;  %v502_v42 = vsub.s32 1, %v497_v36  ;;  %v506_v50 = vsub.s32 2, %v497_v36 }
  0xfd   :  { %813 = vmatmul.mubr.f32.gmra.mrb[2].mxu0 %v72_v59  ;;  %3194 = vmatprep.subr.bf16.mxu1 %v4192_v56 }
  0xfe   :  { %1152 = vmatmul.mubr.f32.gmra.mrb[2].mxu1 %v72_v59  ;;  %3164 = vmatpush1.bf16.msra.mxu0 %v4198_v60  ;;  %v1277_v59 = vld [vmem:[#allocation9 + $0x198] sm:$0xff]  ;;  %v4357_v45 = vrot.slane %v494_v41, %v502_v42  ;;  %v4361_v0 = vrot.slane %v494_v41, %v506_v50 }
  0xff   :  { %3196 = vmatpush1.bf16.msra.mxu1 %v4201_v63  ;;  %818 = vmatprep.mubr.f32.mxu0 %v79_v2  ;;  %v4282_v8 = vpack.c.bf16 %v1281_v61, %v1277_v59 }
 0x100   :  { %1157 = vmatprep.mubr.f32.mxu1 %v79_v2  ;;  %3166 = vmatprep.subr.bf16.mxu0 %v4207_v3  ;;  %v103_v2 = vld [vmem:[%s4645_s0 + $0x148] sm:$0xff] }
 0x101   :  { %819 = vmatmul.mubr.f32.gmra.mrb[4].mxu0 %v78_v9  ;;  %3198 = vmatprep.subr.bf16.mxu1 %v4210_v6 }
 0x102   :  { %1158 = vmatmul.mubr.f32.gmra.mrb[4].mxu1 %v78_v9  ;;  %3168 = vmatpush1.bf16.msra.mxu0 %v4216_v10  ;;  %v1283_v9 = vld [vmem:[#allocation9 + $0x1c8] sm:$0xff] }
 0x103   :  { %3200 = vmatpush1.bf16.msra.mxu1 %v4219_v13  ;;  %824 = vmatprep.mubr.f32.mxu0 %v85_v16 }
 0x104   :  { %1163 = vmatprep.mubr.f32.mxu1 %v85_v16  ;;  %3170 = vmatprep.subr.bf16.mxu0 %v4225_v17  ;;  %v1289_v16 = vld [vmem:[#allocation9 + $0x1f8] sm:$0xff] }
 0x105   :  { %825 = vmatmul.mubr.f32.gmra.mrb[6].mxu0 %v84_v23  ;;  %3202 = vmatprep.subr.bf16.mxu1 %v4228_v20  ;;  %v4300_v28 = vpack.c.bf16 %v1289_v16, %v1285_v15 }
 0x106   :  { %1164 = vmatmul.mubr.f32.gmra.mrb[6].mxu1 %v84_v23  ;;  %3172 = vmatpush1.bf16.msra.mxu0 %v4234_v24  ;;  %v4297_v23 = vpack.c.bf16 %v1287_v11, %v1283_v9 }
 0x107   :  { %3204 = vmatpush1.bf16.msra.mxu1 %v4237_v27  ;;  %830 = vmatprep.mubr.f32.mxu0 %v91_v30 }
 0x108   :  { %1169 = vmatprep.mubr.f32.mxu1 %v91_v30  ;;  %3174 = vmatprep.subr.bf16.mxu0 %v4243_v31  ;;  %v4306_v30 = vpack.c.bf16 %v1286_v21, %v1282_v19 }
 0x109   :  { %831 = vmatmul.mubr.f32.gmra.mrb[8].mxu0 %v90_v38  ;;  %3206 = vmatprep.subr.bf16.mxu1 %v4246_v34 }
 0x10a   :  { %1170 = vmatmul.mubr.f32.gmra.mrb[8].mxu1 %v90_v38  ;;  %3176 = vmatpush1.bf16.msra.mxu0 %v4252_v39  ;;  %v498_v38 = vsub.s32 0, %v497_v36 }
 0x10b   :  { %3208 = vmatpush1.bf16.msra.mxu1 %v4255_v43  ;;  %836 = vmatprep.mubr.f32.mxu0 %v97_v47 }
 0x10c   :  { %1175 = vmatprep.mubr.f32.mxu1 %v97_v47  ;;  %3178 = vmatprep.subr.bf16.mxu0 %v4261_v48  ;;  %v4355_v44 = vrot.slane %v494_v41, %v498_v38 }
 0x10d   :  { %837 = vmatmul.mubr.f32.gmra.mrb[10].mxu0 %v96_v57  ;;  %3210 = vmatprep.subr.bf16.mxu1 %v4264_v52 }
 0x10e   :  { %1176 = vmatmul.mubr.f32.gmra.mrb[10].mxu1 %v96_v57  ;;  %3180 = vmatpush1.bf16.msra.mxu0 %v4270_v58 }
 0x10f   :  { %3212 = vmatpush1.bf16.msra.mxu1 %v4273_v62  ;;  %842 = vmatprep.mubr.f32.mxu0 %v103_v2 }
 0x110   :  { %1181 = vmatprep.mubr.f32.mxu1 %v103_v2  ;;  %3182 = vmatprep.subr.bf16.mxu0 %v4279_v4  ;;  %v510_v2 = vsub.s32 3, %v497_v36 }
 0x111   :  { %843 = vmatmul.mubr.f32.gmra.mrb[12].mxu0 %v102_v12  ;;  %3214 = vmatprep.subr.bf16.mxu1 %v4282_v8 }
 0x112   :  { %1182 = vmatmul.mubr.f32.gmra.mrb[12].mxu1 %v102_v12  ;;  %3184 = vmatpush1.bf16.msra.mxu0 %v4288_v14  ;;  %v4364_v7 = vrot.slane %v494_v41, %v510_v2 }
 0x113   :  { %3216 = vmatpush1.bf16.msra.mxu1 %v4291_v18  ;;  %848 = vmatprep.mubr.f32.mxu0 %v109_v22 }
 0x114   :  { %1187 = vmatprep.mubr.f32.mxu1 %v109_v22  ;;  %3186 = vmatprep.subr.bf16.mxu0 %v4297_v23 }
 0x115   :  { %849 = vmatmul.mubr.f32.gmra.mrb[14].mxu0 %v108_v29  ;;  %3218 = vmatprep.subr.bf16.mxu1 %v4300_v28 }
 0x116   :  { %1188 = vmatmul.mubr.f32.gmra.mrb[14].mxu1 %v108_v29  ;;  %3188 = vmatpush1.bf16.msra.mxu0 %v4306_v30 }
 0x117   :  { %3220 = vmatpush1.bf16.msra.mxu1 %v4309_v32  ;;  %1359 = vmatprep.mubr.f32.mxu0 %v4006_v33 }
 0x118   :  { %1430 = vmatprep.mubr.f32.mxu1 %v4006_v33  ;;  %3222 = vmatprep.subr.bf16.mxu0 %v4174_v37 }
 0x119   :  { %1360 = vmatmul.mubr.f32.vlgmr.msra.gmra.mrb[0].mxu0 %v4006_v33  ;;  %3254 = vmatprep.subr.bf16.mxu1 %v4176_v40 }
 0x11a   :  { %1431 = vmatmul.mubr.f32.vlgmr.msra.gmra.mrb[0].mxu1 %v4006_v33  ;;  %3224 = vmatpush1.bf16.msra.mxu0 %v4181_v46 }
 0x11b   :  { %3256 = vmatpush1.bf16.msra.mxu1 %v4184_v49  ;;  %3226 = vmatprep.subr.bf16.mxu0 %v4190_v53 }
 0x11c   :  { %3258 = vmatprep.subr.bf16.mxu1 %v4192_v56  ;;  %1539 = vmatprep.mubr.f32.mxu0 %v4006_v33 }
 0x11d   :  { %1610 = vmatprep.mubr.f32.mxu1 %v4006_v33 }
 0x11e   :  { %3228 = vmatpush1.bf16.msra.mxu0 %v4198_v60 }
 0x11f   :  { %3260 = vmatpush1.bf16.msra.mxu1 %v4201_v63  ;;  %3230 = vmatprep.subr.bf16.mxu0 %v4207_v3 }
 0x120   :  { %3262 = vmatprep.subr.bf16.mxu1 %v4210_v6 }
 0x122   :  { %3232 = vmatpush1.bf16.msra.mxu0 %v4216_v10 }
 0x123   :  { %3264 = vmatpush1.bf16.msra.mxu1 %v4219_v13  ;;  %3234 = vmatprep.subr.bf16.mxu0 %v4225_v17 }
 0x124   :  { %3266 = vmatprep.subr.bf16.mxu1 %v4228_v20 }
 0x126   :  { %3236 = vmatpush1.bf16.msra.mxu0 %v4234_v24 }
 0x127   :  { %3268 = vmatpush1.bf16.msra.mxu1 %v4237_v27  ;;  %3238 = vmatprep.subr.bf16.mxu0 %v4243_v31 }
 0x128   :  { %3270 = vmatprep.subr.bf16.mxu1 %v4246_v34 }
 0x12a   :  { %3240 = vmatpush1.bf16.msra.mxu0 %v4252_v39 }
 0x12b   :  { %3272 = vmatpush1.bf16.msra.mxu1 %v4255_v43  ;;  %3242 = vmatprep.subr.bf16.mxu0 %v4261_v48 }
 0x12c   :  { %3274 = vmatprep.subr.bf16.mxu1 %v4264_v52 }
 0x12e   :  { %3244 = vmatpush1.bf16.msra.mxu0 %v4270_v58 }
 0x12f   :  { %3276 = vmatpush1.bf16.msra.mxu1 %v4273_v62  ;;  %3246 = vmatprep.subr.bf16.mxu0 %v4279_v4 }
 0x130   :  { %3278 = vmatprep.subr.bf16.mxu1 %v4282_v8 }
 0x132   :  { %3248 = vmatpush1.bf16.msra.mxu0 %v4288_v14 }
 0x133   :  { %3280 = vmatpush1.bf16.msra.mxu1 %v4291_v18  ;;  %3250 = vmatprep.subr.bf16.mxu0 %v4297_v23 }
 0x134   :  { %3282 = vmatprep.subr.bf16.mxu1 %v4300_v28 }
 0x136   :  { %3252 = vmatpush1.bf16.msra.mxu0 %v4306_v30 }
 0x137   :  { %3284 = vmatpush1.bf16.msra.mxu1 %v4309_v32  ;;  %3286 = vmatprep.subr.bf16.mxu0 %v4174_v37 }
 0x138   :  { %3318 = vmatprep.subr.bf16.mxu1 %v4176_v40 }
 0x1ec   :  { %v1361_v47 = vpop.f32.mrb[0].mxu0 }
 0x1ed   :  { %v3669_v51 = vadd.f32 %v1361_v47, %v4355_v44  ;;  %v1432_v54 = vpop.f32.mrb[0].mxu1  ;;  %v1363_v55 = vpop.f32.mrb[1].mxu0 }
 0x1ee   :  { %v3670_v57 = vadd.f32 %v1363_v55, %v4357_v45  ;;  %v1434_v59 = vpop.f32.mrb[1].mxu1  ;;  %v3685_v5 = vadd.f32 %v1432_v54, %v4361_v0 }
 0x1ef   :  { %v2742_v61 = vmul.f32 -1.442695, %v3669_v51  ;;  %v3686_v11 = vadd.f32 %v1434_v59, %v4364_v7 }
 0x1f0   :  { %v2743_v1 = vmul.f32 -1.442695, %v3670_v57  ;;  %v2744_v9 = vmul.f32 -1.442695, %v3685_v5 }
 0x1f1   :  { %3803 = vpow2.f32 %v2742_v61 }
 0x1f2   :  { %3805 = vpow2.f32 %v2743_v1 }
 0x1f3   :  { %3807 = vpow2.f32 %v2744_v9 }
 0x1f4   :  { %3809 = vtanh.f32 %v3686_v11 }
 0x1fb   :  { %v3804_v12 = vpop.eup %3803 }
 0x1fc   :  { %v1450_v15 = vadd.f32 1.0, %v3804_v12  ;;  %v3806_v16 = vpop.eup %3805 }
 0x1fd   :  { %v1451_v19 = vadd.f32 1.0, %v3806_v16  ;;  %v3808_v21 = vpop.eup %3807 }
 0x1fe   :  { %3811 = vrcp.f32 %v1450_v15  ;;  %v3810_v22 = vpop.eup %3809  ;;  %v1452_v35 = vadd.f32 1.0, %v3808_v21 }
 0x1ff   :  { %3813 = vrcp.f32 %v1451_v19 }
 0x200   :  { %3815 = vrcp.f32 %v1452_v35 }
 0x208   :  { %v3812_v25 = vpop.eup %3811 }
 0x209   :  { %v1462_v26 = vmul.f32 %v3812_v25, %v3810_v22  ;;  %v3814_v29 = vpop.eup %3813 }
 0x20a   :  { %v1461_v36 = vmul.f32 0.0, %v3814_v29  ;;  %v3816_v41 = vpop.eup %3815 }
 0x20c   :  { %v4367_v38 = vadd.f32 %v1462_v26, %v1461_v36 }
 0x20e   :  { %3817 = vtanh.f32 %v4367_v38 }
 0x218   :  { %v3818_v42 = vpop.eup %3817 }
 0x219   :  { %v1465_v47 = vmul.f32 %v3818_v42, %v3816_v41 }
 0x21b   :  { %1468 = vst [vmem:[%s4649_s4] sm:$0xff] %v1465_v47  ;;  %1540 = vmatmul.mubr.f32.vlgmr.msra.gmra.mrb[2].mxu0 %v1465_v47  ;;  %1611 = vmatmul.mubr.f32.vlgmr.msra.gmra.mrb[2].mxu1 %v1465_v47 }
 0x21c   :  { %3288 = vmatpush1.bf16.msra.mxu0 %v4181_v46  ;;  %3320 = vmatpush1.bf16.msra.mxu1 %v4184_v49 }
 0x21d   :  { %3290 = vmatprep.subr.bf16.mxu0 %v4190_v53  ;;  %3322 = vmatprep.subr.bf16.mxu1 %v4192_v56 }
 0x21e   :  { %1720 = vmatprep.mubr.f32.mxu0 %v4006_v33  ;;  %1791 = vmatprep.mubr.f32.mxu1 %v4006_v33 }
 0x220   :  { %3292 = vmatpush1.bf16.msra.mxu0 %v4198_v60  ;;  %3324 = vmatpush1.bf16.msra.mxu1 %v4201_v63 }
 0x221   :  { %3294 = vmatprep.subr.bf16.mxu0 %v4207_v3  ;;  %3326 = vmatprep.subr.bf16.mxu1 %v4210_v6 }
 0x224   :  { %3296 = vmatpush1.bf16.msra.mxu0 %v4216_v10  ;;  %3328 = vmatpush1.bf16.msra.mxu1 %v4219_v13 }
 0x225   :  { %3298 = vmatprep.subr.bf16.mxu0 %v4225_v17  ;;  %3330 = vmatprep.subr.bf16.mxu1 %v4228_v20 }
 0x228   :  { %3300 = vmatpush1.bf16.msra.mxu0 %v4234_v24  ;;  %3332 = vmatpush1.bf16.msra.mxu1 %v4237_v27 }
 0x229   :  { %3302 = vmatprep.subr.bf16.mxu0 %v4243_v31  ;;  %3334 = vmatprep.subr.bf16.mxu1 %v4246_v34 }
 0x22c   :  { %3304 = vmatpush1.bf16.msra.mxu0 %v4252_v39  ;;  %3336 = vmatpush1.bf16.msra.mxu1 %v4255_v43 }
 0x22d   :  { %3306 = vmatprep.subr.bf16.mxu0 %v4261_v48  ;;  %3338 = vmatprep.subr.bf16.mxu1 %v4264_v52 }
 0x230   :  { %3308 = vmatpush1.bf16.msra.mxu0 %v4270_v58  ;;  %3340 = vmatpush1.bf16.msra.mxu1 %v4273_v62 }
 0x231   :  { %3310 = vmatprep.subr.bf16.mxu0 %v4279_v4  ;;  %3342 = vmatprep.subr.bf16.mxu1 %v4282_v8 }
 0x234   :  { %3312 = vmatpush1.bf16.msra.mxu0 %v4288_v14  ;;  %3344 = vmatpush1.bf16.msra.mxu1 %v4291_v18 }
 0x235   :  { %3314 = vmatprep.subr.bf16.mxu0 %v4297_v23  ;;  %3346 = vmatprep.subr.bf16.mxu1 %v4300_v28 }
 0x238   :  { %3316 = vmatpush1.bf16.msra.mxu0 %v4306_v30  ;;  %3348 = vmatpush1.bf16.msra.mxu1 %v4309_v32 }
 0x239   :  { %3350 = vmatprep.subr.bf16.mxu0 %v4174_v37  ;;  %3382 = vmatprep.subr.bf16.mxu1 %v4176_v40 }
 0x2ee   :  { %v1541_v50 = vpop.f32.mrb[2].mxu0  ;;  %v1612_v51 = vpop.f32.mrb[2].mxu1 }
 0x2ef   :  { %v3671_v54 = vadd.f32 %v1541_v50, %v4355_v44  ;;  %v1543_v55 = vpop.f32.mrb[3].mxu0  ;;  %v1614_v57 = vpop.f32.mrb[3].mxu1  ;;  %v3687_v2 = vadd.f32 %v1612_v51, %v4361_v0 }
 0x2f0   :  { %v3672_v59 = vadd.f32 %v1543_v55, %v4357_v45  ;;  %v3688_v5 = vadd.f32 %v1614_v57, %v4364_v7 }
 0x2f1   :  { %v2745_v61 = vmul.f32 -1.442695, %v3671_v54  ;;  %v2747_v9 = vmul.f32 -1.442695, %v3687_v2 }
 0x2f2   :  { %v2746_v1 = vmul.f32 -1.442695, %v3672_v59 }
 0x2f3   :  { %3819 = vpow2.f32 %v2745_v61 }
 0x2f4   :  { %3821 = vpow2.f32 %v2746_v1 }
 0x2f5   :  { %3823 = vtanh.f32 %v3688_v5 }
 0x2f6   :  { %3825 = vpow2.f32 %v2747_v9 }
 0x2fd   :  { %v3820_v11 = vpop.eup %3819 }
 0x2fe   :  { %v1630_v12 = vadd.f32 1.0, %v3820_v11  ;;  %v3822_v15 = vpop.eup %3821 }
 0x2ff   :  { %v1631_v16 = vadd.f32 1.0, %v3822_v15  ;;  %v3824_v19 = vpop.eup %3823 }
 0x300   :  { %3827 = vrcp.f32 %v1630_v12  ;;  %v3826_v21 = vpop.eup %3825 }
 0x301   :  { %3829 = vrcp.f32 %v1631_v16  ;;  %v1632_v29 = vadd.f32 1.0, %v3826_v21 }
 0x303   :  { %3831 = vrcp.f32 %v1632_v29 }
 0x30a   :  { %v3828_v22 = vpop.eup %3827 }
 0x30b   :  { %v1642_v25 = vmul.f32 %v3828_v22, %v3824_v19  ;;  %v3830_v26 = vpop.eup %3829 }
 0x30c   :  { %v1641_v35 = vmul.f32 %v3830_v26, %v4367_v38 }
 0x30d   :  { %v3832_v41 = vpop.eup %3831 }
 0x30e   :  { %v4412_v36 = vadd.f32 %v1642_v25, %v1641_v35 }
 0x310   :  { %3833 = vtanh.f32 %v4412_v36 }
 0x31a   :  { %v3834_v42 = vpop.eup %3833 }
 0x31b   :  { %v1645_v47 = vmul.f32 %v3834_v42, %v3832_v41 }
 0x31d   :  { %2748 = vst [vmem:[%s4649_s4 + $0x8] sm:$0xff] %v1645_v47  ;;  %1721 = vmatmul.mubr.f32.vlgmr.msra.gmra.mrb[4].mxu0 %v1645_v47  ;;  %1792 = vmatmul.mubr.f32.vlgmr.msra.gmra.mrb[4].mxu1 %v1645_v47 }
 0x31e   :  { %3352 = vmatpush1.bf16.msra.mxu0 %v4181_v46  ;;  %3384 = vmatpush1.bf16.msra.mxu1 %v4184_v49 }
 0x31f   :  { %3354 = vmatprep.subr.bf16.mxu0 %v4190_v53  ;;  %3386 = vmatprep.subr.bf16.mxu1 %v4192_v56 }
 0x320   :  { %1901 = vmatprep.mubr.f32.mxu0 %v4006_v33  ;;  %1972 = vmatprep.mubr.f32.mxu1 %v4006_v33 }
 0x322   :  { %3356 = vmatpush1.bf16.msra.mxu0 %v4198_v60  ;;  %3388 = vmatpush1.bf16.msra.mxu1 %v4201_v63 }
 0x323   :  { %3358 = vmatprep.subr.bf16.mxu0 %v4207_v3  ;;  %3390 = vmatprep.subr.bf16.mxu1 %v4210_v6 }
 0x326   :  { %3360 = vmatpush1.bf16.msra.mxu0 %v4216_v10  ;;  %3392 = vmatpush1.bf16.msra.mxu1 %v4219_v13 }
 0x327   :  { %3362 = vmatprep.subr.bf16.mxu0 %v4225_v17  ;;  %3394 = vmatprep.subr.bf16.mxu1 %v4228_v20 }
 0x32a   :  { %3364 = vmatpush1.bf16.msra.mxu0 %v4234_v24  ;;  %3396 = vmatpush1.bf16.msra.mxu1 %v4237_v27 }
 0x32b   :  { %3366 = vmatprep.subr.bf16.mxu0 %v4243_v31  ;;  %3398 = vmatprep.subr.bf16.mxu1 %v4246_v34 }
 0x32e   :  { %3368 = vmatpush1.bf16.msra.mxu0 %v4252_v39  ;;  %3400 = vmatpush1.bf16.msra.mxu1 %v4255_v43 }
 0x32f   :  { %3370 = vmatprep.subr.bf16.mxu0 %v4261_v48  ;;  %3402 = vmatprep.subr.bf16.mxu1 %v4264_v52 }
 0x332   :  { %3372 = vmatpush1.bf16.msra.mxu0 %v4270_v58  ;;  %3404 = vmatpush1.bf16.msra.mxu1 %v4273_v62 }
 0x333   :  { %3374 = vmatprep.subr.bf16.mxu0 %v4279_v4  ;;  %3406 = vmatprep.subr.bf16.mxu1 %v4282_v8 }
 0x336   :  { %3376 = vmatpush1.bf16.msra.mxu0 %v4288_v14  ;;  %3408 = vmatpush1.bf16.msra.mxu1 %v4291_v18 }
 0x337   :  { %3378 = vmatprep.subr.bf16.mxu0 %v4297_v23  ;;  %3410 = vmatprep.subr.bf16.mxu1 %v4300_v28 }
 0x33a   :  { %3380 = vmatpush1.bf16.msra.mxu0 %v4306_v30  ;;  %3412 = vmatpush1.bf16.msra.mxu1 %v4309_v32 }
 0x33b   :  { %3414 = vmatprep.subr.bf16.mxu0 %v4174_v37  ;;  %3446 = vmatprep.subr.bf16.mxu1 %v4176_v40 }
 0x3f0   :  { %v1722_v38 = vpop.f32.mrb[4].mxu0  ;;  %v1793_v50 = vpop.f32.mrb[4].mxu1 }
 0x3f1   :  { %v3673_v51 = vadd.f32 %v1722_v38, %v4355_v44  ;;  %v1724_v54 = vpop.f32.mrb[5].mxu0  ;;  %v1795_v55 = vpop.f32.mrb[5].mxu1  ;;  %v3689_v1 = vadd.f32 %v1793_v50, %v4361_v0 }
 0x3f2   :  { %v3674_v57 = vadd.f32 %v1724_v54, %v4357_v45  ;;  %v3690_v2 = vadd.f32 %v1795_v55, %v4364_v7 }
 0x3f3   :  { %v2749_v59 = vmul.f32 -1.442695, %v3673_v51  ;;  %v2751_v5 = vmul.f32 -1.442695, %v3689_v1 }
 0x3f4   :  { %v2750_v61 = vmul.f32 -1.442695, %v3674_v57 }
 0x3f5   :  { %3835 = vpow2.f32 %v2749_v59 }
 0x3f6   :  { %3837 = vpow2.f32 %v2750_v61 }
 0x3f7   :  { %3839 = vtanh.f32 %v3690_v2 }
 0x3f8   :  { %3841 = vpow2.f32 %v2751_v5 }
 0x3ff   :  { %v3836_v9 = vpop.eup %3835 }
 0x400   :  { %v1811_v11 = vadd.f32 1.0, %v3836_v9  ;;  %v3838_v12 = vpop.eup %3837 }
 0x401   :  { %v1812_v15 = vadd.f32 1.0, %v3838_v12  ;;  %v3840_v16 = vpop.eup %3839 }
 0x402   :  { %3843 = vrcp.f32 %v1811_v11  ;;  %v3842_v19 = vpop.eup %3841 }
 0x403   :  { %3845 = vrcp.f32 %v1812_v15  ;;  %v1813_v26 = vadd.f32 1.0, %v3842_v19 }
 0x405   :  { %3847 = vrcp.f32 %v1813_v26 }
 0x40c   :  { %v3844_v21 = vpop.eup %3843 }
 0x40d   :  { %v1823_v22 = vmul.f32 %v3844_v21, %v3840_v16  ;;  %v3846_v25 = vpop.eup %3845 }
 0x40e   :  { %v1822_v29 = vmul.f32 %v3846_v25, %v4412_v36 }
 0x40f   :  { %v3848_v41 = vpop.eup %3847 }
 0x410   :  { %v4457_v35 = vadd.f32 %v1823_v22, %v1822_v29 }
 0x412   :  { %3849 = vtanh.f32 %v4457_v35 }
 0x41c   :  { %v3850_v42 = vpop.eup %3849 }
 0x41d   :  { %v1826_v47 = vmul.f32 %v3850_v42, %v3848_v41 }
 0x41f   :  { %2752 = vst [vmem:[%s4649_s4 + $0x10] sm:$0xff] %v1826_v47  ;;  %1902 = vmatmul.mubr.f32.vlgmr.msra.gmra.mrb[6].mxu0 %v1826_v47  ;;  %1973 = vmatmul.mubr.f32.vlgmr.msra.gmra.mrb[6].mxu1 %v1826_v47 }
 0x420   :  { %3416 = vmatpush1.bf16.msra.mxu0 %v4181_v46  ;;  %3448 = vmatpush1.bf16.msra.mxu1 %v4184_v49 }
 0x421   :  { %3418 = vmatprep.subr.bf16.mxu0 %v4190_v53  ;;  %3450 = vmatprep.subr.bf16.mxu1 %v4192_v56 }
 0x422   :  { %2082 = vmatprep.mubr.f32.mxu0 %v4006_v33  ;;  %2153 = vmatprep.mubr.f32.mxu1 %v4006_v33 }
 0x424   :  { %3420 = vmatpush1.bf16.msra.mxu0 %v4198_v60  ;;  %3452 = vmatpush1.bf16.msra.mxu1 %v4201_v63 }
 0x425   :  { %3422 = vmatprep.subr.bf16.mxu0 %v4207_v3  ;;  %3454 = vmatprep.subr.bf16.mxu1 %v4210_v6 }
 0x428   :  { %3424 = vmatpush1.bf16.msra.mxu0 %v4216_v10  ;;  %3456 = vmatpush1.bf16.msra.mxu1 %v4219_v13 }
 0x429   :  { %3426 = vmatprep.subr.bf16.mxu0 %v4225_v17  ;;  %3458 = vmatprep.subr.bf16.mxu1 %v4228_v20 }
 0x42c   :  { %3428 = vmatpush1.bf16.msra.mxu0 %v4234_v24  ;;  %3460 = vmatpush1.bf16.msra.mxu1 %v4237_v27 }
 0x42d   :  { %3430 = vmatprep.subr.bf16.mxu0 %v4243_v31  ;;  %3462 = vmatprep.subr.bf16.mxu1 %v4246_v34 }
 0x430   :  { %3432 = vmatpush1.bf16.msra.mxu0 %v4252_v39  ;;  %3464 = vmatpush1.bf16.msra.mxu1 %v4255_v43 }
 0x431   :  { %3434 = vmatprep.subr.bf16.mxu0 %v4261_v48  ;;  %3466 = vmatprep.subr.bf16.mxu1 %v4264_v52 }
 0x434   :  { %3436 = vmatpush1.bf16.msra.mxu0 %v4270_v58  ;;  %3468 = vmatpush1.bf16.msra.mxu1 %v4273_v62 }
 0x435   :  { %3438 = vmatprep.subr.bf16.mxu0 %v4279_v4  ;;  %3470 = vmatprep.subr.bf16.mxu1 %v4282_v8 }
 0x438   :  { %3440 = vmatpush1.bf16.msra.mxu0 %v4288_v14  ;;  %3472 = vmatpush1.bf16.msra.mxu1 %v4291_v18 }
 0x439   :  { %3442 = vmatprep.subr.bf16.mxu0 %v4297_v23  ;;  %3474 = vmatprep.subr.bf16.mxu1 %v4300_v28 }
 0x43c   :  { %3444 = vmatpush1.bf16.msra.mxu0 %v4306_v30  ;;  %3476 = vmatpush1.bf16.msra.mxu1 %v4309_v32 }
 0x43d   :  { %3478 = vmatprep.subr.bf16.mxu0 %v4174_v37  ;;  %3510 = vmatprep.subr.bf16.mxu1 %v4176_v40 }
 0x4f2   :  { %v1903_v36 = vpop.f32.mrb[6].mxu0  ;;  %v1974_v38 = vpop.f32.mrb[6].mxu1 }
 0x4f3   :  { %v3675_v50 = vadd.f32 %v1903_v36, %v4355_v44  ;;  %v1905_v51 = vpop.f32.mrb[7].mxu0  ;;  %v1976_v54 = vpop.f32.mrb[7].mxu1  ;;  %v3691_v61 = vadd.f32 %v1974_v38, %v4361_v0 }
 0x4f4   :  { %v3676_v55 = vadd.f32 %v1905_v51, %v4357_v45  ;;  %v3692_v1 = vadd.f32 %v1976_v54, %v4364_v7 }
 0x4f5   :  { %v2753_v57 = vmul.f32 -1.442695, %v3675_v50  ;;  %v2755_v2 = vmul.f32 -1.442695, %v3691_v61 }
 0x4f6   :  { %v2754_v59 = vmul.f32 -1.442695, %v3676_v55 }
 0x4f7   :  { %3851 = vpow2.f32 %v2753_v57 }
 0x4f8   :  { %3853 = vpow2.f32 %v2754_v59 }
 0x4f9   :  { %3855 = vtanh.f32 %v3692_v1 }
 0x4fa   :  { %3857 = vpow2.f32 %v2755_v2 }
 0x501   :  { %v3852_v5 = vpop.eup %3851 }
 0x502   :  { %v1992_v9 = vadd.f32 1.0, %v3852_v5  ;;  %v3854_v11 = vpop.eup %3853 }
 0x503   :  { %v1993_v12 = vadd.f32 1.0, %v3854_v11  ;;  %v3856_v15 = vpop.eup %3855 }
 0x504   :  { %3859 = vrcp.f32 %v1992_v9  ;;  %v3858_v16 = vpop.eup %3857 }
 0x505   :  { %3861 = vrcp.f32 %v1993_v12  ;;  %v1994_v25 = vadd.f32 1.0, %v3858_v16 }
 0x507   :  { %3863 = vrcp.f32 %v1994_v25 }
 0x50e   :  { %v3860_v19 = vpop.eup %3859 }
 0x50f   :  { %v2004_v21 = vmul.f32 %v3860_v19, %v3856_v15  ;;  %v3862_v22 = vpop.eup %3861 }
 0x510   :  { %v2003_v26 = vmul.f32 %v3862_v22, %v4457_v35 }
 0x511   :  { %v3864_v41 = vpop.eup %3863 }
 0x512   :  { %v4502_v29 = vadd.f32 %v2004_v21, %v2003_v26 }
 0x514   :  { %3865 = vtanh.f32 %v4502_v29 }
 0x51e   :  { %v3866_v42 = vpop.eup %3865 }
 0x51f   :  { %v2007_v47 = vmul.f32 %v3866_v42, %v3864_v41 }
 0x521   :  { %2756 = vst [vmem:[%s4649_s4 + $0x18] sm:$0xff] %v2007_v47  ;;  %2083 = vmatmul.mubr.f32.vlgmr.msra.gmra.mrb[8].mxu0 %v2007_v47  ;;  %2154 = vmatmul.mubr.f32.vlgmr.msra.gmra.mrb[8].mxu1 %v2007_v47 }
 0x522   :  { %3480 = vmatpush1.bf16.msra.mxu0 %v4181_v46  ;;  %3512 = vmatpush1.bf16.msra.mxu1 %v4184_v49 }
 0x523   :  { %3482 = vmatprep.subr.bf16.mxu0 %v4190_v53  ;;  %3514 = vmatprep.subr.bf16.mxu1 %v4192_v56 }
 0x524   :  { %2263 = vmatprep.mubr.f32.mxu0 %v4006_v33  ;;  %2334 = vmatprep.mubr.f32.mxu1 %v4006_v33 }
 0x526   :  { %3484 = vmatpush1.bf16.msra.mxu0 %v4198_v60  ;;  %3516 = vmatpush1.bf16.msra.mxu1 %v4201_v63 }
 0x527   :  { %3486 = vmatprep.subr.bf16.mxu0 %v4207_v3  ;;  %3518 = vmatprep.subr.bf16.mxu1 %v4210_v6 }
 0x52a   :  { %3488 = vmatpush1.bf16.msra.mxu0 %v4216_v10  ;;  %3520 = vmatpush1.bf16.msra.mxu1 %v4219_v13 }
 0x52b   :  { %3490 = vmatprep.subr.bf16.mxu0 %v4225_v17  ;;  %3522 = vmatprep.subr.bf16.mxu1 %v4228_v20 }
 0x52e   :  { %3492 = vmatpush1.bf16.msra.mxu0 %v4234_v24  ;;  %3524 = vmatpush1.bf16.msra.mxu1 %v4237_v27 }
 0x52f   :  { %3494 = vmatprep.subr.bf16.mxu0 %v4243_v31  ;;  %3526 = vmatprep.subr.bf16.mxu1 %v4246_v34 }
 0x532   :  { %3496 = vmatpush1.bf16.msra.mxu0 %v4252_v39  ;;  %3528 = vmatpush1.bf16.msra.mxu1 %v4255_v43 }
 0x533   :  { %3498 = vmatprep.subr.bf16.mxu0 %v4261_v48  ;;  %3530 = vmatprep.subr.bf16.mxu1 %v4264_v52 }
 0x536   :  { %3500 = vmatpush1.bf16.msra.mxu0 %v4270_v58  ;;  %3532 = vmatpush1.bf16.msra.mxu1 %v4273_v62 }
 0x537   :  { %3502 = vmatprep.subr.bf16.mxu0 %v4279_v4  ;;  %3534 = vmatprep.subr.bf16.mxu1 %v4282_v8 }
 0x53a   :  { %3504 = vmatpush1.bf16.msra.mxu0 %v4288_v14  ;;  %3536 = vmatpush1.bf16.msra.mxu1 %v4291_v18 }
 0x53b   :  { %3506 = vmatprep.subr.bf16.mxu0 %v4297_v23  ;;  %3538 = vmatprep.subr.bf16.mxu1 %v4300_v28 }
 0x53e   :  { %3508 = vmatpush1.bf16.msra.mxu0 %v4306_v30  ;;  %3540 = vmatpush1.bf16.msra.mxu1 %v4309_v32 }
 0x53f   :  { %3542 = vmatprep.subr.bf16.mxu0 %v4174_v37  ;;  %3574 = vmatprep.subr.bf16.mxu1 %v4176_v40 }
 0x5f4   :  { %v2084_v35 = vpop.f32.mrb[8].mxu0  ;;  %v2155_v36 = vpop.f32.mrb[8].mxu1 }
 0x5f5   :  { %v3677_v38 = vadd.f32 %v2084_v35, %v4355_v44  ;;  %v2086_v50 = vpop.f32.mrb[9].mxu0  ;;  %v2157_v51 = vpop.f32.mrb[9].mxu1  ;;  %v3693_v59 = vadd.f32 %v2155_v36, %v4361_v0 }
 0x5f6   :  { %v3678_v54 = vadd.f32 %v2086_v50, %v4357_v45  ;;  %v3694_v61 = vadd.f32 %v2157_v51, %v4364_v7 }
 0x5f7   :  { %v2757_v55 = vmul.f32 -1.442695, %v3677_v38  ;;  %v2759_v1 = vmul.f32 -1.442695, %v3693_v59 }
 0x5f8   :  { %v2758_v57 = vmul.f32 -1.442695, %v3678_v54 }
 0x5f9   :  { %3867 = vpow2.f32 %v2757_v55 }
 0x5fa   :  { %3869 = vpow2.f32 %v2758_v57 }
 0x5fb   :  { %3871 = vtanh.f32 %v3694_v61 }
 0x5fc   :  { %3873 = vpow2.f32 %v2759_v1 }
 0x603   :  { %v3868_v2 = vpop.eup %3867 }
 0x604   :  { %v2173_v5 = vadd.f32 1.0, %v3868_v2  ;;  %v3870_v9 = vpop.eup %3869 }
 0x605   :  { %v2174_v11 = vadd.f32 1.0, %v3870_v9  ;;  %v3872_v12 = vpop.eup %3871 }
 0x606   :  { %3875 = vrcp.f32 %v2173_v5  ;;  %v3874_v15 = vpop.eup %3873 }
 0x607   :  { %3877 = vrcp.f32 %v2174_v11  ;;  %v2175_v22 = vadd.f32 1.0, %v3874_v15 }
 0x609   :  { %3879 = vrcp.f32 %v2175_v22 }
 0x610   :  { %v3876_v16 = vpop.eup %3875 }
 0x611   :  { %v2185_v19 = vmul.f32 %v3876_v16, %v3872_v12  ;;  %v3878_v21 = vpop.eup %3877 }
 0x612   :  { %v2184_v25 = vmul.f32 %v3878_v21, %v4502_v29 }
 0x613   :  { %v3880_v41 = vpop.eup %3879 }
 0x614   :  { %v4547_v26 = vadd.f32 %v2185_v19, %v2184_v25 }
 0x616   :  { %3881 = vtanh.f32 %v4547_v26 }
 0x620   :  { %v3882_v42 = vpop.eup %3881 }
 0x621   :  { %v2188_v47 = vmul.f32 %v3882_v42, %v3880_v41 }
 0x623   :  { %2760 = vst [vmem:[%s4649_s4 + $0x20] sm:$0xff] %v2188_v47  ;;  %2264 = vmatmul.mubr.f32.vlgmr.msra.gmra.mrb[10].mxu0 %v2188_v47  ;;  %2335 = vmatmul.mubr.f32.vlgmr.msra.gmra.mrb[10].mxu1 %v2188_v47 }
 0x624   :  { %3544 = vmatpush1.bf16.msra.mxu0 %v4181_v46  ;;  %3576 = vmatpush1.bf16.msra.mxu1 %v4184_v49 }
 0x625   :  { %3546 = vmatprep.subr.bf16.mxu0 %v4190_v53  ;;  %3578 = vmatprep.subr.bf16.mxu1 %v4192_v56 }
 0x626   :  { %2444 = vmatprep.mubr.f32.mxu0 %v4006_v33  ;;  %2515 = vmatprep.mubr.f32.mxu1 %v4006_v33 }
 0x628   :  { %3548 = vmatpush1.bf16.msra.mxu0 %v4198_v60  ;;  %3580 = vmatpush1.bf16.msra.mxu1 %v4201_v63 }
 0x629   :  { %3550 = vmatprep.subr.bf16.mxu0 %v4207_v3  ;;  %3582 = vmatprep.subr.bf16.mxu1 %v4210_v6 }
 0x62c   :  { %3552 = vmatpush1.bf16.msra.mxu0 %v4216_v10  ;;  %3584 = vmatpush1.bf16.msra.mxu1 %v4219_v13 }
 0x62d   :  { %3554 = vmatprep.subr.bf16.mxu0 %v4225_v17  ;;  %3586 = vmatprep.subr.bf16.mxu1 %v4228_v20 }
 0x630   :  { %3556 = vmatpush1.bf16.msra.mxu0 %v4234_v24  ;;  %3588 = vmatpush1.bf16.msra.mxu1 %v4237_v27 }
 0x631   :  { %3558 = vmatprep.subr.bf16.mxu0 %v4243_v31  ;;  %3590 = vmatprep.subr.bf16.mxu1 %v4246_v34 }
 0x634   :  { %3560 = vmatpush1.bf16.msra.mxu0 %v4252_v39  ;;  %3592 = vmatpush1.bf16.msra.mxu1 %v4255_v43 }
 0x635   :  { %3562 = vmatprep.subr.bf16.mxu0 %v4261_v48  ;;  %3594 = vmatprep.subr.bf16.mxu1 %v4264_v52 }
 0x638   :  { %3564 = vmatpush1.bf16.msra.mxu0 %v4270_v58  ;;  %3596 = vmatpush1.bf16.msra.mxu1 %v4273_v62 }
 0x639   :  { %3566 = vmatprep.subr.bf16.mxu0 %v4279_v4  ;;  %3598 = vmatprep.subr.bf16.mxu1 %v4282_v8 }
 0x63c   :  { %3568 = vmatpush1.bf16.msra.mxu0 %v4288_v14  ;;  %3600 = vmatpush1.bf16.msra.mxu1 %v4291_v18 }
 0x63d   :  { %3570 = vmatprep.subr.bf16.mxu0 %v4297_v23  ;;  %3602 = vmatprep.subr.bf16.mxu1 %v4300_v28 }
 0x640   :  { %3572 = vmatpush1.bf16.msra.mxu0 %v4306_v30  ;;  %3604 = vmatpush1.bf16.msra.mxu1 %v4309_v32 }
 0x641   :  { %3606 = vmatprep.subr.bf16.mxu0 %v4174_v37  ;;  %3638 = vmatprep.subr.bf16.mxu1 %v4176_v40 }
 0x6f6   :  { %v2265_v29 = vpop.f32.mrb[10].mxu0  ;;  %v2336_v35 = vpop.f32.mrb[10].mxu1 }
 0x6f7   :  { %v3679_v36 = vadd.f32 %v2265_v29, %v4355_v44  ;;  %v2267_v38 = vpop.f32.mrb[11].mxu0  ;;  %v2338_v50 = vpop.f32.mrb[11].mxu1  ;;  %v3695_v57 = vadd.f32 %v2336_v35, %v4361_v0 }
 0x6f8   :  { %v3680_v51 = vadd.f32 %v2267_v38, %v4357_v45  ;;  %v3696_v59 = vadd.f32 %v2338_v50, %v4364_v7 }
 0x6f9   :  { %v2761_v54 = vmul.f32 -1.442695, %v3679_v36  ;;  %v2763_v61 = vmul.f32 -1.442695, %v3695_v57 }
 0x6fa   :  { %v2762_v55 = vmul.f32 -1.442695, %v3680_v51 }
 0x6fb   :  { %3883 = vpow2.f32 %v2761_v54 }
 0x6fc   :  { %3885 = vpow2.f32 %v2762_v55 }
 0x6fd   :  { %3887 = vtanh.f32 %v3696_v59 }
 0x6fe   :  { %3889 = vpow2.f32 %v2763_v61 }
 0x705   :  { %v3884_v37 = vpop.eup %3883 }
 0x706   :  { %v2354_v1 = vadd.f32 1.0, %v3884_v37  ;;  %v3886_v40 = vpop.eup %3885 }
 0x707   :  { %v2355_v2 = vadd.f32 1.0, %v3886_v40  ;;  %v3888_v5 = vpop.eup %3887 }
 0x708   :  { %3891 = vrcp.f32 %v2354_v1  ;;  %v3890_v9 = vpop.eup %3889 }
 0x709   :  { %3893 = vrcp.f32 %v2355_v2  ;;  %v2356_v16 = vadd.f32 1.0, %v3890_v9 }
 0x70b   :  { %3895 = vrcp.f32 %v2356_v16 }
 0x712   :  { %v3892_v11 = vpop.eup %3891 }
 0x713   :  { %v2366_v12 = vmul.f32 %v3892_v11, %v3888_v5  ;;  %v3894_v15 = vpop.eup %3893 }
 0x714   :  { %v2365_v19 = vmul.f32 %v3894_v15, %v4547_v26 }
 0x715   :  { %v3896_v22 = vpop.eup %3895 }
 0x716   :  { %v4592_v21 = vadd.f32 %v2366_v12, %v2365_v19 }
 0x718   :  { %3897 = vtanh.f32 %v4592_v21 }
 0x722   :  { %v3898_v25 = vpop.eup %3897 }
 0x723   :  { %v2369_v41 = vmul.f32 %v3898_v25, %v3896_v22 }
 0x725   :  { %2764 = vst [vmem:[%s4649_s4 + $0x28] sm:$0xff] %v2369_v41  ;;  %2445 = vmatmul.mubr.f32.vlgmr.msra.gmra.mrb[12].mxu0 %v2369_v41  ;;  %2516 = vmatmul.mubr.f32.vlgmr.msra.gmra.mrb[12].mxu1 %v2369_v41 }
 0x726   :  { %3608 = vmatpush1.bf16.msra.mxu0 %v4181_v46  ;;  %3640 = vmatpush1.bf16.msra.mxu1 %v4184_v49 }
 0x727   :  { %3610 = vmatprep.subr.bf16.mxu0 %v4190_v53  ;;  %3642 = vmatprep.subr.bf16.mxu1 %v4192_v56 }
 0x728   :  { %2625 = vmatprep.mubr.f32.mxu0 %v4006_v33  ;;  %2696 = vmatprep.mubr.f32.mxu1 %v4006_v33 }
 0x72a   :  { %3612 = vmatpush1.bf16.msra.mxu0 %v4198_v60  ;;  %3644 = vmatpush1.bf16.msra.mxu1 %v4201_v63 }
 0x72b   :  { %3614 = vmatprep.subr.bf16.mxu0 %v4207_v3  ;;  %3646 = vmatprep.subr.bf16.mxu1 %v4210_v6 }
 0x72e   :  { %3616 = vmatpush1.bf16.msra.mxu0 %v4216_v10  ;;  %3648 = vmatpush1.bf16.msra.mxu1 %v4219_v13 }
 0x72f   :  { %3618 = vmatprep.subr.bf16.mxu0 %v4225_v17  ;;  %3650 = vmatprep.subr.bf16.mxu1 %v4228_v20 }
 0x732   :  { %3620 = vmatpush1.bf16.msra.mxu0 %v4234_v24  ;;  %3652 = vmatpush1.bf16.msra.mxu1 %v4237_v27 }
 0x733   :  { %3622 = vmatprep.subr.bf16.mxu0 %v4243_v31  ;;  %3654 = vmatprep.subr.bf16.mxu1 %v4246_v34 }
 0x736   :  { %3624 = vmatpush1.bf16.msra.mxu0 %v4252_v39  ;;  %3656 = vmatpush1.bf16.msra.mxu1 %v4255_v43 }
 0x737   :  { %3626 = vmatprep.subr.bf16.mxu0 %v4261_v48  ;;  %3658 = vmatprep.subr.bf16.mxu1 %v4264_v52 }
 0x73a   :  { %3628 = vmatpush1.bf16.msra.mxu0 %v4270_v58  ;;  %3660 = vmatpush1.bf16.msra.mxu1 %v4273_v62 }
 0x73b   :  { %3630 = vmatprep.subr.bf16.mxu0 %v4279_v4  ;;  %3662 = vmatprep.subr.bf16.mxu1 %v4282_v8 }
 0x73e   :  { %3632 = vmatpush1.bf16.msra.mxu0 %v4288_v14  ;;  %3664 = vmatpush1.bf16.msra.mxu1 %v4291_v18 }
 0x73f   :  { %3634 = vmatprep.subr.bf16.mxu0 %v4297_v23  ;;  %3666 = vmatprep.subr.bf16.mxu1 %v4300_v28 }
 0x742   :  { %3636 = vmatpush1.bf16.msra.mxu0 %v4306_v30  ;;  %3668 = vmatpush1.bf16.msra.mxu1 %v4309_v32 }
 0x7f8   :  { %v2446_v46 = vpop.f32.mrb[12].mxu0  ;;  %v2517_v49 = vpop.f32.mrb[12].mxu1 }
 0x7f9   :  { %v3681_v53 = vadd.f32 %v2446_v46, %v4355_v44  ;;  %v2448_v56 = vpop.f32.mrb[13].mxu0  ;;  %v2519_v60 = vpop.f32.mrb[13].mxu1  ;;  %v3697_v10 = vadd.f32 %v2517_v49, %v4361_v0 }
 0x7fa   :  { %v3682_v63 = vadd.f32 %v2448_v56, %v4357_v45  ;;  %v3698_v13 = vadd.f32 %v2519_v60, %v4364_v7 }
 0x7fb   :  { %v2765_v3 = vmul.f32 -1.442695, %v3681_v53  ;;  %v2767_v17 = vmul.f32 -1.442695, %v3697_v10 }
 0x7fc   :  { %v2766_v6 = vmul.f32 -1.442695, %v3682_v63 }
 0x7fd   :  { %3899 = vpow2.f32 %v2765_v3 }
 0x7fe   :  { %3901 = vpow2.f32 %v2766_v6 }
 0x7ff   :  { %3903 = vtanh.f32 %v3698_v13 }
 0x800   :  { %3905 = vpow2.f32 %v2767_v17 }
 0x807   :  { %v3900_v20 = vpop.eup %3899 }
 0x808   :  { %v2535_v24 = vadd.f32 1.0, %v3900_v20  ;;  %v3902_v27 = vpop.eup %3901 }
 0x809   :  { %v2536_v31 = vadd.f32 1.0, %v3902_v27  ;;  %v3904_v34 = vpop.eup %3903 }
 0x80a   :  { %3907 = vrcp.f32 %v2535_v24  ;;  %v3906_v39 = vpop.eup %3905 }
 0x80b   :  { %3909 = vrcp.f32 %v2536_v31  ;;  %v2537_v58 = vadd.f32 1.0, %v3906_v39 }
 0x80d   :  { %3911 = vrcp.f32 %v2537_v58 }
 0x814   :  { %v3908_v43 = vpop.eup %3907 }
 0x815   :  { %v2547_v48 = vmul.f32 %v3908_v43, %v3904_v34  ;;  %v3910_v52 = vpop.eup %3909 }
 0x816   :  { %v2546_v62 = vmul.f32 %v3910_v52, %v4592_v21 }
 0x817   :  { %v3912_v8 = vpop.eup %3911 }
 0x818   :  { %v2548_v4 = vadd.f32 %v2547_v48, %v2546_v62 }
 0x81a   :  { %3913 = vtanh.f32 %v2548_v4 }
 0x824   :  { %v3914_v14 = vpop.eup %3913 }
 0x825   :  { %v2550_v18 = vmul.f32 %v3914_v14, %v3912_v8 }
 0x827   :  { %2768 = vst [vmem:[%s4649_s4 + $0x30] sm:$0xff] %v2550_v18  ;;  %2626 = vmatmul.mubr.f32.vlgmr.msra.gmra.mrb[14].mxu0 %v2550_v18  ;;  %2697 = vmatmul.mubr.f32.vlgmr.msra.gmra.mrb[14].mxu1 %v2550_v18 }
 0x8fa   :  { %v2627_v23 = vpop.f32.mrb[14].mxu0  ;;  %v2698_v28 = vpop.f32.mrb[14].mxu1 }
 0x8fb   :  { %v3683_v30 = vadd.f32 %v2627_v23, %v4355_v44  ;;  %v2629_v32 = vpop.f32.mrb[15].mxu0  ;;  %v2700_v33 = vpop.f32.mrb[15].mxu1  ;;  %v3699_v29 = vadd.f32 %v2698_v28, %v4361_v0 }
 0x8fc   :  { %v3684_v26 = vadd.f32 %v2629_v32, %v4357_v45  ;;  %v3700_v35 = vadd.f32 %v2700_v33, %v4364_v7 }
 0x8fd   :  { %v2769_v42 = vmul.f32 -1.442695, %v3683_v30  ;;  %v2771_v36 = vmul.f32 -1.442695, %v3699_v29 }
 0x8fe   :  { %v2770_v47 = vmul.f32 -1.442695, %v3684_v26 }
 0x8ff   :  { %3915 = vpow2.f32 %v2769_v42 }
 0x900   :  { %3917 = vpow2.f32 %v2770_v47 }
 0x901   :  { %3919 = vtanh.f32 %v3700_v35 }
 0x902   :  { %3921 = vpow2.f32 %v2771_v36 }
 0x909   :  { %v3916_v38 = vpop.eup %3915 }
 0x90a   :  { %v2716_v50 = vadd.f32 1.0, %v3916_v38  ;;  %v3918_v51 = vpop.eup %3917 }
 0x90b   :  { %v2717_v44 = vadd.f32 1.0, %v3918_v51  ;;  %v3920_v54 = vpop.eup %3919 }
 0x90c   :  { %3923 = vrcp.f32 %v2716_v50  ;;  %v3922_v55 = vpop.eup %3921 }
 0x90d   :  { %3925 = vrcp.f32 %v2717_v44  ;;  %v2718_v61 = vadd.f32 1.0, %v3922_v55 }
 0x90f   :  { %3927 = vrcp.f32 %v2718_v61 }
 0x916   :  { %v3924_v45 = vpop.eup %3923 }
 0x917   :  { %v2728_v57 = vmul.f32 %v3924_v45, %v3920_v54  ;;  %v3926_v59 = vpop.eup %3925 }
 0x918   :  { %v2727_v37 = vmul.f32 %v3926_v59, %v2548_v4 }
 0x919   :  { %v3928_v0 = vpop.eup %3927 }
 0x91a   :  { %v2729_v1 = vadd.f32 %v2728_v57, %v2727_v37 }
 0x91c   :  { %3929 = vtanh.f32 %v2729_v1 }
 0x926   :  { %v3930_v7 = vpop.eup %3929 }
 0x927   :  { %v2731_v40 = vmul.f32 %v3930_v7, %v3928_v0 }
 0x929   :  { %2772 = vst [vmem:[%s4649_s4 + $0x38] sm:$0xff] %v2731_v40 }
 0x92a   :  { %2740 = vsyncpa [#allocation6], 1 }
 0x92b   :  { %2741 = vsyncpa [#allocation8], 1 }

</bundles_post_ra>
